<compile_context>
chip_gen: v7x
topology: tpu7x:2x2x1
jax: 0.10.0
libtpu: 0.0.40
codegen_flags: <defaults>
</compile_context>

<pallas_src>
import functools
import math

import jax
import jax.numpy as jnp
from jax import lax
from jax.experimental import pallas as pl
from jax.experimental.pallas import tpu as pltpu

# ---- scaled-down configuration (original sizes in comments) ----
B_FRAMES = 2                  # batch of frames
IMG_H = IMG_W = 64            # input resolution (original: 200 so that /8 = 25)
C_ATTN = 32                   # channel (original: 128 used in forward / fc)
N_LAYERS = 2                  # hparams.n_layers (original: 3)
ATTN_H = ATTN_W = IMG_H // 8  # x8 encoder output spatial (original: 25)

# Adaptive tile caps.  Double-buffered A/B tiles + f32 acc stay far under the
# 32 MiB scoped-VMEM default on every generation (v7x: 64 MiB physical).
_TM_CAP, _TN_CAP, _TK_CAP = 256, 512, 2048


def _ru(x, m):
    return (x + m - 1) // m * m


# =========================== generic MXU matmul ===========================

def _mm_kernel(a_ref, b_ref, bias_ref, o_ref, acc_ref, *, relu):
    """Tiled matmul, K-loop accumulation in f32, fused bias (+ReLU) epilogue."""
    @pl.when(pl.program_id(2) == 0)
    def _():
        acc_ref[...] = jnp.zeros_like(acc_ref)

    acc_ref[...] += jnp.dot(a_ref[...], b_ref[...],
                            preferred_element_type=jnp.float32)

    @pl.when(pl.program_id(2) == pl.num_programs(2) - 1)
    def _():
        r = acc_ref[...] + bias_ref[...]      # (1,tn) or (tm,1) broadcasts
        if relu:
            r = jnp.maximum(r, 0.0)
        o_ref[...] = r.astype(o_ref.dtype)


def pallas_matmul(a, b, bias=None, relu=False, out_dtype=jnp.float32,
                  bias_on_rows=False, tn_cap=_TN_CAP):
    """a: (M, K) @ b: (K, N) -> (M, N).  bf16 operands, f32 MXU accumulation.

    bias_on_rows=True adds a per-row (M,) bias instead of per-column (N,)
    (used by the operand-swapped convs where Cout sits on the M axis).
    """
    M, K = a.shape
    K2, N = b.shape
    assert K == K2
    a = a.astype(jnp.bfloat16)
    b = b.astype(jnp.bfloat16)

    # Adaptive tiles: don't blow tiny M up to 128 rows, keep N lane-dense,
    # take K in ONE full-dim block when it fits (no pad needed for full dims).
    tm = min(_ru(M, 16), _TM_CAP)      # 16: bf16 sublane packing
    tn = min(_ru(N, 128), tn_cap)
    if K <= _TK_CAP:
        tk, Kp = K, K                  # full-dim K block, no padding
    else:
        tk = _TK_CAP
        Kp = _ru(K, tk)
    Mp, Np = _ru(M, tm), _ru(N, tn)

    ap = a if (Mp, Kp) == (M, K) else jnp.pad(a, ((0, Mp - M), (0, Kp - K)))
    bp = b if (Kp, Np) == (K, N) else jnp.pad(b, ((0, Kp - K), (0, Np - N)))

    if bias_on_rows:
        if bias is None:
            biasp = jnp.zeros((Mp, 1), jnp.float32)
        else:
            biasp = jnp.pad(bias.astype(jnp.float32).reshape(M, 1),
                            ((0, Mp - M), (0, 0)))
        bias_spec = pl.BlockSpec((tm, 1), lambda i, j, k: (i, 0))
    else:
        if bias is None:
            biasp = jnp.zeros((1, Np), jnp.float32)
        else:
            biasp = jnp.pad(bias.astype(jnp.float32).reshape(1, N),
                            ((0, 0), (0, Np - N)))
        bias_spec = pl.BlockSpec((1, tn), lambda i, j, k: (0, j))

    out = pl.pallas_call(
        functools.partial(_mm_kernel, relu=relu),
        out_shape=jax.ShapeDtypeStruct((Mp, Np), out_dtype),
        grid_spec=pltpu.PrefetchScalarGridSpec(
            num_scalar_prefetch=0,
            grid=(Mp // tm, Np // tn, Kp // tk),
            in_specs=[
                pl.BlockSpec((tm, tk), lambda i, j, k: (i, k)),
                pl.BlockSpec((tk, tn), lambda i, j, k: (k, j)),
                bias_spec,
            ],
            out_specs=pl.BlockSpec((tm, tn), lambda i, j, k: (i, j)),
            scratch_shapes=[pltpu.VMEM((tm, tn), jnp.float32)],
        ),
        compiler_params=pltpu.CompilerParams(
            dimension_semantics=("parallel", "parallel", "arbitrary")),
    )(ap, bp, biasp)
    if (Mp, Np) != (M, N):
        out = out[:M, :N]
    return out


# =========================== fused attention stack ===========================

def _attn_stack_kernel(q_all_ref, k_all_ref, v_ref, wv_ref, wo_ref, o_ref,
                       v_scr, *, n_layers):
    """All CrossAttention layers for one batch element; v stays in VMEM."""
    f32, bf16 = jnp.float32, jnp.bfloat16
    v_scr[...] = v_ref[0].astype(f32)                    # (S, C) resident

    for l in range(n_layers):                            # static unroll (L small)
        qf = q_all_ref[0, l, :, :]                       # (S, C) bf16, 1/sqrt(C) folded in
        kf = k_all_ref[0, l, :, :]                       # (S, C) bf16
        v_t = v_scr[...]                                 # (S, C) f32

        vf = jnp.dot(v_t.astype(bf16), wv_ref[l],
                     preferred_element_type=f32)

        # scores on the MXU, contracting the last dims (no explicit .T of K)
        s = lax.dot_general(qf, kf, (((1,), (1,)), ((), ())),
                            preferred_element_type=f32)  # (S, S)
        s = s - jnp.max(s, axis=-1, keepdims=True)
        e = jnp.exp(s)
        p = e * pl.reciprocal(jnp.sum(e, axis=-1, keepdims=True), approx=True)

        av = jnp.dot(p.astype(bf16), vf.astype(bf16),
                     preferred_element_type=f32)
        o = jnp.dot(av.astype(bf16), wo_ref[l], preferred_element_type=f32)

        # residual onto the (unprojected) value tokens
        v_scr[...] = v_t + o

    o_ref[0] = v_scr[...].astype(o_ref.dtype)


# TODO(synk): CrossAttention body not given in source; stand-in = 1x1 q/k/v/out
# projections + softmax(QK^T/sqrt(C))V over spatial tokens with residual onto v.
def pallas_attention_stack(q_all, k_all, v_tok, wv_stack, wo_stack):
    """q_all/k_all: (B, L, S, C) pre-projected; v_tok: (B, S, C) tokens."""
    Bn, L, S, C = q_all.shape
    # TODO(synk): at the original S=625, pad tokens once here to S=640 with
    # -inf-masked key columns for lane-aligned score/softmax tiles (moot at S=64).
    tok_spec = pl.BlockSpec((1, S, C), lambda b: (b, 0, 0))       # full S, C
    proj_spec = pl.BlockSpec((1, L, S, C), lambda b: (b, 0, 0, 0))
    w_spec = pl.BlockSpec((L, C, C), lambda b: (0, 0, 0))
    return pl.pallas_call(
        functools.partial(_attn_stack_kernel, n_layers=L),
        out_shape=jax.ShapeDtypeStruct((Bn, S, C), jnp.bfloat16),
        grid=(Bn,),
        in_specs=[proj_spec, proj_spec, tok_spec, w_spec, w_spec],
        out_specs=tok_spec,
        scratch_shapes=[pltpu.VMEM((S, C), jnp.float32)],
        compiler_params=pltpu.CompilerParams(
            dimension_semantics=("parallel",)),
    )(q_all.astype(jnp.bfloat16), k_all.astype(jnp.bfloat16),
      v_tok.astype(jnp.bfloat16), wv_stack.astype(jnp.bfloat16),
      wo_stack.astype(jnp.bfloat16))


# =========================== conv glue ===========================

def conv2d_mm(x, w, stride=1, padding=0, bias=None, relu=False, gamma=None,
              out_tokens=False, out_dtype=jnp.bfloat16):
    """Bias-free NCHW conv as im2col + Pallas MXU matmul, lane-dense output.

    Operands are swapped (W^T @ patches^T) so the big spatial dim (B*Ho*Wo)
    sits on the lane/N axis and the small Cout on sublanes/M: no N padding
    32->128 and no output slice copy.  im2col + glue run in bf16.
    Optional per-channel affine (gamma/beta of the eval-mode norm) is folded
    into the weight / row-bias so affine+ReLU fuse into the matmul epilogue.
    """
    Bn, Cin, H, W = x.shape
    Cout, _, kh, kw = w.shape
    x = x.astype(jnp.bfloat16)                       # bf16 BEFORE 9x im2col expand
    patches = lax.conv_general_dilated_patches(
        x, filter_shape=(kh, kw), window_strides=(stride, stride),
        padding=((padding, padding), (padding, padding)))
    _, Kdim, Ho, Wo = patches.shape                  # features channel-major (c, ky, kx)
    at = patches.transpose(1, 0, 2, 3).reshape(Kdim, Bn * Ho * Wo)   # A^T: (K, spatial)
    wt = w.reshape(Cout, Kdim)                       # W^T-of-matmul: (Cout, K)
    if gamma is not None:                            # fold affine scale (f32) into weight
        wt = wt * gamma[:, None]
    # (Cout, K) @ (K, B*Ho*Wo) -> (Cout, B*Ho*Wo); beta is a per-row bias
    y = pallas_matmul(wt, at, bias=bias, relu=relu, bias_on_rows=True,
                      out_dtype=out_dtype)
    y = y.reshape(Cout, Bn, Ho, Wo)
    if out_tokens:
        return y.transpose(1, 2, 3, 0).reshape(Bn, Ho * Wo, Cout), (Ho, Wo)
    return y.transpose(1, 0, 2, 3)                   # NCHW


# TODO(synk): Encoderx8Simp body not given in source; stand-in = three stride-2
# bias-free 3x3 convs (x8 downsample), per-channel affine when use_norm, ReLU.
# TODO(synk): if the real norm is BatchNorm/InstanceNorm in eval mode, fold the
# running mean/var too (w *= g/sqrt(var+eps); b = beta - mean*g/sqrt(var+eps)).
def encoder_x8(x, p, use_norm):
    n = len(p['convs'])
    for i in range(n):
        gamma = p['gamma'][i] if use_norm else None
        beta = p['beta'][i] if use_norm else None
        x = conv2d_mm(x, p['convs'][i], stride=2, padding=1,
                      bias=beta, relu=True, gamma=gamma,
                      out_tokens=(i == n - 1))
    return x     # (tokens (B, S, C) bf16, (h, w))


# =========================== Pose_ATTN forward ===========================

def pose_attn_forward(params, k_frames, q_frames, v_frames):
    k_tok, (h, w) = encoder_x8(k_frames, params['enc_k'], use_norm=True)   # encoderk
    v_tok, _ = encoder_x8(v_frames, params['enc_v'], use_norm=False)       # encoderv
    Bn, S, C = k_tok.shape
    L = len(params['layers'])
    scale = 1.0 / math.sqrt(C)

    # q1 = self.fc(q_frames); q1 = q1.view(B, C, h, w)   (channel-major view)
    # tiny-M matmul: single fat lane-dense N block (tn_cap raised per-call)
    q1 = pallas_matmul(q_frames, params['fc_w'], params['fc_b'],
                       out_dtype=jnp.bfloat16, tn_cap=4096)
    q_tok = q1.reshape(Bn, C, h, w).transpose(0, 2, 3, 1).reshape(Bn, S, C)

    # Hoist the layer-invariant Q / K projections out of the layer loop:
    # one lane-dense (C, L*C) matmul each; softmax scale folded into wq.
    wq_all = jnp.concatenate([lp['wq'] * scale for lp in params['layers']], axis=1)
    wk_all = jnp.concatenate([lp['wk'] for lp in params['layers']], axis=1)
    q_all = pallas_matmul(q_tok.reshape(Bn * S, C), wq_all, out_dtype=jnp.bfloat16)
    k_all = pallas_matmul(k_tok.reshape(Bn * S, C), wk_all, out_dtype=jnp.bfloat16)
    q_all = q_all.reshape(Bn, S, L, C).transpose(0, 2, 1, 3)    # (B, L, S, C)
    k_all = k_all.reshape(Bn, S, L, C).transpose(0, 2, 1, 3)

    wv_stack = jnp.stack([lp['wv'] for lp in params['layers']], axis=0)   # (L, C, C)
    wo_stack = jnp.stack([lp['wo'] for lp in params['layers']], axis=0)

    # for module in self.transformers_attn: v = module(k, q1, v)
    # -> all layers fused into ONE kernel, v resident in VMEM across layers.
    v_tok = pallas_attention_stack(q_all, k_all, v_tok, wv_stack, wo_stack)

    v = v_tok.reshape(Bn, h, w, C).transpose(0, 3, 1, 2).astype(jnp.float32)
    # torch .squeeze(-1): only drops the last dim if it has size 1
    return v[..., 0] if v.shape[-1] == 1 else v


# =========================== parameters ===========================
# Note: decoder / pool / flatten from Pose_ATTN.__init__ are never used in
# forward(), so they are not materialized here.

class KeyGen:
    def __init__(self, key):
        self._key = key

    def __call__(self):
        self._key, sub = jax.random.split(self._key)
        return sub


def conv_init(kg, shape):
    fan_in = shape[1] * shape[2] * shape[3]
    return jax.random.normal(kg(), shape, jnp.float32) * math.sqrt(2.0 / fan_in)


def lin_init(kg, din, dout):
    return jax.random.normal(kg(), (din, dout), jnp.float32) * math.sqrt(1.0 / din)


def build_params(kg):
    p = {}
    p['enc_k'] = {'convs': [conv_init(kg, (C_ATTN, 6, 3, 3)),
                            conv_init(kg, (C_ATTN, C_ATTN, 3, 3)),
                            conv_init(kg, (C_ATTN, C_ATTN, 3, 3))],
                  'gamma': [jnp.ones((C_ATTN,), jnp.float32)] * 3,
                  'beta': [jnp.zeros((C_ATTN,), jnp.float32)] * 3}
    p['enc_v'] = {'convs': [conv_init(kg, (C_ATTN, 6, 3, 3)),
                            conv_init(kg, (C_ATTN, C_ATTN, 3, 3)),
                            conv_init(kg, (C_ATTN, C_ATTN, 3, 3))]}
    fc_out = C_ATTN * ATTN_H * ATTN_W        # original: 128 * 25 * 25
    p['fc_w'] = lin_init(kg, C_ATTN, fc_out)
    p['fc_b'] = jnp.zeros((fc_out,), jnp.float32)
    p['layers'] = [{'wq': lin_init(kg, C_ATTN, C_ATTN),
                    'wk': lin_init(kg, C_ATTN, C_ATTN),
                    'wv': lin_init(kg, C_ATTN, C_ATTN),
                    'wo': lin_init(kg, C_ATTN, C_ATTN)}
                   for _ in range(N_LAYERS)]
    return p


if __name__ == "__main__":
    root = jax.random.PRNGKey(0)
    kparams, kinputs = jax.random.split(root)
    params = build_params(KeyGen(kparams))

    k1, k2, k3 = jax.random.split(kinputs, 3)
    k_frames = jax.random.normal(k1, (B_FRAMES, 6, IMG_H, IMG_W), jnp.float32)
    v_frames = jax.random.normal(k2, (B_FRAMES, 6, IMG_H, IMG_W), jnp.float32)
    q_frames = jax.random.normal(k3, (B_FRAMES, C_ATTN), jnp.float32)

    fwd = jax.jit(pose_attn_forward)
    out = jax.block_until_ready(fwd(params, k_frames, q_frames, v_frames))

    assert out.shape == (B_FRAMES, C_ATTN, ATTN_H, ATTN_W), out.shape
    assert bool(jnp.all(jnp.isfinite(out)))
    print("KERNEL_OK")
</pallas_src>

<mosaic_0001>
module attributes {stable_mosaic.version = 11 : i64} {
  func.func @_mm_kernel(%arg0: i32, %arg1: i32, %arg2: i32, %arg3: memref<32x54xbf16, #tpu.memory_space<vmem>>, %arg4: memref<54x512xbf16, #tpu.memory_space<vmem>>, %arg5: memref<32x1xf32, #tpu.memory_space<vmem>>, %arg6: memref<32x512xbf16, #tpu.memory_space<vmem>>, %arg7: memref<32x512xf32, #tpu.memory_space<vmem>>) attributes {dimension_semantics = [#tpu.dimension_semantics<parallel>, #tpu.dimension_semantics<parallel>, #tpu.dimension_semantics<arbitrary>], iteration_bounds = array<i64: 1, 4, 1>, scalar_prefetch = 0 : i64, scratch_operands = 1 : i64, tpu.core_type = #tpu.core_type<tc>, window_params = [{transform_indices = @transform_0, window_bounds = array<i64: 32, 54>}, {transform_indices = @transform_1, window_bounds = array<i64: 54, 512>}, {transform_indices = @transform_2, window_bounds = array<i64: 32, 1>}, {transform_indices = @transform_3, window_bounds = array<i64: 32, 512>}]} {
    %c0_i32 = arith.constant 0 : i32
    %0 = arith.cmpi eq, %arg2, %c0_i32 : i32
    %1 = arith.extui %0 : i1 to i32
    %c0_i32_0 = arith.constant 0 : i32
    %2 = arith.cmpi ne, %1, %c0_i32_0 : i32
    scf.if %2 {
      %cst_10 = arith.constant 0.000000e+00 : f32
      %12 = vector.broadcast %cst_10 : f32 to vector<32x512xf32>
      %c0_11 = arith.constant 0 : index
      %c0_12 = arith.constant 0 : index
      %13 = vector.load %arg7[%c0_11, %c0_12] : memref<32x512xf32, #tpu.memory_space<vmem>>, vector<32x512xf32>
      tpu.vector_store %arg7[%c0_11, %c0_12], %12 {strides = array<i32>} : memref<32x512xf32, #tpu.memory_space<vmem>>, vector<32x512xf32>,
    } else {
    }
    %c0 = arith.constant 0 : index
    %c0_1 = arith.constant 0 : index
    %3 = vector.load %arg7[%c0, %c0_1] : memref<32x512xf32, #tpu.memory_space<vmem>>, vector<32x512xf32>
    %c0_2 = arith.constant 0 : index
    %c0_3 = arith.constant 0 : index
    %4 = vector.load %arg3[%c0_2, %c0_3] : memref<32x54xbf16, #tpu.memory_space<vmem>>, vector<32x54xbf16>
    %c0_4 = arith.constant 0 : index
    %c0_5 = arith.constant 0 : index
    %5 = vector.load %arg4[%c0_4, %c0_5] : memref<54x512xbf16, #tpu.memory_space<vmem>>, vector<54x512xbf16>
    %cst = arith.constant dense<0.000000e+00> : vector<32x512xf32>
    %6 = tpu.matmul %4, %5, %cst {dimension_numbers = #tpu.dot_dimension_numbers<[1], [0], [0], [1], [0, 0, 1, 1], [], []>} : vector<32x54xbf16>, vector<54x512xbf16>, vector<32x512xf32> -> vector<32x512xf32>
    %7 = arith.addf %3, %6 : vector<32x512xf32>
    %c0_6 = arith.constant 0 : index
    %c0_7 = arith.constant 0 : index
    %8 = vector.load %arg7[%c0_6, %c0_7] : memref<32x512xf32, #tpu.memory_space<vmem>>, vector<32x512xf32>
    tpu.vector_store %arg7[%c0_6, %c0_7], %7 {strides = array<i32>} : memref<32x512xf32, #tpu.memory_space<vmem>>, vector<32x512xf32>,
    %c0_i32_8 = arith.constant 0 : i32
    %9 = arith.cmpi eq, %arg2, %c0_i32_8 : i32
    %10 = arith.extui %9 : i1 to i32
    %c0_i32_9 = arith.constant 0 : i32
    %11 = arith.cmpi ne, %10, %c0_i32_9 : i32
    scf.if %11 {
      %c0_10 = arith.constant 0 : index
      %c0_11 = arith.constant 0 : index
      %12 = vector.load %arg7[%c0_10, %c0_11] : memref<32x512xf32, #tpu.memory_space<vmem>>, vector<32x512xf32>
      %c0_12 = arith.constant 0 : index
      %c0_13 = arith.constant 0 : index
      %13 = vector.load %arg5[%c0_12, %c0_13] : memref<32x1xf32, #tpu.memory_space<vmem>>, vector<32x1xf32>
      %14 = vector.broadcast %13 : vector<32x1xf32> to vector<32x512xf32>
      %15 = arith.addf %12, %14 : vector<32x512xf32>
      %cst_14 = arith.constant 0.000000e+00 : f32
      %16 = vector.broadcast %cst_14 : f32 to vector<32x512xf32>
      %17 = arith.maximumf %15, %16 : vector<32x512xf32>
      %18 = arith.truncf %17 : vector<32x512xf32> to vector<32x512xbf16>
      %c0_15 = arith.constant 0 : index
      %c0_16 = arith.constant 0 : index
      %19 = vector.load %arg6[%c0_15, %c0_16] : memref<32x512xbf16, #tpu.memory_space<vmem>>, vector<32x512xbf16>
      tpu.vector_store %arg6[%c0_15, %c0_16], %18 {strides = array<i32>} : memref<32x512xbf16, #tpu.memory_space<vmem>>, vector<32x512xbf16>,
    } else {
    }
    return
  }
  func.func @transform_0(%arg0: i32, %arg1: i32, %arg2: i32) -> (i32, i32) {
    %c0_i32 = arith.constant 0 : i32
    return %arg0, %arg2 : i32, i32
  }
  func.func @transform_1(%arg0: i32, %arg1: i32, %arg2: i32) -> (i32, i32) {
    %c0_i32 = arith.constant 0 : i32
    return %arg2, %arg1 : i32, i32
  }
  func.func @transform_2(%arg0: i32, %arg1: i32, %arg2: i32) -> (i32, i32) {
    %c0_i32 = arith.constant 0 : i32
    %c0_i32_0 = arith.constant 0 : i32
    return %arg0, %c0_i32 : i32, i32
  }
  func.func @transform_3(%arg0: i32, %arg1: i32, %arg2: i32) -> (i32, i32) {
    %c0_i32 = arith.constant 0 : i32
    return %arg0, %arg1 : i32, i32
  }
}

module attributes {stable_mosaic.version = 11 : i64} {
  func.func @_mm_kernel(%arg0: i32, %arg1: i32, %arg2: i32, %arg3: memref<32x288xbf16, #tpu.memory_space<vmem>>, %arg4: memref<288x512xbf16, #tpu.memory_space<vmem>>, %arg5: memref<32x1xf32, #tpu.memory_space<vmem>>, %arg6: memref<32x512xbf16, #tpu.memory_space<vmem>>, %arg7: memref<32x512xf32, #tpu.memory_space<vmem>>) attributes {dimension_semantics = [#tpu.dimension_semantics<parallel>, #tpu.dimension_semantics<parallel>, #tpu.dimension_semantics<arbitrary>], iteration_bounds = array<i64: 1, 1, 1>, scalar_prefetch = 0 : i64, scratch_operands = 1 : i64, tpu.core_type = #tpu.core_type<tc>, window_params = [{transform_indices = @transform_0, window_bounds = array<i64: 32, 288>}, {transform_indices = @transform_1, window_bounds = array<i64: 288, 512>}, {transform_indices = @transform_2, window_bounds = array<i64: 32, 1>}, {transform_indices = @transform_3, window_bounds = array<i64: 32, 512>}]} {
    %c0_i32 = arith.constant 0 : i32
    %0 = arith.cmpi eq, %arg2, %c0_i32 : i32
    %1 = arith.extui %0 : i1 to i32
    %c0_i32_0 = arith.constant 0 : i32
    %2 = arith.cmpi ne, %1, %c0_i32_0 : i32
    scf.if %2 {
      %cst_10 = arith.constant 0.000000e+00 : f32
      %12 = vector.broadcast %cst_10 : f32 to vector<32x512xf32>
      %c0_11 = arith.constant 0 : index
      %c0_12 = arith.constant 0 : index
      %13 = vector.load %arg7[%c0_11, %c0_12] : memref<32x512xf32, #tpu.memory_space<vmem>>, vector<32x512xf32>
      tpu.vector_store %arg7[%c0_11, %c0_12], %12 {strides = array<i32>} : memref<32x512xf32, #tpu.memory_space<vmem>>, vector<32x512xf32>,
    } else {
    }
    %c0 = arith.constant 0 : index
    %c0_1 = arith.constant 0 : index
    %3 = vector.load %arg7[%c0, %c0_1] : memref<32x512xf32, #tpu.memory_space<vmem>>, vector<32x512xf32>
    %c0_2 = arith.constant 0 : index
    %c0_3 = arith.constant 0 : index
    %4 = vector.load %arg3[%c0_2, %c0_3] : memref<32x288xbf16, #tpu.memory_space<vmem>>, vector<32x288xbf16>
    %c0_4 = arith.constant 0 : index
    %c0_5 = arith.constant 0 : index
    %5 = vector.load %arg4[%c0_4, %c0_5] : memref<288x512xbf16, #tpu.memory_space<vmem>>, vector<288x512xbf16>
    %cst = arith.constant dense<0.000000e+00> : vector<32x512xf32>
    %6 = tpu.matmul %4, %5, %cst {dimension_numbers = #tpu.dot_dimension_numbers<[1], [0], [0], [1], [0, 0, 1, 1], [], []>} : vector<32x288xbf16>, vector<288x512xbf16>, vector<32x512xf32> -> vector<32x512xf32>
    %7 = arith.addf %3, %6 : vector<32x512xf32>
    %c0_6 = arith.constant 0 : index
    %c0_7 = arith.constant 0 : index
    %8 = vector.load %arg7[%c0_6, %c0_7] : memref<32x512xf32, #tpu.memory_space<vmem>>, vector<32x512xf32>
    tpu.vector_store %arg7[%c0_6, %c0_7], %7 {strides = array<i32>} : memref<32x512xf32, #tpu.memory_space<vmem>>, vector<32x512xf32>,
    %c0_i32_8 = arith.constant 0 : i32
    %9 = arith.cmpi eq, %arg2, %c0_i32_8 : i32
    %10 = arith.extui %9 : i1 to i32
    %c0_i32_9 = arith.constant 0 : i32
    %11 = arith.cmpi ne, %10, %c0_i32_9 : i32
    scf.if %11 {
      %c0_10 = arith.constant 0 : index
      %c0_11 = arith.constant 0 : index
      %12 = vector.load %arg7[%c0_10, %c0_11] : memref<32x512xf32, #tpu.memory_space<vmem>>, vector<32x512xf32>
      %c0_12 = arith.constant 0 : index
      %c0_13 = arith.constant 0 : index
      %13 = vector.load %arg5[%c0_12, %c0_13] : memref<32x1xf32, #tpu.memory_space<vmem>>, vector<32x1xf32>
      %14 = vector.broadcast %13 : vector<32x1xf32> to vector<32x512xf32>
      %15 = arith.addf %12, %14 : vector<32x512xf32>
      %cst_14 = arith.constant 0.000000e+00 : f32
      %16 = vector.broadcast %cst_14 : f32 to vector<32x512xf32>
      %17 = arith.maximumf %15, %16 : vector<32x512xf32>
      %18 = arith.truncf %17 : vector<32x512xf32> to vector<32x512xbf16>
      %c0_15 = arith.constant 0 : index
      %c0_16 = arith.constant 0 : index
      %19 = vector.load %arg6[%c0_15, %c0_16] : memref<32x512xbf16, #tpu.memory_space<vmem>>, vector<32x512xbf16>
      tpu.vector_store %arg6[%c0_15, %c0_16], %18 {strides = array<i32>} : memref<32x512xbf16, #tpu.memory_space<vmem>>, vector<32x512xbf16>,
    } else {
    }
    return
  }
  func.func @transform_0(%arg0: i32, %arg1: i32, %arg2: i32) -> (i32, i32) {
    %c0_i32 = arith.constant 0 : i32
    return %arg0, %arg2 : i32, i32
  }
  func.func @transform_1(%arg0: i32, %arg1: i32, %arg2: i32) -> (i32, i32) {
    %c0_i32 = arith.constant 0 : i32
    return %arg2, %arg1 : i32, i32
  }
  func.func @transform_2(%arg0: i32, %arg1: i32, %arg2: i32) -> (i32, i32) {
    %c0_i32 = arith.constant 0 : i32
    %c0_i32_0 = arith.constant 0 : i32
    return %arg0, %c0_i32 : i32, i32
  }
  func.func @transform_3(%arg0: i32, %arg1: i32, %arg2: i32) -> (i32, i32) {
    %c0_i32 = arith.constant 0 : i32
    return %arg0, %arg1 : i32, i32
  }
}

module attributes {stable_mosaic.version = 11 : i64} {
  func.func @_mm_kernel(%arg0: i32, %arg1: i32, %arg2: i32, %arg3: memref<32x288xbf16, #tpu.memory_space<vmem>>, %arg4: memref<288x128xbf16, #tpu.memory_space<vmem>>, %arg5: memref<32x1xf32, #tpu.memory_space<vmem>>, %arg6: memref<32x128xbf16, #tpu.memory_space<vmem>>, %arg7: memref<32x128xf32, #tpu.memory_space<vmem>>) attributes {dimension_semantics = [#tpu.dimension_semantics<parallel>, #tpu.dimension_semantics<parallel>, #tpu.dimension_semantics<arbitrary>], iteration_bounds = array<i64: 1, 1, 1>, scalar_prefetch = 0 : i64, scratch_operands = 1 : i64, tpu.core_type = #tpu.core_type<tc>, window_params = [{transform_indices = @transform_0, window_bounds = array<i64: 32, 288>}, {transform_indices = @transform_1, window_bounds = array<i64: 288, 128>}, {transform_indices = @transform_2, window_bounds = array<i64: 32, 1>}, {transform_indices = @transform_3, window_bounds = array<i64: 32, 128>}]} {
    %c0_i32 = arith.constant 0 : i32
    %0 = arith.cmpi eq, %arg2, %c0_i32 : i32
    %1 = arith.extui %0 : i1 to i32
    %c0_i32_0 = arith.constant 0 : i32
    %2 = arith.cmpi ne, %1, %c0_i32_0 : i32
    scf.if %2 {
      %cst_10 = arith.constant 0.000000e+00 : f32
      %12 = vector.broadcast %cst_10 : f32 to vector<32x128xf32>
      %c0_11 = arith.constant 0 : index
      %c0_12 = arith.constant 0 : index
      %13 = vector.load %arg7[%c0_11, %c0_12] : memref<32x128xf32, #tpu.memory_space<vmem>>, vector<32x128xf32>
      tpu.vector_store %arg7[%c0_11, %c0_12], %12 {strides = array<i32>} : memref<32x128xf32, #tpu.memory_space<vmem>>, vector<32x128xf32>,
    } else {
    }
    %c0 = arith.constant 0 : index
    %c0_1 = arith.constant 0 : index
    %3 = vector.load %arg7[%c0, %c0_1] : memref<32x128xf32, #tpu.memory_space<vmem>>, vector<32x128xf32>
    %c0_2 = arith.constant 0 : index
    %c0_3 = arith.constant 0 : index
    %4 = vector.load %arg3[%c0_2, %c0_3] : memref<32x288xbf16, #tpu.memory_space<vmem>>, vector<32x288xbf16>
    %c0_4 = arith.constant 0 : index
    %c0_5 = arith.constant 0 : index
    %5 = vector.load %arg4[%c0_4, %c0_5] : memref<288x128xbf16, #tpu.memory_space<vmem>>, vector<288x128xbf16>
    %cst = arith.constant dense<0.000000e+00> : vector<32x128xf32>
    %6 = tpu.matmul %4, %5, %cst {dimension_numbers = #tpu.dot_dimension_numbers<[1], [0], [0], [1], [0, 0, 1, 1], [], []>} : vector<32x288xbf16>, vector<288x128xbf16>, vector<32x128xf32> -> vector<32x128xf32>
    %7 = arith.addf %3, %6 : vector<32x128xf32>
    %c0_6 = arith.constant 0 : index
    %c0_7 = arith.constant 0 : index
    %8 = vector.load %arg7[%c0_6, %c0_7] : memref<32x128xf32, #tpu.memory_space<vmem>>, vector<32x128xf32>
    tpu.vector_store %arg7[%c0_6, %c0_7], %7 {strides = array<i32>} : memref<32x128xf32, #tpu.memory_space<vmem>>, vector<32x128xf32>,
    %c0_i32_8 = arith.constant 0 : i32
    %9 = arith.cmpi eq, %arg2, %c0_i32_8 : i32
    %10 = arith.extui %9 : i1 to i32
    %c0_i32_9 = arith.constant 0 : i32
    %11 = arith.cmpi ne, %10, %c0_i32_9 : i32
    scf.if %11 {
      %c0_10 = arith.constant 0 : index
      %c0_11 = arith.constant 0 : index
      %12 = vector.load %arg7[%c0_10, %c0_11] : memref<32x128xf32, #tpu.memory_space<vmem>>, vector<32x128xf32>
      %c0_12 = arith.constant 0 : index
      %c0_13 = arith.constant 0 : index
      %13 = vector.load %arg5[%c0_12, %c0_13] : memref<32x1xf32, #tpu.memory_space<vmem>>, vector<32x1xf32>
      %14 = vector.broadcast %13 : vector<32x1xf32> to vector<32x128xf32>
      %15 = arith.addf %12, %14 : vector<32x128xf32>
      %cst_14 = arith.constant 0.000000e+00 : f32
      %16 = vector.broadcast %cst_14 : f32 to vector<32x128xf32>
      %17 = arith.maximumf %15, %16 : vector<32x128xf32>
      %18 = arith.truncf %17 : vector<32x128xf32> to vector<32x128xbf16>
      %c0_15 = arith.constant 0 : index
      %c0_16 = arith.constant 0 : index
      %19 = vector.load %arg6[%c0_15, %c0_16] : memref<32x128xbf16, #tpu.memory_space<vmem>>, vector<32x128xbf16>
      tpu.vector_store %arg6[%c0_15, %c0_16], %18 {strides = array<i32>} : memref<32x128xbf16, #tpu.memory_space<vmem>>, vector<32x128xbf16>,
    } else {
    }
    return
  }
  func.func @transform_0(%arg0: i32, %arg1: i32, %arg2: i32) -> (i32, i32) {
    %c0_i32 = arith.constant 0 : i32
    return %arg0, %arg2 : i32, i32
  }
  func.func @transform_1(%arg0: i32, %arg1: i32, %arg2: i32) -> (i32, i32) {
    %c0_i32 = arith.constant 0 : i32
    return %arg2, %arg1 : i32, i32
  }
  func.func @transform_2(%arg0: i32, %arg1: i32, %arg2: i32) -> (i32, i32) {
    %c0_i32 = arith.constant 0 : i32
    %c0_i32_0 = arith.constant 0 : i32
    return %arg0, %c0_i32 : i32, i32
  }
  func.func @transform_3(%arg0: i32, %arg1: i32, %arg2: i32) -> (i32, i32) {
    %c0_i32 = arith.constant 0 : i32
    return %arg0, %arg1 : i32, i32
  }
}

module attributes {stable_mosaic.version = 11 : i64} {
  func.func @_mm_kernel(%arg0: i32, %arg1: i32, %arg2: i32, %arg3: memref<128x32xbf16, #tpu.memory_space<vmem>>, %arg4: memref<32x128xbf16, #tpu.memory_space<vmem>>, %arg5: memref<1x128xf32, #tpu.memory_space<vmem>>, %arg6: memref<128x128xbf16, #tpu.memory_space<vmem>>, %arg7: memref<128x128xf32, #tpu.memory_space<vmem>>) attributes {dimension_semantics = [#tpu.dimension_semantics<parallel>, #tpu.dimension_semantics<parallel>, #tpu.dimension_semantics<arbitrary>], iteration_bounds = array<i64: 1, 1, 1>, scalar_prefetch = 0 : i64, scratch_operands = 1 : i64, tpu.core_type = #tpu.core_type<tc>, window_params = [{transform_indices = @transform_0, window_bounds = array<i64: 128, 32>}, {transform_indices = @transform_1, window_bounds = array<i64: 32, 128>}, {transform_indices = @transform_2, window_bounds = array<i64: 1, 128>}, {transform_indices = @transform_3, window_bounds = array<i64: 128, 128>}]} {
    %c0_i32 = arith.constant 0 : i32
    %0 = arith.cmpi eq, %arg2, %c0_i32 : i32
    %1 = arith.extui %0 : i1 to i32
    %c0_i32_0 = arith.constant 0 : i32
    %2 = arith.cmpi ne, %1, %c0_i32_0 : i32
    scf.if %2 {
      %cst_10 = arith.constant 0.000000e+00 : f32
      %12 = vector.broadcast %cst_10 : f32 to vector<128x128xf32>
      %c0_11 = arith.constant 0 : index
      %c0_12 = arith.constant 0 : index
      %13 = vector.load %arg7[%c0_11, %c0_12] : memref<128x128xf32, #tpu.memory_space<vmem>>, vector<128x128xf32>
      tpu.vector_store %arg7[%c0_11, %c0_12], %12 {strides = array<i32>} : memref<128x128xf32, #tpu.memory_space<vmem>>, vector<128x128xf32>,
    } else {
    }
    %c0 = arith.constant 0 : index
    %c0_1 = arith.constant 0 : index
    %3 = vector.load %arg7[%c0, %c0_1] : memref<128x128xf32, #tpu.memory_space<vmem>>, vector<128x128xf32>
    %c0_2 = arith.constant 0 : index
    %c0_3 = arith.constant 0 : index
    %4 = vector.load %arg3[%c0_2, %c0_3] : memref<128x32xbf16, #tpu.memory_space<vmem>>, vector<128x32xbf16>
    %c0_4 = arith.constant 0 : index
    %c0_5 = arith.constant 0 : index
    %5 = vector.load %arg4[%c0_4, %c0_5] : memref<32x128xbf16, #tpu.memory_space<vmem>>, vector<32x128xbf16>
    %cst = arith.constant dense<0.000000e+00> : vector<128x128xf32>
    %6 = tpu.matmul %4, %5, %cst {dimension_numbers = #tpu.dot_dimension_numbers<[1], [0], [0], [1], [0, 0, 1, 1], [], []>} : vector<128x32xbf16>, vector<32x128xbf16>, vector<128x128xf32> -> vector<128x128xf32>
    %7 = arith.addf %3, %6 : vector<128x128xf32>
    %c0_6 = arith.constant 0 : index
    %c0_7 = arith.constant 0 : index
    %8 = vector.load %arg7[%c0_6, %c0_7] : memref<128x128xf32, #tpu.memory_space<vmem>>, vector<128x128xf32>
    tpu.vector_store %arg7[%c0_6, %c0_7], %7 {strides = array<i32>} : memref<128x128xf32, #tpu.memory_space<vmem>>, vector<128x128xf32>,
    %c0_i32_8 = arith.constant 0 : i32
    %9 = arith.cmpi eq, %arg2, %c0_i32_8 : i32
    %10 = arith.extui %9 : i1 to i32
    %c0_i32_9 = arith.constant 0 : i32
    %11 = arith.cmpi ne, %10, %c0_i32_9 : i32
    scf.if %11 {
      %c0_10 = arith.constant 0 : index
      %c0_11 = arith.constant 0 : index
      %12 = vector.load %arg7[%c0_10, %c0_11] : memref<128x128xf32, #tpu.memory_space<vmem>>, vector<128x128xf32>
      %c0_12 = arith.constant 0 : index
      %c0_13 = arith.constant 0 : index
      %13 = vector.load %arg5[%c0_12, %c0_13] : memref<1x128xf32, #tpu.memory_space<vmem>>, vector<1x128xf32>
      %14 = vector.broadcast %13 : vector<1x128xf32> to vector<128x128xf32>
      %15 = arith.addf %12, %14 : vector<128x128xf32>
      %16 = arith.truncf %15 : vector<128x128xf32> to vector<128x128xbf16>
      %c0_14 = arith.constant 0 : index
      %c0_15 = arith.constant 0 : index
      %17 = vector.load %arg6[%c0_14, %c0_15] : memref<128x128xbf16, #tpu.memory_space<vmem>>, vector<128x128xbf16>
      tpu.vector_store %arg6[%c0_14, %c0_15], %16 {strides = array<i32>} : memref<128x128xbf16, #tpu.memory_space<vmem>>, vector<128x128xbf16>,
    } else {
    }
    return
  }
  func.func @transform_0(%arg0: i32, %arg1: i32, %arg2: i32) -> (i32, i32) {
    %c0_i32 = arith.constant 0 : i32
    return %arg0, %arg2 : i32, i32
  }
  func.func @transform_1(%arg0: i32, %arg1: i32, %arg2: i32) -> (i32, i32) {
    %c0_i32 = arith.constant 0 : i32
    return %arg2, %arg1 : i32, i32
  }
  func.func @transform_2(%arg0: i32, %arg1: i32, %arg2: i32) -> (i32, i32) {
    %c0_i32 = arith.constant 0 : i32
    %c0_i32_0 = arith.constant 0 : i32
    return %c0_i32, %arg1 : i32, i32
  }
  func.func @transform_3(%arg0: i32, %arg1: i32, %arg2: i32) -> (i32, i32) {
    %c0_i32 = arith.constant 0 : i32
    return %arg0, %arg1 : i32, i32
  }
}

module attributes {stable_mosaic.version = 11 : i64} {
  func.func @_mm_kernel(%arg0: i32, %arg1: i32, %arg2: i32, %arg3: memref<16x32xbf16, #tpu.memory_space<vmem>>, %arg4: memref<32x2048xbf16, #tpu.memory_space<vmem>>, %arg5: memref<1x2048xf32, #tpu.memory_space<vmem>>, %arg6: memref<16x2048xbf16, #tpu.memory_space<vmem>>, %arg7: memref<16x2048xf32, #tpu.memory_space<vmem>>) attributes {dimension_semantics = [#tpu.dimension_semantics<parallel>, #tpu.dimension_semantics<parallel>, #tpu.dimension_semantics<arbitrary>], iteration_bounds = array<i64: 1, 1, 1>, scalar_prefetch = 0 : i64, scratch_operands = 1 : i64, tpu.core_type = #tpu.core_type<tc>, window_params = [{transform_indices = @transform_0, window_bounds = array<i64: 16, 32>}, {transform_indices = @transform_1, window_bounds = array<i64: 32, 2048>}, {transform_indices = @transform_2, window_bounds = array<i64: 1, 2048>}, {transform_indices = @transform_3, window_bounds = array<i64: 16, 2048>}]} {
    %c0_i32 = arith.constant 0 : i32
    %0 = arith.cmpi eq, %arg2, %c0_i32 : i32
    %1 = arith.extui %0 : i1 to i32
    %c0_i32_0 = arith.constant 0 : i32
    %2 = arith.cmpi ne, %1, %c0_i32_0 : i32
    scf.if %2 {
      %cst_10 = arith.constant 0.000000e+00 : f32
      %12 = vector.broadcast %cst_10 : f32 to vector<16x2048xf32>
      %c0_11 = arith.constant 0 : index
      %c0_12 = arith.constant 0 : index
      %13 = vector.load %arg7[%c0_11, %c0_12] : memref<16x2048xf32, #tpu.memory_space<vmem>>, vector<16x2048xf32>
      tpu.vector_store %arg7[%c0_11, %c0_12], %12 {strides = array<i32>} : memref<16x2048xf32, #tpu.memory_space<vmem>>, vector<16x2048xf32>,
    } else {
    }
    %c0 = arith.constant 0 : index
    %c0_1 = arith.constant 0 : index
    %3 = vector.load %arg7[%c0, %c0_1] : memref<16x2048xf32, #tpu.memory_space<vmem>>, vector<16x2048xf32>
    %c0_2 = arith.constant 0 : index
    %c0_3 = arith.constant 0 : index
    %4 = vector.load %arg3[%c0_2, %c0_3] : memref<16x32xbf16, #tpu.memory_space<vmem>>, vector<16x32xbf16>
    %c0_4 = arith.constant 0 : index
    %c0_5 = arith.constant 0 : index
    %5 = vector.load %arg4[%c0_4, %c0_5] : memref<32x2048xbf16, #tpu.memory_space<vmem>>, vector<32x2048xbf16>
    %cst = arith.constant dense<0.000000e+00> : vector<16x2048xf32>
    %6 = tpu.matmul %4, %5, %cst {dimension_numbers = #tpu.dot_dimension_numbers<[1], [0], [0], [1], [0, 0, 1, 1], [], []>} : vector<16x32xbf16>, vector<32x2048xbf16>, vector<16x2048xf32> -> vector<16x2048xf32>
    %7 = arith.addf %3, %6 : vector<16x2048xf32>
    %c0_6 = arith.constant 0 : index
    %c0_7 = arith.constant 0 : index
    %8 = vector.load %arg7[%c0_6, %c0_7] : memref<16x2048xf32, #tpu.memory_space<vmem>>, vector<16x2048xf32>
    tpu.vector_store %arg7[%c0_6, %c0_7], %7 {strides = array<i32>} : memref<16x2048xf32, #tpu.memory_space<vmem>>, vector<16x2048xf32>,
    %c0_i32_8 = arith.constant 0 : i32
    %9 = arith.cmpi eq, %arg2, %c0_i32_8 : i32
    %10 = arith.extui %9 : i1 to i32
    %c0_i32_9 = arith.constant 0 : i32
    %11 = arith.cmpi ne, %10, %c0_i32_9 : i32
    scf.if %11 {
      %c0_10 = arith.constant 0 : index
      %c0_11 = arith.constant 0 : index
      %12 = vector.load %arg7[%c0_10, %c0_11] : memref<16x2048xf32, #tpu.memory_space<vmem>>, vector<16x2048xf32>
      %c0_12 = arith.constant 0 : index
      %c0_13 = arith.constant 0 : index
      %13 = vector.load %arg5[%c0_12, %c0_13] : memref<1x2048xf32, #tpu.memory_space<vmem>>, vector<1x2048xf32>
      %14 = vector.broadcast %13 : vector<1x2048xf32> to vector<16x2048xf32>
      %15 = arith.addf %12, %14 : vector<16x2048xf32>
      %16 = arith.truncf %15 : vector<16x2048xf32> to vector<16x2048xbf16>
      %c0_14 = arith.constant 0 : index
      %c0_15 = arith.constant 0 : index
      %17 = vector.load %arg6[%c0_14, %c0_15] : memref<16x2048xbf16, #tpu.memory_space<vmem>>, vector<16x2048xbf16>
      tpu.vector_store %arg6[%c0_14, %c0_15], %16 {strides = array<i32>} : memref<16x2048xbf16, #tpu.memory_space<vmem>>, vector<16x2048xbf16>,
    } else {
    }
    return
  }
  func.func @transform_0(%arg0: i32, %arg1: i32, %arg2: i32) -> (i32, i32) {
    %c0_i32 = arith.constant 0 : i32
    return %arg0, %arg2 : i32, i32
  }
  func.func @transform_1(%arg0: i32, %arg1: i32, %arg2: i32) -> (i32, i32) {
    %c0_i32 = arith.constant 0 : i32
    return %arg2, %arg1 : i32, i32
  }
  func.func @transform_2(%arg0: i32, %arg1: i32, %arg2: i32) -> (i32, i32) {
    %c0_i32 = arith.constant 0 : i32
    %c0_i32_0 = arith.constant 0 : i32
    return %c0_i32, %arg1 : i32, i32
  }
  func.func @transform_3(%arg0: i32, %arg1: i32, %arg2: i32) -> (i32, i32) {
    %c0_i32 = arith.constant 0 : i32
    return %arg0, %arg1 : i32, i32
  }
}

module attributes {stable_mosaic.version = 11 : i64} {
  func.func @_attn_stack_kernel(%arg0: i32, %arg1: memref<1x2x64x32xbf16, #tpu.memory_space<vmem>>, %arg2: memref<1x2x64x32xbf16, #tpu.memory_space<vmem>>, %arg3: memref<1x64x32xbf16, #tpu.memory_space<vmem>>, %arg4: memref<2x32x32xbf16, #tpu.memory_space<vmem>>, %arg5: memref<2x32x32xbf16, #tpu.memory_space<vmem>>, %arg6: memref<1x64x32xbf16, #tpu.memory_space<vmem>>, %arg7: memref<64x32xf32, #tpu.memory_space<vmem>>) attributes {dimension_semantics = [#tpu.dimension_semantics<parallel>], iteration_bounds = array<i64: 2>, scalar_prefetch = 0 : i64, scratch_operands = 1 : i64, tpu.core_type = #tpu.core_type<tc>, window_params = [{transform_indices = @transform_0, window_bounds = array<i64: 1, 2, 64, 32>}, {transform_indices = @transform_1, window_bounds = array<i64: 1, 2, 64, 32>}, {transform_indices = @transform_2, window_bounds = array<i64: 1, 64, 32>}, {pipeline_mode = #tpu.pipeline_mode<synchronous>, transform_indices = @transform_3, window_bounds = array<i64: 2, 32, 32>}, {pipeline_mode = #tpu.pipeline_mode<synchronous>, transform_indices = @transform_4, window_bounds = array<i64: 2, 32, 32>}, {transform_indices = @transform_5, window_bounds = array<i64: 1, 64, 32>}]} {
    %c0 = arith.constant 0 : index
    %c0_0 = arith.constant 0 : index
    %c0_1 = arith.constant 0 : index
    %0 = vector.load %arg3[%c0, %c0_0, %c0_1] : memref<1x64x32xbf16, #tpu.memory_space<vmem>>, vector<1x64x32xbf16>
    %1 = vector.shape_cast %0 : vector<1x64x32xbf16> to vector<64x32xbf16>
    %2 = arith.extf %1 : vector<64x32xbf16> to vector<64x32xf32>
    %c0_2 = arith.constant 0 : index
    %c0_3 = arith.constant 0 : index
    %3 = vector.load %arg7[%c0_2, %c0_3] : memref<64x32xf32, #tpu.memory_space<vmem>>, vector<64x32xf32>
    tpu.vector_store %arg7[%c0_2, %c0_3], %2 {strides = array<i32>} : memref<64x32xf32, #tpu.memory_space<vmem>>, vector<64x32xf32>,
    %c0_4 = arith.constant 0 : index
    %c0_5 = arith.constant 0 : index
    %c0_6 = arith.constant 0 : index
    %c0_7 = arith.constant 0 : index
    %4 = vector.load %arg1[%c0_4, %c0_5, %c0_6, %c0_7] : memref<1x2x64x32xbf16, #tpu.memory_space<vmem>>, vector<1x1x64x32xbf16>
    %5 = vector.shape_cast %4 : vector<1x1x64x32xbf16> to vector<64x32xbf16>
    %c0_8 = arith.constant 0 : index
    %c0_9 = arith.constant 0 : index
    %c0_10 = arith.constant 0 : index
    %c0_11 = arith.constant 0 : index
    %6 = vector.load %arg2[%c0_8, %c0_9, %c0_10, %c0_11] : memref<1x2x64x32xbf16, #tpu.memory_space<vmem>>, vector<1x1x64x32xbf16>
    %7 = vector.shape_cast %6 : vector<1x1x64x32xbf16> to vector<64x32xbf16>
    %c0_12 = arith.constant 0 : index
    %c0_13 = arith.constant 0 : index
    %8 = vector.load %arg7[%c0_12, %c0_13] : memref<64x32xf32, #tpu.memory_space<vmem>>, vector<64x32xf32>
    %9 = arith.truncf %8 : vector<64x32xf32> to vector<64x32xbf16>
    %c0_14 = arith.constant 0 : index
    %c0_15 = arith.constant 0 : index
    %c0_16 = arith.constant 0 : index
    %10 = vector.load %arg4[%c0_14, %c0_15, %c0_16] : memref<2x32x32xbf16, #tpu.memory_space<vmem>>, vector<1x32x32xbf16>
    %11 = vector.shape_cast %10 : vector<1x32x32xbf16> to vector<32x32xbf16>
    %cst = arith.constant dense<0.000000e+00> : vector<64x32xf32>
    %12 = tpu.matmul %9, %11, %cst {dimension_numbers = #tpu.dot_dimension_numbers<[1], [0], [0], [1], [0, 0, 1, 1], [], []>} : vector<64x32xbf16>, vector<32x32xbf16>, vector<64x32xf32> -> vector<64x32xf32>
    %cst_17 = arith.constant dense<0.000000e+00> : vector<64x64xf32>
    %13 = tpu.matmul %5, %7, %cst_17 {dimension_numbers = #tpu.dot_dimension_numbers<[1], [1], [0], [0], [0, 0, 1, 0], [], []>} : vector<64x32xbf16>, vector<64x32xbf16>, vector<64x64xf32> -> vector<64x64xf32>
    %cst_18 = arith.constant dense<0xFF800000> : vector<64xf32>
    %14 = vector.multi_reduction <maximumf>, %13, %cst_18 [1] : vector<64x64xf32> to vector<64xf32>
    %15 = vector.shape_cast %14 : vector<64xf32> to vector<64x1xf32>
    %16 = vector.broadcast %15 : vector<64x1xf32> to vector<64x64xf32>
    %17 = arith.subf %13, %16 : vector<64x64xf32>
    %18 = math.exp %17 : vector<64x64xf32>
    %cst_19 = arith.constant dense<0.000000e+00> : vector<64xf32>
    %19 = vector.multi_reduction <add>, %18, %cst_19 [1] : vector<64x64xf32> to vector<64xf32>
    %20 = vector.shape_cast %19 : vector<64xf32> to vector<64x1xf32>
    %21 = tpu.reciprocal %20 {approx = true} : vector<64x1xf32> -> vector<64x1xf32>
    %22 = vector.broadcast %21 : vector<64x1xf32> to vector<64x64xf32>
    %23 = arith.mulf %18, %22 : vector<64x64xf32>
    %24 = arith.truncf %23 : vector<64x64xf32> to vector<64x64xbf16>
    %25 = arith.truncf %12 : vector<64x32xf32> to vector<64x32xbf16>
    %cst_20 = arith.constant dense<0.000000e+00> : vector<64x32xf32>
    %26 = tpu.matmul %24, %25, %cst_20 {dimension_numbers = #tpu.dot_dimension_numbers<[1], [0], [0], [1], [0, 0, 1, 1], [], []>} : vector<64x64xbf16>, vector<64x32xbf16>, vector<64x32xf32> -> vector<64x32xf32>
    %27 = arith.truncf %26 : vector<64x32xf32> to vector<64x32xbf16>
    %c0_21 = arith.constant 0 : index
    %c0_22 = arith.constant 0 : index
    %c0_23 = arith.constant 0 : index
    %28 = vector.load %arg5[%c0_21, %c0_22, %c0_23] : memref<2x32x32xbf16, #tpu.memory_space<vmem>>, vector<1x32x32xbf16>
    %29 = vector.shape_cast %28 : vector<1x32x32xbf16> to vector<32x32xbf16>
    %cst_24 = arith.constant dense<0.000000e+00> : vector<64x32xf32>
    %30 = tpu.matmul %27, %29, %cst_24 {dimension_numbers = #tpu.dot_dimension_numbers<[1], [0], [0], [1], [0, 0, 1, 1], [], []>} : vector<64x32xbf16>, vector<32x32xbf16>, vector<64x32xf32> -> vector<64x32xf32>
    %31 = arith.addf %8, %30 : vector<64x32xf32>
    %c0_25 = arith.constant 0 : index
    %c0_26 = arith.constant 0 : index
    %32 = vector.load %arg7[%c0_25, %c0_26] : memref<64x32xf32, #tpu.memory_space<vmem>>, vector<64x32xf32>
    tpu.vector_store %arg7[%c0_25, %c0_26], %31 {strides = array<i32>} : memref<64x32xf32, #tpu.memory_space<vmem>>, vector<64x32xf32>,
    %c0_27 = arith.constant 0 : index
    %c1 = arith.constant 1 : index
    %c0_28 = arith.constant 0 : index
    %c0_29 = arith.constant 0 : index
    %33 = vector.load %arg1[%c0_27, %c1, %c0_28, %c0_29] : memref<1x2x64x32xbf16, #tpu.memory_space<vmem>>, vector<1x1x64x32xbf16>
    %34 = vector.shape_cast %33 : vector<1x1x64x32xbf16> to vector<64x32xbf16>
    %c0_30 = arith.constant 0 : index
    %c1_31 = arith.constant 1 : index
    %c0_32 = arith.constant 0 : index
    %c0_33 = arith.constant 0 : index
    %35 = vector.load %arg2[%c0_30, %c1_31, %c0_32, %c0_33] : memref<1x2x64x32xbf16, #tpu.memory_space<vmem>>, vector<1x1x64x32xbf16>
    %36 = vector.shape_cast %35 : vector<1x1x64x32xbf16> to vector<64x32xbf16>
    %c0_34 = arith.constant 0 : index
    %c0_35 = arith.constant 0 : index
    %37 = vector.load %arg7[%c0_34, %c0_35] : memref<64x32xf32, #tpu.memory_space<vmem>>, vector<64x32xf32>
    %38 = arith.truncf %37 : vector<64x32xf32> to vector<64x32xbf16>
    %c1_36 = arith.constant 1 : index
    %c0_37 = arith.constant 0 : index
    %c0_38 = arith.constant 0 : index
    %39 = vector.load %arg4[%c1_36, %c0_37, %c0_38] : memref<2x32x32xbf16, #tpu.memory_space<vmem>>, vector<1x32x32xbf16>
    %40 = vector.shape_cast %39 : vector<1x32x32xbf16> to vector<32x32xbf16>
    %cst_39 = arith.constant dense<0.000000e+00> : vector<64x32xf32>
    %41 = tpu.matmul %38, %40, %cst_39 {dimension_numbers = #tpu.dot_dimension_numbers<[1], [0], [0], [1], [0, 0, 1, 1], [], []>} : vector<64x32xbf16>, vector<32x32xbf16>, vector<64x32xf32> -> vector<64x32xf32>
    %cst_40 = arith.constant dense<0.000000e+00> : vector<64x64xf32>
    %42 = tpu.matmul %34, %36, %cst_40 {dimension_numbers = #tpu.dot_dimension_numbers<[1], [1], [0], [0], [0, 0, 1, 0], [], []>} : vector<64x32xbf16>, vector<64x32xbf16>, vector<64x64xf32> -> vector<64x64xf32>
    %cst_41 = arith.constant dense<0xFF800000> : vector<64xf32>
    %43 = vector.multi_reduction <maximumf>, %42, %cst_41 [1] : vector<64x64xf32> to vector<64xf32>
    %44 = vector.shape_cast %43 : vector<64xf32> to vector<64x1xf32>
    %45 = vector.broadcast %44 : vector<64x1xf32> to vector<64x64xf32>
    %46 = arith.subf %42, %45 : vector<64x64xf32>
    %47 = math.exp %46 : vector<64x64xf32>
    %cst_42 = arith.constant dense<0.000000e+00> : vector<64xf32>
    %48 = vector.multi_reduction <add>, %47, %cst_42 [1] : vector<64x64xf32> to vector<64xf32>
    %49 = vector.shape_cast %48 : vector<64xf32> to vector<64x1xf32>
    %50 = tpu.reciprocal %49 {approx = true} : vector<64x1xf32> -> vector<64x1xf32>
    %51 = vector.broadcast %50 : vector<64x1xf32> to vector<64x64xf32>
    %52 = arith.mulf %47, %51 : vector<64x64xf32>
    %53 = arith.truncf %52 : vector<64x64xf32> to vector<64x64xbf16>
    %54 = arith.truncf %41 : vector<64x32xf32> to vector<64x32xbf16>
    %cst_43 = arith.constant dense<0.000000e+00> : vector<64x32xf32>
    %55 = tpu.matmul %53, %54, %cst_43 {dimension_numbers = #tpu.dot_dimension_numbers<[1], [0], [0], [1], [0, 0, 1, 1], [], []>} : vector<64x64xbf16>, vector<64x32xbf16>, vector<64x32xf32> -> vector<64x32xf32>
    %56 = arith.truncf %55 : vector<64x32xf32> to vector<64x32xbf16>
    %c1_44 = arith.constant 1 : index
    %c0_45 = arith.constant 0 : index
    %c0_46 = arith.constant 0 : index
    %57 = vector.load %arg5[%c1_44, %c0_45, %c0_46] : memref<2x32x32xbf16, #tpu.memory_space<vmem>>, vector<1x32x32xbf16>
    %58 = vector.shape_cast %57 : vector<1x32x32xbf16> to vector<32x32xbf16>
    %cst_47 = arith.constant dense<0.000000e+00> : vector<64x32xf32>
    %59 = tpu.matmul %56, %58, %cst_47 {dimension_numbers = #tpu.dot_dimension_numbers<[1], [0], [0], [1], [0, 0, 1, 1], [], []>} : vector<64x32xbf16>, vector<32x32xbf16>, vector<64x32xf32> -> vector<64x32xf32>
    %60 = arith.addf %37, %59 : vector<64x32xf32>
    %c0_48 = arith.constant 0 : index
    %c0_49 = arith.constant 0 : index
    %61 = vector.load %arg7[%c0_48, %c0_49] : memref<64x32xf32, #tpu.memory_space<vmem>>, vector<64x32xf32>
    tpu.vector_store %arg7[%c0_48, %c0_49], %60 {strides = array<i32>} : memref<64x32xf32, #tpu.memory_space<vmem>>, vector<64x32xf32>,
    %c0_50 = arith.constant 0 : index
    %c0_51 = arith.constant 0 : index
    %62 = vector.load %arg7[%c0_50, %c0_51] : memref<64x32xf32, #tpu.memory_space<vmem>>, vector<64x32xf32>
    %63 = arith.truncf %62 : vector<64x32xf32> to vector<64x32xbf16>
    %c0_52 = arith.constant 0 : index
    %c0_53 = arith.constant 0 : index
    %c0_54 = arith.constant 0 : index
    %64 = vector.load %arg6[%c0_52, %c0_53, %c0_54] : memref<1x64x32xbf16, #tpu.memory_space<vmem>>, vector<1x64x32xbf16>
    %65 = vector.shape_cast %64 : vector<1x64x32xbf16> to vector<64x32xbf16>
    %66 = vector.shape_cast %63 : vector<64x32xbf16> to vector<1x64x32xbf16>
    tpu.vector_store %arg6[%c0_52, %c0_53, %c0_54], %66 {strides = array<i32>} : memref<1x64x32xbf16, #tpu.memory_space<vmem>>, vector<1x64x32xbf16>,
    return
  }
  func.func @transform_0(%arg0: i32) -> (i32, i32, i32, i32) {
    %c0_i32 = arith.constant 0 : i32
    %c0_i32_0 = arith.constant 0 : i32
    %c0_i32_1 = arith.constant 0 : i32
    %c0_i32_2 = arith.constant 0 : i32
    return %arg0, %c0_i32, %c0_i32_0, %c0_i32_1 : i32, i32, i32, i32
  }
  func.func @transform_1(%arg0: i32) -> (i32, i32, i32, i32) {
    %c0_i32 = arith.constant 0 : i32
    %c0_i32_0 = arith.constant 0 : i32
    %c0_i32_1 = arith.constant 0 : i32
    %c0_i32_2 = arith.constant 0 : i32
    return %arg0, %c0_i32, %c0_i32_0, %c0_i32_1 : i32, i32, i32, i32
  }
  func.func @transform_2(%arg0: i32) -> (i32, i32, i32) {
    %c0_i32 = arith.constant 0 : i32
    %c0_i32_0 = arith.constant 0 : i32
    %c0_i32_1 = arith.constant 0 : i32
    return %arg0, %c0_i32, %c0_i32_0 : i32, i32, i32
  }
  func.func @transform_3(%arg0: i32) -> (i32, i32, i32) {
    %c0_i32 = arith.constant 0 : i32
    %c0_i32_0 = arith.constant 0 : i32
    %c0_i32_1 = arith.constant 0 : i32
    %c0_i32_2 = arith.constant 0 : i32
    return %c0_i32, %c0_i32_0, %c0_i32_1 : i32, i32, i32
  }
  func.func @transform_4(%arg0: i32) -> (i32, i32, i32) {
    %c0_i32 = arith.constant 0 : i32
    %c0_i32_0 = arith.constant 0 : i32
    %c0_i32_1 = arith.constant 0 : i32
    %c0_i32_2 = arith.constant 0 : i32
    return %c0_i32, %c0_i32_0, %c0_i32_1 : i32, i32, i32
  }
  func.func @transform_5(%arg0: i32) -> (i32, i32, i32) {
    %c0_i32 = arith.constant 0 : i32
    %c0_i32_0 = arith.constant 0 : i32
    %c0_i32_1 = arith.constant 0 : i32
    return %arg0, %c0_i32, %c0_i32_0 : i32, i32, i32
  }
}

</mosaic_0001>

<bundles_post_ra>
// kernel: pose_attn_forward.13
= control target key start
LH: loop header
LB: loop body
LE: loop exit
PB: predicated region body
PF: predicated region fallthrough
CT: control target
= control target key end

     0   :  { %s1058_s12 = smov 0   ;;  %s1060_s13 = smov 0   ;;  %s1170_s0 = inlined_call_operand.vmem [shape: bf16[32,54], index: 0, kind: input, shape index: {}]   ;;  %s1171_s1 = inlined_call_operand.vmem [shape: bf16[54,2048], index: 1, kind: input, shape index: {}]   ;;  %s1172_s2 = inlined_call_operand.vmem [shape: f32[32,1], index: 2, kind: input, shape index: {}]   ;;  %s1173_s3 = inlined_call_operand.vmem [shape: bf16[32,2048], index: 3, kind: output, shape index: {}]  }
   0x1   :  { %s1062_s14 = smov 0   ;;  %s1064_s15 = smov 0  }
   0x2   :  { %s1066_s16 = smov 0  }
   0x3 LB: > { %s28_s17 = sadd.s32 1, %s1031_s15  ;;  %s871_s18 = sadd.s32 4294967295, %s1035_s16   ;;  %s1035_s16 = sphi %s1066_s16, %s13_s16   ;;  %s1031_s15 = sphi %s1064_s15, %s1178_s15   ;;  %s1027_s14 = sphi %s1062_s14, %s1177_s14   ;;  %s1023_s13 = sphi %s1060_s13, %s1176_s13   ;;  %s1019_s12 = sphi %s1058_s12, %s1175_s12  }
   0x4   : > { %p30_p0 = scmp.ge.s32.totalorder %s28_s17, 4  ;;  %p76_p1 = scmp.ne.s32.totalorder %s1023_s13, %s1019_s12 }
   0x5   : > { %p77_p2 = scmp.eq.s32.totalorder %s1035_s16, 0  ;;  %p134_p4 = scmp.eq.s32.totalorder %s871_s18, 3 }
   0x6   : > { %s1180_s17 = smov (%p30_p0, %s28_s17), 0  ;;  %s69_s20 = sadd.s32 1, %s1023_s13 }
   0x7   : > { %p78_p3 = por %p77_p2, %p76_p1  ;;  %s65_s19 = ssub.s32 %s1031_s15, %s1180_s17 }
   0x8   : > { %p67_p5 = scmp.eq.s32.totalorder %s65_s19, 0  ;;  %p1093_p6 = por %p134_p4, %p76_p1 }
   0x9   : > { %p876_p7 = scmp.ge.s32.totalorder %s1035_s16, 4 }
   0xa   : > { %s1098_s22 = scalar_select %p67_p5, %s1023_s13, %s69_s20  }
   0xb   : > { %177 = sbr.rel (%p876_p7) target bundleno = 29 (0x1d), region = 24 }
  0x12   : > { %180 = sbr.rel (!%p78_p3) target bundleno = 29 (0x1d), region = 28  ;;  %s182_s23 = sand.u32 (%p78_p3), 1, %s1023_s13  }
  0x13   : > { %s918_s24 = sshll.u32 (%p78_p3), %s1031_s15, 4  ;;  %s928_s25 = smul.u32 (%p78_p3), 112, %s182_s23 }
  0x14   : > { %s190_s28 = scalar_lea.vmem (%p78_p3), %s1171_s1, %s918_s24 }
  0x15   : > { %v203_v0 = vld [vmem:[%s190_s28] sm:$0xff] (%p78_p3)  ;;  %v205_v1 = vld [vmem:[%s190_s28 + $0x8] sm:$0xff] (%p78_p3)  ;;  %s184_s29 = scalar_lea.vmem (%p78_p3), [#allocation3], %s928_s25 }
  0x16   : > { %v207_v2 = vld [vmem:[%s190_s28 + $0x40] sm:$0xff] (%p78_p3)  ;;  %v209_v3 = vld [vmem:[%s190_s28 + $0x48] sm:$0xff] (%p78_p3)  ;;  %204 = vst [vmem:[%s184_s29] sm:$0xff] (%p78_p3), %v203_v0  ;;  %206 = vst [vmem:[%s184_s29 + $0x8] sm:$0xff] (%p78_p3), %v205_v1 }
  0x17   : > { %v211_v4 = vld [vmem:[%s190_s28 + $0x80] sm:$0xff] (%p78_p3)  ;;  %v213_v5 = vld [vmem:[%s190_s28 + $0x88] sm:$0xff] (%p78_p3)  ;;  %208 = vst [vmem:[%s184_s29 + $0x10] sm:$0xff] (%p78_p3), %v207_v2  ;;  %210 = vst [vmem:[%s184_s29 + $0x18] sm:$0xff] (%p78_p3), %v209_v3 }
  0x18   : > { %212 = vst [vmem:[%s184_s29 + $0x20] sm:$0xff] (%p78_p3), %v211_v4  ;;  %214 = vst [vmem:[%s184_s29 + $0x28] sm:$0xff] (%p78_p3), %v213_v5  ;;  %v215_v6 = vld [vmem:[%s190_s28 + $0xc0] sm:$0xff] (%p78_p3)  ;;  %v217_v7 = vld [vmem:[%s190_s28 + $0xc8] sm:$0xff] (%p78_p3) }
  0x19   : > { %v219_v8 = vld [vmem:[%s190_s28 + $0x100] sm:$0xff]  ;;  %216 = vst [vmem:[%s184_s29 + $0x30] sm:$0xff] %v215_v6  ;;  %218 = vst [vmem:[%s184_s29 + $0x38] sm:$0xff] %v217_v7  ;;  %v221_v9 = vld [vmem:[%s190_s28 + $0x108] sm:$0xff] }
  0x1a   : > { %220 = vst [vmem:[%s184_s29 + $0x40] sm:$0xff] %v219_v8  ;;  %v223_v10 = vld [vmem:[%s190_s28 + $0x140] sm:$0xff]  ;;  %v225_v11 = vld [vmem:[%s190_s28 + $0x148] sm:$0xff]  ;;  %222 = vst [vmem:[%s184_s29 + $0x48] sm:$0xff] %v221_v9 }
  0x1b   : > { %224 = vst [vmem:[%s184_s29 + $0x50] sm:$0xff] %v223_v10  ;;  %226 = vst [vmem:[%s184_s29 + $0x58] sm:$0xff] %v225_v11  ;;  %v227_v12 = vld [vmem:[%s190_s28 + $0x180] sm:$0xff]  ;;  %v229_v13 = vld [vmem:[%s190_s28 + $0x188] sm:$0xff] }
  0x1c   : > { %228 = vst [vmem:[%s184_s29 + $0x60] sm:$0xff] %v227_v12  ;;  %230 = vst [vmem:[%s184_s29 + $0x68] sm:$0xff] %v229_v13 }
  0x1d PF: > { %p879_p8 = scmp.ge.s32.totalorder %s1035_s16, 1  ;;  %p235_p9 = scmp.lt.s32.totalorder %s1035_s16, 5 }
  0x1f   : > { %p236_p10 = pnand %p879_p8, %p235_p9 }
  0x20   : > { %s242_s30 = sand.u32 (!%p236_p10), 1, %s1019_s12   ;;  %v1037_v14 = vmov (!%p236_p10), 0   ;;  %v608_v15 = vld [vmem:[%s1172_s2] sm:$0xff] (!%p236_p10)  ;;  %v609_v16 = vld [vmem:[%s1172_s2 + $0x8] sm:$0xff] (!%p236_p10)  ;;  %v610_v17 = vld [vmem:[%s1172_s2 + $0x10] sm:$0xff] (!%p236_p10)  ;;  %vm438_vm0 = vcmask (!%p236_p10), 1042432  }
  0x21   : > { %239 = sbr.rel (%p236_p10) target bundleno = 293 (0x125), region = 51  ;;  %483 = vmatprep.mubr.bf16.mxu0 (!%p236_p10), %v1037_v14  ;;  %536 = vmatprep.mubr.bf16.mxu1 (!%p236_p10), %v1037_v14  ;;  %v611_v19 = vld [vmem:[%s1172_s2 + $0x18] sm:$0xff] (!%p236_p10)  ;;  %v995_v39 = vld [vmem:[%s1170_s0] sm:$0xff] (!%p236_p10)   ;;  %vm431_vm1 = vcmask (!%p236_p10), 441344   ;;  %v996_v40 = vld [vmem:[%s1170_s0 + $0x8] sm:$0xff] (!%p236_p10)   ;;  %s880_s26 = sshll.u32 (!%p236_p10), %s242_s30, 6 }
  0x22   : > { %s929_s4 = smul.u32 (!%p236_p10), 112, %s242_s30  ;;  %971 = vset.pattern.permute.xlu0 (!%p236_p10), %v1037_v14  ;;  %972 = vset.pattern.permute.xlu1 (!%p236_p10), %v1037_v14  ;;  %s1131_s12 = scalar_lea.vmem (!%p236_p10), [#allocation4], %s880_s26 }
  0x23   : > { %614 = vperm.xlu0 (!%p236_p10), %971, %v608_v15   ;;  %624 = vperm.xlu1 (!%p236_p10), %972, %v610_v17  }
  0x24   : > { %s244_s11 = scalar_lea.vmem (!%p236_p10), [#allocation3], %s929_s4 }
  0x25   : > { %v973_v18 = vld [vmem:[%s244_s11 + $0x4] ss:$16 sps:$4 sm:$0xff] (!%p236_p10)   ;;  %v975_v20 = vld [vmem:[%s244_s11 + $0xc] ss:$16 sps:$4 sm:$0xff] (!%p236_p10)   ;;  %v977_v21 = vld [vmem:[%s244_s11] ss:$16 sps:$4 sm:$0xff] (!%p236_p10)  }
  0x26   : > { %451 = vmatprep.subr.bf16.mxu0 (!%p236_p10), %v973_v18  ;;  %v978_v22 = vld [vmem:[%s244_s11 + $0x8] ss:$16 sps:$4 sm:$0xff] (!%p236_p10)   ;;  %504 = vmatprep.subr.bf16.mxu1 (!%p236_p10), %v975_v20  ;;  %v979_v23 = vld [vmem:[%s244_s11 + $0x24] ss:$16 sps:$4 sm:$0xff] (!%p236_p10)   ;;  %v981_v24 = vld [vmem:[%s244_s11 + $0x2c] ss:$16 sps:$4 sm:$0xff] (!%p236_p10)  }
  0x27   : > { %619 = vperm.xlu0 (!%p236_p10), %971, %v609_v16   ;;  %452 = vmatpush1.bf16.msra.mxu0 (!%p236_p10), %v977_v21  ;;  %v983_v25 = vld [vmem:[%s244_s11 + $0x20] ss:$16 sps:$4 sm:$0xff] (!%p236_p10)   ;;  %v984_v26 = vld [vmem:[%s244_s11 + $0x28] ss:$16 sps:$4 sm:$0xff] (!%p236_p10)   ;;  %v985_v27 = vld [vmem:[%s244_s11 + $0x44] ss:$16 sps:$4 sm:$0xff] (!%p236_p10)  }
  0x28   : > { %505 = vmatpush1.bf16.msra.mxu1 %v978_v22  ;;  %453 = vmatprep.subr.bf16.mxu0 %v979_v23  ;;  %v987_v28 = vld [vmem:[%s244_s11 + $0x4c] ss:$16 sps:$4 sm:$0xff]   ;;  %v989_v29 = vld [vmem:[%s244_s11 + $0x40] ss:$16 sps:$4 sm:$0xff]   ;;  %v990_v30 = vld [vmem:[%s244_s11 + $0x48] ss:$16 sps:$4 sm:$0xff]  }
  0x29   : > { %629 = vperm.xlu1 %972, %v611_v19   ;;  %506 = vmatprep.subr.bf16.mxu1 %v981_v24  ;;  %v349_v31 = vld [vmem:[%s244_s11 + $0x60] sm:$0x77]  ;;  %v350_v32 = vld [vmem:[%s244_s11 + $0x68] sm:$0x77]  ;;  %s927_s27 = sshll.u32 (%p1093_p6), %s1027_s14, 4 }
  0x2a   : > { %v896_v33 = vcombine.high %v349_v31, %v349_v31  ;;  %v898_v34 = vcombine.high %v350_v32, %v350_v32  ;;  %v895_v35 = vcombine.low %v349_v31, %v349_v31  ;;  %v897_v36 = vcombine.low %v350_v32, %v350_v32  ;;  %s732_s30 = scalar_lea.vmem (%p1093_p6), %s1173_s3, %s927_s27 }
  0x2b   : > { %454 = vmatpush1.bf16.msra.mxu0 %v983_v25 }
  0x2c   : > { %507 = vmatpush1.bf16.msra.mxu1 %v984_v26  ;;  %455 = vmatprep.subr.bf16.mxu0 %v985_v27  ;;  %v440_v37 = vsel %vm438_vm0, %v895_v35, 0  ;;  %v446_v38 = vsel %vm438_vm0, %v897_v36, 0 }
  0x2d   : > { %508 = vmatprep.subr.bf16.mxu1 %v987_v28 }
  0x2f   : > { %456 = vmatpush1.bf16.msra.mxu0 %v989_v29 }
  0x30   : > { %509 = vmatpush1.bf16.msra.mxu1 %v990_v30  ;;  %899 = vmatprep.subr.msk.bf16.mxu0 %vm438_vm0, %v896_v33 }
  0x31   : > { %902 = vmatprep.subr.msk.bf16.mxu1 %vm438_vm0, %v898_v34 }
  0x33   : > { %458 = vmatpush1.bf16.msra.mxu0 %v440_v37 }
  0x34   : > { %511 = vmatpush1.bf16.msra.mxu1 %v446_v38 }
  0x36   : > { %900 = vmatmul.mubr.msk.bf16.vlgmr.msra.gmra.mrb[0].mxu0 %vm431_vm1, %v995_v39 }
  0x37   : > { %903 = vmatmul.mubr.msk.bf16.vlgmr.msra.gmra.mrb[0].mxu1 %vm431_vm1, %v995_v39  ;;  %493 = vmatprep.mubr.bf16.mxu0 %v1037_v14 }
  0x38   : > { %546 = vmatprep.mubr.bf16.mxu1 %v1037_v14 }
  0x3e   : > { %901 = vmatmul.mubr.msk.bf16.gmra.mrb[4].mxu0 %vm431_vm1, %v996_v40 }
  0x3f   : > { %904 = vmatmul.mubr.msk.bf16.gmra.mrb[4].mxu1 %vm431_vm1, %v996_v40 }
  0xa2   : > { %v615_v41 = vpop.permute.xlu0 %614  ;;  %v625_v43 = vpop.permute.xlu1 %624 }
  0xa6   : > { %v620_v42 = vpop.permute.xlu0 %619 }
  0xa8   : > { %v630_v6 = vpop.permute.xlu1 %629 }
 0x109   : > { %v485_v44 = vpop.f32.mrb[0].mxu0 }
 0x10a   : > { %v538_v45 = vpop.f32.mrb[0].mxu1  ;;  %v632_v46 = vadd.f32 %v615_v41, %v485_v44  ;;  %v487_v48 = vpop.f32.mrb[1].mxu0 }
 0x10b   : > { %v634_v47 = vadd.f32 %v615_v41, %v538_v45  ;;  %v540_v49 = vpop.f32.mrb[1].mxu1  ;;  %v633_v50 = vadd.f32 %v615_v41, %v487_v48  ;;  %v489_v52 = vpop.f32.mrb[2].mxu0 }
 0x10c   : > { %v635_v51 = vadd.f32 %v615_v41, %v540_v49  ;;  %v542_v53 = vpop.f32.mrb[2].mxu1  ;;  %v648_v54 = vmax.f32 %v632_v46, 0.0  ;;  %v636_v56 = vadd.f32 %v620_v42, %v489_v52  ;;  %v491_v58 = vpop.f32.mrb[3].mxu0 }
 0x10d   : > { %v650_v55 = vmax.f32 %v634_v47, 0.0  ;;  %v638_v57 = vadd.f32 %v620_v42, %v542_v53  ;;  %v544_v59 = vpop.f32.mrb[3].mxu1  ;;  %v649_v60 = vmax.f32 %v633_v50, 0.0  ;;  %v637_v62 = vadd.f32 %v620_v42, %v491_v58 }
 0x10e   : > { %v651_v61 = vmax.f32 %v635_v51, 0.0  ;;  %v639_v63 = vadd.f32 %v620_v42, %v544_v59  ;;  %v652_v0 = vmax.f32 %v636_v56, 0.0 }
 0x10f   : > { %v654_v1 = vmax.f32 %v638_v57, 0.0  ;;  %v919_v2 = vpack.c.bf16 %v649_v60, %v648_v54  ;;  %v653_v4 = vmax.f32 %v637_v62, 0.0 }
 0x110   : > { %v920_v3 = vpack.c.bf16 %v651_v61, %v650_v55  ;;  %v655_v5 = vmax.f32 %v639_v63, 0.0 }
 0x111   : > { %712 = vst [vmem:[%s1131_s12] sm:$0xff] %v919_v2  ;;  %v921_v7 = vpack.c.bf16 %v653_v4, %v652_v0  ;;  %v495_v9 = vpop.f32.mrb[4].mxu0 }
 0x112   : > { %713 = vst [vmem:[%s1131_s12 + $0x8] sm:$0xff] %v920_v3  ;;  %v922_v8 = vpack.c.bf16 %v655_v5, %v654_v1  ;;  %v548_v10 = vpop.f32.mrb[4].mxu1  ;;  %v640_v11 = vadd.f32 %v625_v43, %v495_v9  ;;  %v497_v13 = vpop.f32.mrb[5].mxu0 }
 0x113   : > { %v642_v12 = vadd.f32 %v625_v43, %v548_v10  ;;  %v550_v14 = vpop.f32.mrb[5].mxu1  ;;  %714 = vst [vmem:[%s1131_s12 + $0x10] sm:$0xff] %v921_v7  ;;  %v641_v15 = vadd.f32 %v625_v43, %v497_v13  ;;  %v499_v17 = vpop.f32.mrb[6].mxu0 }
 0x114   : > { %715 = vst [vmem:[%s1131_s12 + $0x18] sm:$0xff] %v922_v8  ;;  %v643_v16 = vadd.f32 %v625_v43, %v550_v14  ;;  %v552_v18 = vpop.f32.mrb[6].mxu1  ;;  %v656_v19 = vmax.f32 %v640_v11, 0.0  ;;  %v644_v21 = vadd.f32 %v630_v6, %v499_v17  ;;  %v501_v23 = vpop.f32.mrb[7].mxu0 }
 0x115   : > { %v658_v20 = vmax.f32 %v642_v12, 0.0  ;;  %v646_v22 = vadd.f32 %v630_v6, %v552_v18  ;;  %v554_v24 = vpop.f32.mrb[7].mxu1  ;;  %v657_v25 = vmax.f32 %v641_v15, 0.0  ;;  %v645_v27 = vadd.f32 %v630_v6, %v501_v23 }
 0x116   : > { %v659_v26 = vmax.f32 %v643_v16, 0.0  ;;  %v647_v28 = vadd.f32 %v630_v6, %v554_v24  ;;  %v660_v29 = vmax.f32 %v644_v21, 0.0  ;;  %726 = sbr.rel (!%p1093_p6) target bundleno = 293 (0x125), region = 67 }
 0x117   : > { %v662_v30 = vmax.f32 %v646_v22, 0.0  ;;  %v923_v31 = vpack.c.bf16 %v657_v25, %v656_v19  ;;  %v661_v33 = vmax.f32 %v645_v27, 0.0 }
 0x118   : > { %v924_v32 = vpack.c.bf16 %v659_v26, %v658_v20  ;;  %v663_v34 = vmax.f32 %v647_v28, 0.0  ;;  %v745_v37 = vld [vmem:[%s1131_s12] sm:$0xff] (%p1093_p6) }
 0x119   : > { %716 = vst [vmem:[%s1131_s12 + $0x20] sm:$0xff] %v923_v31  ;;  %v925_v35 = vpack.c.bf16 %v661_v33, %v660_v29  ;;  %v747_v38 = vld [vmem:[%s1131_s12 + $0x8] sm:$0xff] (%p1093_p6)  ;;  %746 = vst [vmem:[%s732_s30] sm:$0xff] (%p1093_p6), %v745_v37 }
 0x11a   : > { %717 = vst [vmem:[%s1131_s12 + $0x28] sm:$0xff] %v924_v32  ;;  %v926_v36 = vpack.c.bf16 %v663_v34, %v662_v30  ;;  %v749_v39 = vld [vmem:[%s1131_s12 + $0x10] sm:$0xff] (%p1093_p6)  ;;  %748 = vst [vmem:[%s732_s30 + $0x8] sm:$0xff] (%p1093_p6), %v747_v38 }
 0x11b   : > { %718 = vst [vmem:[%s1131_s12 + $0x30] sm:$0xff] %v925_v35  ;;  %v751_v40 = vld [vmem:[%s1131_s12 + $0x18] sm:$0xff] (%p1093_p6)  ;;  %750 = vst [vmem:[%s732_s30 + $0x40] sm:$0xff] (%p1093_p6), %v749_v39 }
 0x11c   : > { %719 = vst [vmem:[%s1131_s12 + $0x38] sm:$0xff] %v926_v36  ;;  %752 = vst [vmem:[%s732_s30 + $0x48] sm:$0xff] (%p1093_p6), %v751_v40 }
 0x120   : > { %v753_v41 = vld [vmem:[%s1131_s12 + $0x20] sm:$0xff] }
 0x121   : > { %v755_v42 = vld [vmem:[%s1131_s12 + $0x28] sm:$0xff]  ;;  %754 = vst [vmem:[%s732_s30 + $0x80] sm:$0xff] %v753_v41 }
 0x122   : > { %756 = vst [vmem:[%s732_s30 + $0x88] sm:$0xff] %v755_v42  ;;  %v757_v43 = vld [vmem:[%s1131_s12 + $0x30] sm:$0xff] }
 0x123   : > { %v759_v44 = vld [vmem:[%s1131_s12 + $0x38] sm:$0xff]  ;;  %758 = vst [vmem:[%s732_s30 + $0xc0] sm:$0xff] %v757_v43 }
 0x124   : > { %760 = vst [vmem:[%s732_s30 + $0xc8] sm:$0xff] %v759_v44 }
 0x125 PF: > { %s13_s16 = sadd.s32 1, %s1035_s16   ;;  %s1175_s12 = smov %s1023_s13 }
 0x126   : > { %p10_p11 = scmp.ge.s32.totalorder %s13_s16, 6   ;;  %s1176_s13 = smov %s1098_s22 }
 0x127   : > { %s1177_s14 = smov %s1031_s15  ;;  %s1178_s15 = smov %s1180_s17 }
 0x128   :  { %12 = sbr.rel (!%p10_p11) target bundleno = 3 (0x3), region = 127 }

// kernel: pose_attn_forward.14
= control target key start
LH: loop header
LB: loop body
LE: loop exit
PB: predicated region body
PF: predicated region fallthrough
CT: control target
= control target key end

     0   :  { %v1140_v1 = vmov 0   ;;  %vm521_vm0 = vcmask 261120   ;;  %s1437_s1 = inlined_call_operand.vmem [shape: bf16[288,512], index: 1, kind: input, shape index: {}]   ;;  %s1438_s0 = inlined_call_operand.vmem [shape: bf16[32,288], index: 0, kind: input, shape index: {}]   ;;  %s1439_s2 = inlined_call_operand.vmem [shape: f32[32,1], index: 2, kind: input, shape index: {}]   ;;  %s1440_s3 = inlined_call_operand.vmem [shape: bf16[32,512], index: 3, kind: output, shape index: {}]  }
   0x1   :  { %v1024_v0 = vld [vmem:[%s1437_s1 + $0x4] ss:$16 sps:$4 sm:$0xff]   ;;  %1022 = vset.pattern.permute.xlu0 %v1140_v1  ;;  %1023 = vset.pattern.permute.xlu1 %v1140_v1  ;;  %v1026_v2 = vld [vmem:[%s1437_s1 + $0xc] ss:$16 sps:$4 sm:$0xff]   ;;  %v1028_v3 = vld [vmem:[%s1437_s1] ss:$16 sps:$4 sm:$0xff]  }
   0x2   :  { %528 = vmatprep.subr.bf16.mxu0 %v1024_v0  ;;  %v1029_v4 = vld [vmem:[%s1437_s1 + $0x8] ss:$16 sps:$4 sm:$0xff]   ;;  %634 = vmatprep.subr.bf16.mxu1 %v1026_v2  ;;  %v1030_v5 = vld [vmem:[%s1437_s1 + $0x24] ss:$16 sps:$4 sm:$0xff]   ;;  %v1032_v6 = vld [vmem:[%s1437_s1 + $0x2c] ss:$16 sps:$4 sm:$0xff]  }
   0x3   :  { %529 = vmatpush1.bf16.msra.mxu0 %v1028_v3  ;;  %635 = vmatpush1.bf16.msra.mxu1 %v1029_v4  ;;  %v1034_v7 = vld [vmem:[%s1437_s1 + $0x20] ss:$16 sps:$4 sm:$0xff]   ;;  %v1035_v8 = vld [vmem:[%s1437_s1 + $0x28] ss:$16 sps:$4 sm:$0xff]   ;;  %v1036_v9 = vld [vmem:[%s1437_s1 + $0x44] ss:$16 sps:$4 sm:$0xff]  }
   0x4   :  { %530 = vmatprep.subr.bf16.mxu0 %v1030_v5  ;;  %636 = vmatprep.subr.bf16.mxu1 %v1032_v6  ;;  %v1038_v10 = vld [vmem:[%s1437_s1 + $0x4c] ss:$16 sps:$4 sm:$0xff]   ;;  %v1040_v11 = vld [vmem:[%s1437_s1 + $0x40] ss:$16 sps:$4 sm:$0xff]   ;;  %v1041_v12 = vld [vmem:[%s1437_s1 + $0x48] ss:$16 sps:$4 sm:$0xff]  }
   0x5   :  { %v1042_v13 = vld [vmem:[%s1437_s1 + $0x64] ss:$16 sps:$4 sm:$0xff]   ;;  %v1044_v14 = vld [vmem:[%s1437_s1 + $0x6c] ss:$16 sps:$4 sm:$0xff]   ;;  %v1046_v15 = vld [vmem:[%s1437_s1 + $0x60] ss:$16 sps:$4 sm:$0xff]  }
   0x6   :  { %v1047_v16 = vld [vmem:[%s1437_s1 + $0x68] ss:$16 sps:$4 sm:$0xff]   ;;  %v1048_v17 = vld [vmem:[%s1437_s1 + $0x84] ss:$16 sps:$4 sm:$0xff]   ;;  %v1050_v18 = vld [vmem:[%s1437_s1 + $0x8c] ss:$16 sps:$4 sm:$0xff]  }
   0x7   :  { %531 = vmatpush1.bf16.msra.mxu0 %v1034_v7  ;;  %637 = vmatpush1.bf16.msra.mxu1 %v1035_v8  ;;  %v1052_v19 = vld [vmem:[%s1437_s1 + $0x80] ss:$16 sps:$4 sm:$0xff]   ;;  %v1053_v20 = vld [vmem:[%s1437_s1 + $0x88] ss:$16 sps:$4 sm:$0xff]   ;;  %v1054_v21 = vld [vmem:[%s1437_s1 + $0xa4] ss:$16 sps:$4 sm:$0xff]  }
   0x8   :  { %532 = vmatprep.subr.bf16.mxu0 %v1036_v9  ;;  %638 = vmatprep.subr.bf16.mxu1 %v1038_v10  ;;  %v1056_v22 = vld [vmem:[%s1437_s1 + $0xac] ss:$16 sps:$4 sm:$0xff]   ;;  %v1058_v23 = vld [vmem:[%s1437_s1 + $0xa0] ss:$16 sps:$4 sm:$0xff]   ;;  %v1059_v24 = vld [vmem:[%s1437_s1 + $0xa8] ss:$16 sps:$4 sm:$0xff]  }
   0x9   :  { %v1060_v25 = vld [vmem:[%s1437_s1 + $0xc4] ss:$16 sps:$4 sm:$0xff]   ;;  %v1062_v26 = vld [vmem:[%s1437_s1 + $0xcc] ss:$16 sps:$4 sm:$0xff]   ;;  %v1064_v27 = vld [vmem:[%s1437_s1 + $0xc0] ss:$16 sps:$4 sm:$0xff]  }
   0xa   :  { %v1065_v28 = vld [vmem:[%s1437_s1 + $0xc8] ss:$16 sps:$4 sm:$0xff]   ;;  %v1066_v29 = vld [vmem:[%s1437_s1 + $0xe4] ss:$16 sps:$4 sm:$0xff]   ;;  %v1068_v30 = vld [vmem:[%s1437_s1 + $0xec] ss:$16 sps:$4 sm:$0xff]  }
   0xb   :  { %533 = vmatpush1.bf16.msra.mxu0 %v1040_v11  ;;  %639 = vmatpush1.bf16.msra.mxu1 %v1041_v12  ;;  %v1070_v31 = vld [vmem:[%s1437_s1 + $0xe0] ss:$16 sps:$4 sm:$0xff]   ;;  %v1071_v32 = vld [vmem:[%s1437_s1 + $0xe8] ss:$16 sps:$4 sm:$0xff]   ;;  %v1072_v33 = vld [vmem:[%s1437_s1 + $0x104] ss:$16 sps:$4 sm:$0xff]  }
   0xc   :  { %534 = vmatprep.subr.bf16.mxu0 %v1042_v13  ;;  %640 = vmatprep.subr.bf16.mxu1 %v1044_v14  ;;  %v1074_v34 = vld [vmem:[%s1437_s1 + $0x10c] ss:$16 sps:$4 sm:$0xff]   ;;  %v1076_v35 = vld [vmem:[%s1437_s1 + $0x100] ss:$16 sps:$4 sm:$0xff]   ;;  %v1077_v36 = vld [vmem:[%s1437_s1 + $0x108] ss:$16 sps:$4 sm:$0xff]  }
   0xd   :  { %v1078_v37 = vld [vmem:[%s1437_s1 + $0x124] ss:$16 sps:$4 sm:$0xff]   ;;  %v1080_v38 = vld [vmem:[%s1437_s1 + $0x12c] ss:$16 sps:$4 sm:$0xff]   ;;  %v1082_v39 = vld [vmem:[%s1437_s1 + $0x120] ss:$16 sps:$4 sm:$0xff]  }
   0xe   :  { %v1083_v40 = vld [vmem:[%s1437_s1 + $0x128] ss:$16 sps:$4 sm:$0xff]   ;;  %v1084_v41 = vld [vmem:[%s1437_s1 + $0x144] ss:$16 sps:$4 sm:$0xff]   ;;  %v1086_v42 = vld [vmem:[%s1437_s1 + $0x14c] ss:$16 sps:$4 sm:$0xff]  }
   0xf   :  { %535 = vmatpush1.bf16.msra.mxu0 %v1046_v15  ;;  %641 = vmatpush1.bf16.msra.mxu1 %v1047_v16  ;;  %v1088_v43 = vld [vmem:[%s1437_s1 + $0x140] ss:$16 sps:$4 sm:$0xff]   ;;  %v1089_v44 = vld [vmem:[%s1437_s1 + $0x148] ss:$16 sps:$4 sm:$0xff]   ;;  %v1090_v45 = vld [vmem:[%s1437_s1 + $0x164] ss:$16 sps:$4 sm:$0xff]  }
  0x10   :  { %536 = vmatprep.subr.bf16.mxu0 %v1048_v17  ;;  %642 = vmatprep.subr.bf16.mxu1 %v1050_v18  ;;  %v1092_v46 = vld [vmem:[%s1437_s1 + $0x16c] ss:$16 sps:$4 sm:$0xff]   ;;  %v1094_v47 = vld [vmem:[%s1437_s1 + $0x160] ss:$16 sps:$4 sm:$0xff]   ;;  %v1095_v48 = vld [vmem:[%s1437_s1 + $0x168] ss:$16 sps:$4 sm:$0xff]  }
  0x11   :  { %v1122_v49 = vld [vmem:[%s1438_s0 + $0x4] ss:$12 sps:$4 sm:$0xff]   ;;  %v1098_v51 = vld [vmem:[%s1437_s1 + $0x18c] ss:$16 sps:$4 sm:$0xff]   ;;  %v1101_v53 = vld [vmem:[%s1437_s1 + $0x188] ss:$16 sps:$4 sm:$0xff]  }
  0x12   :  { %v1096_v50 = vld [vmem:[%s1437_s1 + $0x184] ss:$16 sps:$4 sm:$0xff]   ;;  %560 = vmatprep.mubr.bf16.mxu0 %v1122_v49  ;;  %666 = vmatprep.mubr.bf16.mxu1 %v1122_v49  ;;  %v1100_v52 = vld [vmem:[%s1437_s1 + $0x180] ss:$16 sps:$4 sm:$0xff]   ;;  %v1104_v55 = vld [vmem:[%s1437_s1 + $0x1ac] ss:$16 sps:$4 sm:$0xff]  }
  0x13   :  { %537 = vmatpush1.bf16.msra.mxu0 %v1052_v19  ;;  %643 = vmatpush1.bf16.msra.mxu1 %v1053_v20  ;;  %v1102_v54 = vld [vmem:[%s1437_s1 + $0x1a4] ss:$16 sps:$4 sm:$0xff]   ;;  %v1106_v56 = vld [vmem:[%s1437_s1 + $0x1a0] ss:$16 sps:$4 sm:$0xff]   ;;  %v1107_v57 = vld [vmem:[%s1437_s1 + $0x1a8] ss:$16 sps:$4 sm:$0xff]  }
  0x14   :  { %538 = vmatprep.subr.bf16.mxu0 %v1054_v21  ;;  %644 = vmatprep.subr.bf16.mxu1 %v1056_v22  ;;  %v791_v58 = vld [vmem:[%s1439_s2] sm:$0xff]  ;;  %v1110_v60 = vld [vmem:[%s1437_s1 + $0x1cc] ss:$16 sps:$4 sm:$0xff]   ;;  %v793_v61 = vld [vmem:[%s1439_s2 + $0x10] sm:$0xff] }
  0x15   :  { %v1108_v59 = vld [vmem:[%s1437_s1 + $0x1c4] ss:$16 sps:$4 sm:$0xff]   ;;  %797 = vperm.xlu0 %1022, %v791_v58   ;;  %807 = vperm.xlu1 %1023, %v793_v61   ;;  %v792_v62 = vld [vmem:[%s1439_s2 + $0x8] sm:$0xff]  ;;  %v794_v63 = vld [vmem:[%s1439_s2 + $0x18] sm:$0xff] }
  0x16   :  { %v1112_v0 = vld [vmem:[%s1437_s1 + $0x1c0] ss:$16 sps:$4 sm:$0xff]   ;;  %v1113_v2 = vld [vmem:[%s1437_s1 + $0x1c8] ss:$16 sps:$4 sm:$0xff]   ;;  %v1114_v3 = vld [vmem:[%s1437_s1 + $0x1e4] ss:$16 sps:$4 sm:$0xff]  }
  0x17   :  { %539 = vmatpush1.bf16.msra.mxu0 %v1058_v23  ;;  %645 = vmatpush1.bf16.msra.mxu1 %v1059_v24  ;;  %v1116_v4 = vld [vmem:[%s1437_s1 + $0x1ec] ss:$16 sps:$4 sm:$0xff]   ;;  %v1118_v5 = vld [vmem:[%s1437_s1 + $0x1e0] ss:$16 sps:$4 sm:$0xff]   ;;  %v1119_v6 = vld [vmem:[%s1437_s1 + $0x1e8] ss:$16 sps:$4 sm:$0xff]  }
  0x18   :  { %540 = vmatprep.subr.bf16.mxu0 %v1060_v25  ;;  %646 = vmatprep.subr.bf16.mxu1 %v1062_v26  ;;  %v1125_v7 = vld [vmem:[%s1437_s1 + $0x204] ss:$16 sps:$4 sm:$0xff]   ;;  %v1128_v8 = vld [vmem:[%s1437_s1 + $0x20c] ss:$16 sps:$4 sm:$0xff]   ;;  %v1123_v10 = vld [vmem:[%s1437_s1 + $0x200] ss:$16 sps:$4 sm:$0xff]  }
  0x19   :  { %802 = vperm.xlu0 %1022, %v792_v62   ;;  %812 = vperm.xlu1 %1023, %v794_v63   ;;  %v1120_v9 = vld [vmem:[%s1438_s0] ss:$12 sps:$4 sm:$0xff]   ;;  %v1126_v11 = vld [vmem:[%s1437_s1 + $0x208] ss:$16 sps:$4 sm:$0xff]   ;;  %v1134_v13 = vld [vmem:[%s1437_s1 + $0x224] ss:$16 sps:$4 sm:$0xff]  }
  0x1a   :  { %v1129_v12 = vld [vmem:[%s1438_s0 + $0x1c] ss:$12 sps:$4 sm:$0xff]   ;;  %v1132_v15 = vld [vmem:[%s1437_s1 + $0x220] ss:$16 sps:$4 sm:$0xff]   ;;  %v1131_v17 = vld [vmem:[%s1438_s0 + $0x18] ss:$12 sps:$4 sm:$0xff]  }
  0x1b   :  { %541 = vmatpush1.bf16.msra.mxu0 %v1064_v27  ;;  %647 = vmatpush1.bf16.msra.mxu1 %v1065_v28  ;;  %v1137_v14 = vld [vmem:[%s1437_s1 + $0x22c] ss:$16 sps:$4 sm:$0xff]   ;;  %v1135_v16 = vld [vmem:[%s1437_s1 + $0x228] ss:$16 sps:$4 sm:$0xff]  }
  0x1c   :  { %542 = vmatprep.subr.bf16.mxu0 %v1066_v29  ;;  %648 = vmatprep.subr.bf16.mxu1 %v1068_v30  ;;  %v1138_v18 = vld [vmem:[%s1438_s0 + $0x8] ss:$12 sps:$4 sm:$0xff]   ;;  %v1139_v19 = vld [vmem:[%s1438_s0 + $0x20] ss:$12 sps:$4 sm:$0xff]  }
  0x1f   :  { %543 = vmatpush1.bf16.msra.mxu0 %v1070_v31  ;;  %649 = vmatpush1.bf16.msra.mxu1 %v1071_v32 }
  0x20   :  { %544 = vmatprep.subr.bf16.mxu0 %v1072_v33  ;;  %650 = vmatprep.subr.bf16.mxu1 %v1074_v34 }
  0x23   :  { %545 = vmatpush1.bf16.msra.mxu0 %v1076_v35  ;;  %651 = vmatpush1.bf16.msra.mxu1 %v1077_v36 }
  0x24   :  { %546 = vmatprep.subr.bf16.mxu0 %v1078_v37  ;;  %652 = vmatprep.subr.bf16.mxu1 %v1080_v38 }
  0x27   :  { %547 = vmatpush1.bf16.msra.mxu0 %v1082_v39  ;;  %653 = vmatpush1.bf16.msra.mxu1 %v1083_v40 }
  0x28   :  { %548 = vmatprep.subr.bf16.mxu0 %v1084_v41  ;;  %654 = vmatprep.subr.bf16.mxu1 %v1086_v42 }
  0x2b   :  { %549 = vmatpush1.bf16.msra.mxu0 %v1088_v43  ;;  %655 = vmatpush1.bf16.msra.mxu1 %v1089_v44 }
  0x2c   :  { %550 = vmatprep.subr.bf16.mxu0 %v1090_v45  ;;  %656 = vmatprep.subr.bf16.mxu1 %v1092_v46 }
  0x2f   :  { %551 = vmatpush1.bf16.msra.mxu0 %v1094_v47  ;;  %657 = vmatpush1.bf16.msra.mxu1 %v1095_v48 }
  0x30   :  { %552 = vmatprep.subr.bf16.mxu0 %v1096_v50  ;;  %658 = vmatprep.subr.bf16.mxu1 %v1098_v51 }
  0x33   :  { %553 = vmatpush1.bf16.msra.mxu0 %v1100_v52  ;;  %659 = vmatpush1.bf16.msra.mxu1 %v1101_v53 }
  0x34   :  { %554 = vmatprep.subr.bf16.mxu0 %v1102_v54  ;;  %660 = vmatprep.subr.bf16.mxu1 %v1104_v55 }
  0x37   :  { %555 = vmatpush1.bf16.msra.mxu0 %v1106_v56  ;;  %661 = vmatpush1.bf16.msra.mxu1 %v1107_v57 }
  0x38   :  { %556 = vmatprep.subr.bf16.mxu0 %v1108_v59  ;;  %662 = vmatprep.subr.bf16.mxu1 %v1110_v60 }
  0x3b   :  { %557 = vmatpush1.bf16.msra.mxu0 %v1112_v0  ;;  %663 = vmatpush1.bf16.msra.mxu1 %v1113_v2 }
  0x3c   :  { %558 = vmatprep.subr.bf16.mxu0 %v1114_v3  ;;  %664 = vmatprep.subr.bf16.mxu1 %v1116_v4 }
  0x3f   :  { %559 = vmatpush1.bf16.msra.mxu0 %v1118_v5  ;;  %665 = vmatpush1.bf16.msra.mxu1 %v1119_v6 }
  0x40   :  { %581 = vmatprep.subr.bf16.mxu0 %v1125_v7  ;;  %687 = vmatprep.subr.bf16.mxu1 %v1128_v8 }
  0x42   :  { %561 = vmatmul.mubr.bf16.vlgmr.msra.gmra.mrb[0].mxu0 %v1120_v9  ;;  %667 = vmatmul.mubr.bf16.vlgmr.msra.gmra.mrb[0].mxu1 %v1120_v9 }
  0x43   :  { %582 = vmatpush1.bf16.msra.mxu0 %v1123_v10  ;;  %688 = vmatpush1.bf16.msra.mxu1 %v1126_v11 }
  0x44   :  { %570 = vmatprep.mubr.bf16.mxu0 %v1129_v12  ;;  %676 = vmatprep.mubr.bf16.mxu1 %v1129_v12 }
  0x45   :  { %583 = vmatprep.subr.bf16.mxu0 %v1134_v13  ;;  %689 = vmatprep.subr.bf16.mxu1 %v1137_v14 }
  0x47   :  { %584 = vmatpush1.bf16.msra.mxu0 %v1132_v15  ;;  %690 = vmatpush1.bf16.msra.mxu1 %v1135_v16 }
  0x4a   :  { %571 = vmatmul.mubr.bf16.gmra.mrb[4].mxu0 %v1131_v17  ;;  %677 = vmatmul.mubr.bf16.gmra.mrb[4].mxu1 %v1131_v17 }
  0x4b   :  { %613 = vmatprep.mubr.bf16.mxu0 %v1140_v1  ;;  %719 = vmatprep.mubr.bf16.mxu1 %v1140_v1 }
  0x52   :  { %985 = vmatmul.mubr.msk.bf16.vlgmr.msra.gmra.mrb[0].mxu0 %vm521_vm0, %v1138_v18  ;;  %987 = vmatmul.mubr.msk.bf16.vlgmr.msra.gmra.mrb[0].mxu1 %vm521_vm0, %v1138_v18 }
  0x53   :  { %623 = vmatprep.mubr.bf16.mxu0 %v1140_v1  ;;  %729 = vmatprep.mubr.bf16.mxu1 %v1140_v1 }
  0x5a   :  { %986 = vmatmul.mubr.msk.bf16.gmra.mrb[4].mxu0 %vm521_vm0, %v1139_v19  ;;  %988 = vmatmul.mubr.msk.bf16.gmra.mrb[4].mxu1 %vm521_vm0, %v1139_v19 }
  0x94   :  { %v798_v20 = vpop.permute.xlu0 %797  ;;  %v808_v22 = vpop.permute.xlu1 %807 }
  0x98   :  { %v803_v21 = vpop.permute.xlu0 %802  ;;  %v813_v48 = vpop.permute.xlu1 %812 }
 0x125   :  { %v615_v23 = vpop.f32.mrb[0].mxu0  ;;  %v721_v24 = vpop.f32.mrb[0].mxu1 }
 0x126   :  { %v815_v25 = vadd.f32 %v798_v20, %v615_v23  ;;  %v817_v26 = vadd.f32 %v798_v20, %v721_v24  ;;  %v617_v27 = vpop.f32.mrb[1].mxu0  ;;  %v723_v28 = vpop.f32.mrb[1].mxu1 }
 0x127   :  { %v816_v29 = vadd.f32 %v798_v20, %v617_v27  ;;  %v818_v30 = vadd.f32 %v798_v20, %v723_v28  ;;  %v619_v31 = vpop.f32.mrb[2].mxu0  ;;  %v725_v32 = vpop.f32.mrb[2].mxu1 }
 0x128   :  { %v831_v1 = vmax.f32 %v815_v25, 0.0  ;;  %v833_v33 = vmax.f32 %v817_v26, 0.0  ;;  %v819_v34 = vadd.f32 %v803_v21, %v619_v31  ;;  %v821_v35 = vadd.f32 %v803_v21, %v725_v32  ;;  %v621_v36 = vpop.f32.mrb[3].mxu0  ;;  %v727_v37 = vpop.f32.mrb[3].mxu1 }
 0x129   :  { %v832_v38 = vmax.f32 %v816_v29, 0.0  ;;  %v834_v39 = vmax.f32 %v818_v30, 0.0  ;;  %v820_v40 = vadd.f32 %v803_v21, %v621_v36  ;;  %v822_v41 = vadd.f32 %v803_v21, %v727_v37 }
 0x12a   :  { %v835_v42 = vmax.f32 %v819_v34, 0.0  ;;  %v837_v43 = vmax.f32 %v821_v35, 0.0 }
 0x12b   :  { %v997_v44 = vpack.c.bf16 %v832_v38, %v831_v1  ;;  %v998_v45 = vpack.c.bf16 %v834_v39, %v833_v33  ;;  %v836_v46 = vmax.f32 %v820_v40, 0.0  ;;  %v838_v47 = vmax.f32 %v822_v41, 0.0 }
 0x12d   :  { %895 = vst [vmem:[%s1440_s3] sm:$0xff] %v997_v44  ;;  %896 = vst [vmem:[%s1440_s3 + $0x8] sm:$0xff] %v998_v45  ;;  %v999_v49 = vpack.c.bf16 %v836_v46, %v835_v42  ;;  %v1000_v50 = vpack.c.bf16 %v838_v47, %v837_v43  ;;  %v625_v51 = vpop.f32.mrb[4].mxu0  ;;  %v731_v52 = vpop.f32.mrb[4].mxu1 }
 0x12e   :  { %v823_v53 = vadd.f32 %v808_v22, %v625_v51  ;;  %v825_v54 = vadd.f32 %v808_v22, %v731_v52  ;;  %v627_v55 = vpop.f32.mrb[5].mxu0  ;;  %v733_v56 = vpop.f32.mrb[5].mxu1 }
 0x12f   :  { %897 = vst [vmem:[%s1440_s3 + $0x10] sm:$0xff] %v999_v49  ;;  %898 = vst [vmem:[%s1440_s3 + $0x18] sm:$0xff] %v1000_v50  ;;  %v824_v57 = vadd.f32 %v808_v22, %v627_v55  ;;  %v826_v58 = vadd.f32 %v808_v22, %v733_v56  ;;  %v629_v59 = vpop.f32.mrb[6].mxu0  ;;  %v735_v60 = vpop.f32.mrb[6].mxu1 }
 0x130   :  { %v839_v61 = vmax.f32 %v823_v53, 0.0  ;;  %v841_v62 = vmax.f32 %v825_v54, 0.0  ;;  %v827_v63 = vadd.f32 %v813_v48, %v629_v59  ;;  %v829_v0 = vadd.f32 %v813_v48, %v735_v60  ;;  %v631_v2 = vpop.f32.mrb[7].mxu0  ;;  %v737_v3 = vpop.f32.mrb[7].mxu1 }
 0x131   :  { %v840_v4 = vmax.f32 %v824_v57, 0.0  ;;  %v842_v5 = vmax.f32 %v826_v58, 0.0  ;;  %v828_v6 = vadd.f32 %v813_v48, %v631_v2  ;;  %v830_v7 = vadd.f32 %v813_v48, %v737_v3 }
 0x132   :  { %v843_v8 = vmax.f32 %v827_v63, 0.0  ;;  %v845_v9 = vmax.f32 %v829_v0, 0.0 }
 0x133   :  { %v1001_v10 = vpack.c.bf16 %v840_v4, %v839_v61  ;;  %v1002_v11 = vpack.c.bf16 %v842_v5, %v841_v62  ;;  %v844_v12 = vmax.f32 %v828_v6, 0.0  ;;  %v846_v13 = vmax.f32 %v830_v7, 0.0 }
 0x135   :  { %899 = vst [vmem:[%s1440_s3 + $0x20] sm:$0xff] %v1001_v10  ;;  %900 = vst [vmem:[%s1440_s3 + $0x28] sm:$0xff] %v1002_v11  ;;  %v1003_v14 = vpack.c.bf16 %v844_v12, %v843_v8  ;;  %v1004_v15 = vpack.c.bf16 %v846_v13, %v845_v9 }
 0x137   :  { %901 = vst [vmem:[%s1440_s3 + $0x30] sm:$0xff] %v1003_v14  ;;  %902 = vst [vmem:[%s1440_s3 + $0x38] sm:$0xff] %v1004_v15 }

// kernel: pose_attn_forward.15
= control target key start
LH: loop header
LB: loop body
LE: loop exit
PB: predicated region body
PF: predicated region fallthrough
CT: control target
= control target key end

     0   :  { %v499_v1 = vmov 0   ;;  %vm209_vm0 = vcmask 261120   ;;  %s612_s1 = inlined_call_operand.vmem [shape: bf16[288,128], index: 1, kind: input, shape index: {}]   ;;  %s613_s0 = inlined_call_operand.vmem [shape: bf16[32,288], index: 0, kind: input, shape index: {}]   ;;  %s614_s2 = inlined_call_operand.vmem [shape: f32[32,1], index: 2, kind: input, shape index: {}]   ;;  %s615_s3 = inlined_call_operand.vmem [shape: bf16[32,128], index: 3, kind: output, shape index: {}]  }
   0x1   :  { %v473_v0 = vld [vmem:[%s612_s1 + $0x40] sm:$0xff]   ;;  %471 = vset.pattern.permute.xlu0 %v499_v1  ;;  %472 = vset.pattern.permute.xlu1 %v499_v1  ;;  %v475_v3 = vld [vmem:[%s612_s1 + $0x48] sm:$0xff]   ;;  %v477_v5 = vld [vmem:[%s612_s1 + $0x50] sm:$0xff]  }
   0x2   :  { %v474_v2 = vld [vmem:[%s612_s1] sm:$0xff]   ;;  %430 = vmatprep.subr.bf16.mxu0 %v473_v0  ;;  %v476_v4 = vld [vmem:[%s612_s1 + $0x8] sm:$0xff]   ;;  %v478_v6 = vld [vmem:[%s612_s1 + $0x10] sm:$0xff]  }
   0x3   :  { %431 = vmatpush3.bf16.msra.mxu0 %v474_v2  ;;  %v479_v7 = vld [vmem:[%s612_s1 + $0x58] sm:$0xff]   ;;  %v481_v9 = vld [vmem:[%s612_s1 + $0x60] sm:$0xff]   ;;  %v483_v12 = vld [vmem:[%s612_s1 + $0x68] sm:$0xff]  }
   0x4   :  { %432 = vmatprep.subr.bf16.mxu0 %v475_v3  ;;  %v480_v8 = vld [vmem:[%s612_s1 + $0x18] sm:$0xff]   ;;  %v487_v10 = vld [vmem:[%s612_s1 + $0x80] sm:$0xff]   ;;  %v484_v13 = vld [vmem:[%s612_s1 + $0x28] sm:$0xff]  }
   0x5   :  { %v482_v11 = vld [vmem:[%s612_s1 + $0x20] sm:$0xff]   ;;  %462 = vmatprep.subr.bf16.mxu1 %v487_v10  ;;  %v490_v14 = vld [vmem:[%s612_s1 + $0x88] sm:$0xff]   ;;  %v485_v15 = vld [vmem:[%s612_s1 + $0x70] sm:$0xff]  }
   0x6   :  { %463 = vmatpush3.bf16.msra.mxu1 %v487_v10  ;;  %v493_v16 = vld [vmem:[%s613_s0 + $0x4] ss:$12 sps:$4 sm:$0xff]   ;;  %v494_v17 = vld [vmem:[%s613_s0 + $0x8] ss:$12 sps:$4 sm:$0xff]   ;;  %v495_v18 = vld [vmem:[%s613_s0 + $0x20] ss:$12 sps:$4 sm:$0xff]  }
   0x7   :  { %433 = vmatpush3.bf16.msra.mxu0 %v476_v4  ;;  %464 = vmatprep.subr.bf16.mxu1 %v490_v14  ;;  %v329_v19 = vld [vmem:[%s614_s2] sm:$0xff]  ;;  %v486_v20 = vld [vmem:[%s612_s1 + $0x30] sm:$0xff]   ;;  %v488_v22 = vld [vmem:[%s612_s1 + $0x78] sm:$0xff]  }
   0x8   :  { %434 = vmatprep.subr.bf16.mxu0 %v477_v5  ;;  %248 = vmatprep.mubr.bf16.mxu0 %v493_v16  ;;  %v331_v21 = vld [vmem:[%s614_s2 + $0x10] sm:$0xff]  ;;  %v330_v23 = vld [vmem:[%s614_s2 + $0x8] sm:$0xff]  ;;  %v332_v24 = vld [vmem:[%s614_s2 + $0x18] sm:$0xff] }
   0x9   :  { %466 = vmatprep.mubr.msk.bf16.mxu1 %vm209_vm0, %v494_v17  ;;  %335 = vperm.xlu0 %471, %v329_v19   ;;  %v489_v25 = vld [vmem:[%s612_s1 + $0x38] sm:$0xff]   ;;  %v491_v26 = vld [vmem:[%s613_s0] ss:$12 sps:$4 sm:$0xff]  }
   0xa   :  { %465 = vmatpush3.bf16.msra.mxu1 %v490_v14  ;;  %345 = vperm.xlu1 %472, %v331_v21   ;;  %v496_v27 = vld [vmem:[%s613_s0 + $0x1c] ss:$12 sps:$4 sm:$0xff]   ;;  %v498_v28 = vld [vmem:[%s613_s0 + $0x18] ss:$12 sps:$4 sm:$0xff]  }
   0xb   :  { %435 = vmatpush3.bf16.msra.mxu0 %v478_v6 }
   0xc   :  { %436 = vmatprep.subr.bf16.mxu0 %v479_v7 }
   0xd   :  { %467 = vmatmul.mubr.msk.bf16.vlgmr.msra.gmra.mrb[0].mxu1 %vm209_vm0, %v495_v18  ;;  %340 = vperm.xlu0 %471, %v330_v23  }
   0xe   :  { %350 = vperm.xlu1 %472, %v332_v24  }
   0xf   :  { %437 = vmatpush3.bf16.msra.mxu0 %v480_v8 }
  0x10   :  { %438 = vmatprep.subr.bf16.mxu0 %v481_v9 }
  0x13   :  { %439 = vmatpush3.bf16.msra.mxu0 %v482_v11 }
  0x14   :  { %440 = vmatprep.subr.bf16.mxu0 %v483_v12 }
  0x17   :  { %441 = vmatpush3.bf16.msra.mxu0 %v484_v13 }
  0x18   :  { %442 = vmatprep.subr.bf16.mxu0 %v485_v15 }
  0x1b   :  { %443 = vmatpush3.bf16.msra.mxu0 %v486_v20 }
  0x1c   :  { %444 = vmatprep.subr.bf16.mxu0 %v488_v22 }
  0x1f   :  { %445 = vmatpush3.bf16.msra.mxu0 %v489_v25 }
  0x22   :  { %249 = vmatmul.mubr.bf16.vlgmr.msra.gmra.mrb[0].mxu0 %v491_v26 }
  0x23   :  { %256 = vmatprep.mubr.bf16.mxu0 %v496_v27 }
  0x2a   :  { %257 = vmatmul.mubr.bf16.gmra.mrb[4].mxu0 %v498_v28 }
  0x88   :  { %v336_v33 = vpop.permute.xlu0 %335 }
  0x89   :  { %v346_v46 = vpop.permute.xlu1 %345 }
  0x8c   :  { %v341_v41 = vpop.permute.xlu0 %340 }
  0x8d   :  { %v351_v58 = vpop.permute.xlu1 %350 }
  0xe0   :  { %v468_v29 = vpop.f32.mrb[0].mxu1 }
  0xe1   :  { %v299_v30 = vpop.f32.mrb[1].mxu1 }
  0xe2   :  { %v469_v31 = vpop.f32.mrb[2].mxu1 }
  0xe3   :  { %v302_v32 = vpop.f32.mrb[3].mxu1 }
  0xf5   :  { %v446_v34 = vpop.f32.mrb[0].mxu0 }
  0xf6   :  { %v447_v35 = vpop.f32.mrb[1].mxu0 }
  0xf7   :  { %v448_v36 = vadd.f32 %v447_v35, %v446_v34  ;;  %v449_v37 = vpop.f32.mrb[2].mxu0 }
  0xf8   :  { %v450_v38 = vpop.f32.mrb[3].mxu0 }
  0xf9   :  { %v451_v39 = vadd.f32 %v450_v38, %v449_v37  ;;  %v300_v40 = vadd.f32 %v448_v36, %v299_v30 }
  0xfb   :  { %v353_v42 = vadd.f32 %v336_v33, %v300_v40  ;;  %v303_v43 = vadd.f32 %v451_v39, %v302_v32 }
  0xfd   :  { %v354_v44 = vadd.f32 %v341_v41, %v303_v43  ;;  %v452_v45 = vpop.f32.mrb[4].mxu0  ;;  %v357_v48 = vmax.f32 %v353_v42, 0.0 }
  0xfe   :  { %v453_v47 = vpop.f32.mrb[5].mxu0 }
  0xff   :  { %v358_v49 = vmax.f32 %v354_v44, 0.0  ;;  %v454_v50 = vadd.f32 %v453_v47, %v452_v45  ;;  %v455_v51 = vpop.f32.mrb[6].mxu0 }
 0x100   :  { %v456_v52 = vpop.f32.mrb[7].mxu0 }
 0x101   :  { %v422_v53 = vpack.c.bf16 %v358_v49, %v357_v48  ;;  %v308_v54 = vadd.f32 %v468_v29, %v454_v50  ;;  %v457_v55 = vadd.f32 %v456_v52, %v455_v51 }
 0x103   :  { %423 = vst [vmem:[%s615_s3] sm:$0xff] %v422_v53   ;;  %v355_v56 = vadd.f32 %v346_v46, %v308_v54  ;;  %v311_v57 = vadd.f32 %v469_v31, %v457_v55 }
 0x105   :  { %v356_v59 = vadd.f32 %v351_v58, %v311_v57  ;;  %v359_v60 = vmax.f32 %v355_v56, 0.0 }
 0x107   :  { %v360_v61 = vmax.f32 %v356_v59, 0.0 }
 0x109   :  { %v427_v62 = vpack.c.bf16 %v360_v61, %v359_v60 }
 0x10b   :  { %429 = vst [vmem:[%s615_s3 + $0x8] sm:$0xff] %v427_v62  }

// kernel: pose_attn_forward.18
= control target key start
LH: loop header
LB: loop body
LE: loop exit
PB: predicated region body
PF: predicated region fallthrough
CT: control target
= control target key end

     0   :  { %vm123_vm0 = vcmask 261120   ;;  %s630_s1 = inlined_call_operand.vmem [shape: bf16[32,128], index: 1, kind: input, shape index: {}]   ;;  %s631_s0 = inlined_call_operand.vmem [shape: bf16[128,32], index: 0, kind: input, shape index: {}]   ;;  %s632_s2 = inlined_call_operand.vmem [shape: f32[1,128], index: 2, kind: input, shape index: {}]   ;;  %s633_s3 = inlined_call_operand.vmem [shape: bf16[128,128], index: 3, kind: output, shape index: {}]  }
   0x1   :  { %v535_v0 = vld [vmem:[%s630_s1] sm:$0xff]   ;;  %v536_v1 = vld [vmem:[%s630_s1 + $0x8] sm:$0xff]   ;;  %v541_v6 = vld [vmem:[%s631_s0 + $0x10] sm:$0xff]  }
   0x2   :  { %511 = vmatprep.subr.bf16.mxu0 %v535_v0  ;;  %531 = vmatprep.subr.bf16.mxu1 %v535_v0  ;;  %v537_v2 = vld [vmem:[%s631_s0] sm:$0xff]   ;;  %v539_v4 = vld [vmem:[%s631_s0 + $0x8] sm:$0xff]   ;;  %v542_v7 = vld [vmem:[%s631_s0 + $0x30] sm:$0xff]  }
   0x3   :  { %512 = vmatpush3.bf16.msra.mxu0 %v535_v0  ;;  %533 = vmatpush3.bf16.msra.mxu1 %v535_v0  ;;  %v538_v3 = vld [vmem:[%s631_s0 + $0x20] sm:$0xff]   ;;  %v540_v5 = vld [vmem:[%s631_s0 + $0x28] sm:$0xff]   ;;  %v543_v8 = vld [vmem:[%s631_s0 + $0x18] sm:$0xff]  }
   0x4   :  { %513 = vmatprep.subr.bf16.mxu0 %v536_v1  ;;  %532 = vmatprep.subr.bf16.mxu1 %v536_v1  ;;  %v544_v9 = vld [vmem:[%s631_s0 + $0x38] sm:$0xff]   ;;  %v421_v11 = vld [vmem:[%s632_s2] ss:$0 sm:$0xff] }
   0x5   :  { %515 = vmatprep.mubr.msk.bf16.mxu0 %vm123_vm0, %v537_v2  ;;  %523 = vmatprep.mubr.msk.bf16.mxu1 %vm123_vm0, %v538_v3 }
   0x7   :  { %514 = vmatpush3.bf16.msra.mxu0 %v536_v1  ;;  %534 = vmatpush3.bf16.msra.mxu1 %v536_v1 }
   0xa   :  { %516 = vmatmul.mubr.msk.bf16.vlgmr.msra.gmra.mrb[0].mxu0 %vm123_vm0, %v539_v4  ;;  %524 = vmatmul.mubr.msk.bf16.vlgmr.msra.gmra.mrb[0].mxu1 %vm123_vm0, %v540_v5 }
   0xb   :  { %519 = vmatprep.mubr.msk.bf16.mxu0 %vm123_vm0, %v541_v6  ;;  %527 = vmatprep.mubr.msk.bf16.mxu1 %vm123_vm0, %v542_v7 }
  0x12   :  { %520 = vmatmul.mubr.msk.bf16.gmra.mrb[4].mxu0 %vm123_vm0, %v543_v8  ;;  %528 = vmatmul.mubr.msk.bf16.gmra.mrb[4].mxu1 %vm123_vm0, %v544_v9 }
  0xdd   :  { %v517_v10 = vpop.f32.mrb[0].mxu0  ;;  %v525_v12 = vpop.f32.mrb[0].mxu1 }
  0xde   :  { %v182_v13 = vpop.f32.mrb[1].mxu0  ;;  %v214_v14 = vpop.f32.mrb[1].mxu1  ;;  %v305_v17 = vadd.f32 %v517_v10, %v421_v11  ;;  %v313_v18 = vadd.f32 %v525_v12, %v421_v11 }
  0xdf   :  { %v518_v15 = vpop.f32.mrb[2].mxu0  ;;  %v526_v16 = vpop.f32.mrb[2].mxu1  ;;  %v303_v23 = vadd.f32 %v421_v11, %v182_v13  ;;  %v311_v24 = vadd.f32 %v421_v11, %v214_v14 }
  0xe0   :  { %v306_v19 = vadd.f32 %v518_v15, %v421_v11  ;;  %v314_v20 = vadd.f32 %v526_v16, %v421_v11  ;;  %v185_v21 = vpop.f32.mrb[3].mxu0  ;;  %v217_v22 = vpop.f32.mrb[3].mxu1 }
  0xe1   :  { %v304_v25 = vadd.f32 %v421_v11, %v185_v21  ;;  %v312_v26 = vadd.f32 %v421_v11, %v217_v22 }
  0xe2   :  { %v462_v27 = vpack.c.bf16 %v306_v19, %v305_v17  ;;  %v482_v28 = vpack.c.bf16 %v314_v20, %v313_v18 }
  0xe3   :  { %v457_v29 = vpack.c.bf16 %v304_v25, %v303_v23  ;;  %v477_v30 = vpack.c.bf16 %v312_v26, %v311_v24 }
  0xe4   :  { %494 = vst [vmem:[%s633_s3 + $0x8] sm:$0xff] %v462_v27   ;;  %498 = vst [vmem:[%s633_s3 + $0x28] sm:$0xff] %v482_v28  }
  0xe5   :  { %458 = vst [vmem:[%s633_s3] sm:$0xff] %v457_v29   ;;  %497 = vst [vmem:[%s633_s3 + $0x20] sm:$0xff] %v477_v30   ;;  %v521_v31 = vpop.f32.mrb[4].mxu0  ;;  %v529_v32 = vpop.f32.mrb[4].mxu1 }
  0xe6   :  { %v198_v33 = vpop.f32.mrb[5].mxu0  ;;  %v230_v34 = vpop.f32.mrb[5].mxu1  ;;  %v309_v37 = vadd.f32 %v521_v31, %v421_v11  ;;  %v317_v38 = vadd.f32 %v529_v32, %v421_v11 }
  0xe7   :  { %v522_v35 = vpop.f32.mrb[6].mxu0  ;;  %v530_v36 = vpop.f32.mrb[6].mxu1  ;;  %v307_v43 = vadd.f32 %v421_v11, %v198_v33  ;;  %v315_v44 = vadd.f32 %v421_v11, %v230_v34 }
  0xe8   :  { %v310_v39 = vadd.f32 %v522_v35, %v421_v11  ;;  %v318_v40 = vadd.f32 %v530_v36, %v421_v11  ;;  %v201_v41 = vpop.f32.mrb[7].mxu0  ;;  %v233_v42 = vpop.f32.mrb[7].mxu1 }
  0xe9   :  { %v308_v45 = vadd.f32 %v421_v11, %v201_v41  ;;  %v316_v46 = vadd.f32 %v421_v11, %v233_v42 }
  0xea   :  { %v472_v47 = vpack.c.bf16 %v310_v39, %v309_v37  ;;  %v492_v48 = vpack.c.bf16 %v318_v40, %v317_v38 }
  0xeb   :  { %v467_v49 = vpack.c.bf16 %v308_v45, %v307_v43  ;;  %v487_v50 = vpack.c.bf16 %v316_v46, %v315_v44 }
  0xec   :  { %496 = vst [vmem:[%s633_s3 + $0x18] sm:$0xff] %v472_v47   ;;  %500 = vst [vmem:[%s633_s3 + $0x38] sm:$0xff] %v492_v48  }
  0xed   :  { %495 = vst [vmem:[%s633_s3 + $0x10] sm:$0xff] %v467_v49   ;;  %499 = vst [vmem:[%s633_s3 + $0x30] sm:$0xff] %v487_v50  }

// kernel: pose_attn_forward.16
= control target key start
LH: loop header
LB: loop body
LE: loop exit
PB: predicated region body
PF: predicated region fallthrough
CT: control target
= control target key end

     0   :  { %v1036_v3 = vmov 0   ;;  %vm282_vm0 = vcmask 261120   ;;  %s1266_s1 = inlined_call_operand.vmem [shape: bf16[32,2048], index: 1, kind: input, shape index: {}]   ;;  %s1267_s0 = inlined_call_operand.vmem [shape: bf16[16,32], index: 0, kind: input, shape index: {}]   ;;  %s1268_s2 = inlined_call_operand.vmem [shape: f32[1,2048], index: 2, kind: input, shape index: {}]   ;;  %s1269_s3 = inlined_call_operand.vmem [shape: bf16[16,2048], index: 3, kind: output, shape index: {}]  }
   0x1   :  { %v85_v0 = vld [vmem:[%s1266_s1] sm:$0xff]  ;;  %v86_v2 = vld [vmem:[%s1266_s1 + $0x8] sm:$0xff]  ;;  %318 = vmatprep.mubr.bf16.mxu0 %v1036_v3  ;;  %361 = vmatprep.mubr.bf16.mxu1 %v1036_v3  ;;  %v87_v15 = vld [vmem:[%s1266_s1 + $0x10] sm:$0xff] }
   0x2   :  { %v93_v1 = vld [vmem:[%s1266_s1 + $0x40] sm:$0xff]  ;;  %v94_v5 = vld [vmem:[%s1266_s1 + $0x48] sm:$0xff]  ;;  %v95_v17 = vld [vmem:[%s1266_s1 + $0x50] sm:$0xff] }
   0x3   :  { %v963_v4 = vcombine.high %v85_v0, %v93_v1  ;;  %v962_v6 = vcombine.low %v85_v0, %v93_v1  ;;  %v101_v7 = vld [vmem:[%s1266_s1 + $0x80] sm:$0xff]  ;;  %v965_v9 = vcombine.high %v86_v2, %v94_v5  ;;  %v964_v10 = vcombine.low %v86_v2, %v94_v5  ;;  %v102_v12 = vld [vmem:[%s1266_s1 + $0x88] sm:$0xff]  ;;  %v88_v18 = vld [vmem:[%s1266_s1 + $0x18] sm:$0xff] }
   0x4   :  { %v109_v8 = vld [vmem:[%s1266_s1 + $0xc0] sm:$0xff]  ;;  %v110_v13 = vld [vmem:[%s1266_s1 + $0xc8] sm:$0xff]  ;;  %v96_v19 = vld [vmem:[%s1266_s1 + $0x58] sm:$0xff]  ;;  %v967_v21 = vcombine.high %v87_v15, %v95_v17  ;;  %v966_v28 = vcombine.low %v87_v15, %v95_v17  ;;  %v733_v2 = vlaneseq }
   0x5   :  { %v979_v11 = vcombine.high %v101_v7, %v109_v8  ;;  %286 = vmatprep.subr.bf16.mxu0 %v963_v4  ;;  %v981_v14 = vcombine.high %v102_v12, %v110_v13  ;;  %329 = vmatprep.subr.bf16.mxu1 %v965_v9  ;;  %v978_v16 = vcombine.low %v101_v7, %v109_v8  ;;  %v103_v23 = vld [vmem:[%s1266_s1 + $0x90] sm:$0xff]  ;;  %v1104_v25 = vld [vmem:[%s1267_s0] sm:$0xff]   ;;  %v104_v26 = vld [vmem:[%s1266_s1 + $0x98] sm:$0xff] }
   0x6   :  { %287 = vmatpush1.bf16.msra.mxu0 %v962_v6  ;;  %330 = vmatpush1.bf16.msra.mxu1 %v964_v10  ;;  %v980_v20 = vcombine.low %v102_v12, %v110_v13  ;;  %v969_v22 = vcombine.high %v88_v18, %v96_v19  ;;  %v111_v24 = vld [vmem:[%s1266_s1 + $0xd0] sm:$0xff]  ;;  %v112_v27 = vld [vmem:[%s1266_s1 + $0xd8] sm:$0xff]  ;;  %v968_v29 = vcombine.low %v88_v18, %v96_v19  ;;  %v89_v32 = vld [vmem:[%s1266_s1 + $0x20] sm:$0xff]  ;;  %v1182_v4 = vshrl.u32 %v733_v2, 7 }
   0x7   :  { %288 = vmatprep.subr.bf16.mxu0 %v979_v11  ;;  %331 = vmatprep.subr.bf16.mxu1 %v981_v14  ;;  %v983_v30 = vcombine.high %v103_v23, %v111_v24  ;;  %v985_v31 = vcombine.high %v104_v26, %v112_v27  ;;  %v97_v33 = vld [vmem:[%s1266_s1 + $0x60] sm:$0xff]  ;;  %v90_v34 = vld [vmem:[%s1266_s1 + $0x28] sm:$0xff]  ;;  %v982_v36 = vcombine.low %v103_v23, %v111_v24  ;;  %v91_v48 = vld [vmem:[%s1266_s1 + $0x30] sm:$0xff] }
   0x8   :  { %v98_v35 = vld [vmem:[%s1266_s1 + $0x68] sm:$0xff]  ;;  %v984_v37 = vcombine.low %v104_v26, %v112_v27  ;;  %v971_v38 = vcombine.high %v89_v32, %v97_v33  ;;  %v105_v40 = vld [vmem:[%s1266_s1 + $0xa0] sm:$0xff]  ;;  %v970_v44 = vcombine.low %v89_v32, %v97_v33  ;;  %v99_v49 = vld [vmem:[%s1266_s1 + $0x70] sm:$0xff]  ;;  %v735_v5 = vsub.s32 0, %v1182_v4 }
   0x9   :  { %v973_v39 = vcombine.high %v90_v34, %v98_v35  ;;  %v113_v41 = vld [vmem:[%s1266_s1 + $0xe0] sm:$0xff]  ;;  %v106_v42 = vld [vmem:[%s1266_s1 + $0xa8] sm:$0xff]  ;;  %v972_v45 = vcombine.low %v90_v34, %v98_v35  ;;  %v92_v50 = vld [vmem:[%s1266_s1 + $0x38] sm:$0xff]  ;;  %v975_v54 = vcombine.high %v91_v48, %v99_v49  ;;  %v974_v60 = vcombine.low %v91_v48, %v99_v49 }
   0xa   :  { %289 = vmatpush1.bf16.msra.mxu0 %v978_v16  ;;  %332 = vmatpush1.bf16.msra.mxu1 %v980_v20  ;;  %v114_v43 = vld [vmem:[%s1266_s1 + $0xe8] sm:$0xff]  ;;  %v987_v46 = vcombine.high %v105_v40, %v113_v41  ;;  %v100_v51 = vld [vmem:[%s1266_s1 + $0x78] sm:$0xff]  ;;  %v986_v52 = vcombine.low %v105_v40, %v113_v41  ;;  %v107_v56 = vld [vmem:[%s1266_s1 + $0xb0] sm:$0xff]  ;;  %v743_v7 = vsub.s32 2, %v1182_v4  ;;  %v747_v8 = vsub.s32 3, %v1182_v4 }
   0xb   :  { %372 = vmatprep.subr.bf16.mxu0 %v967_v21  ;;  %415 = vmatprep.subr.bf16.mxu1 %v969_v22  ;;  %v989_v47 = vcombine.high %v106_v42, %v114_v43  ;;  %v988_v53 = vcombine.low %v106_v42, %v114_v43  ;;  %v977_v55 = vcombine.high %v92_v50, %v100_v51  ;;  %v115_v57 = vld [vmem:[%s1266_s1 + $0xf0] sm:$0xff]  ;;  %v108_v58 = vld [vmem:[%s1266_s1 + $0xb8] sm:$0xff]  ;;  %v729_v6 = vld [vmem:[%s1268_s2] sm:$0xff]  ;;  %v751_v17 = vsub.s32 4, %v1182_v4 }
   0xc   :  { %v116_v59 = vld [vmem:[%s1266_s1 + $0xf8] sm:$0xff]  ;;  %v976_v61 = vcombine.low %v92_v50, %v100_v51  ;;  %v991_v62 = vcombine.high %v107_v56, %v115_v57  ;;  %v990_v0 = vcombine.low %v107_v56, %v115_v57  ;;  %v736_v9 = vrot.slane %v729_v6, %v735_v5  ;;  %v730_v49 = vld [vmem:[%s1268_s2 + $0x8] sm:$0xff] }
   0xd   :  { %994 = vmatmul.mubr.msk.bf16.vlgmr.msra.gmra.mrb[0].mxu0 %vm282_vm0, %v1104_v25  ;;  %995 = vmatmul.mubr.msk.bf16.vlgmr.msra.gmra.mrb[0].mxu1 %vm282_vm0, %v1104_v25  ;;  %v993_v63 = vcombine.high %v108_v58, %v116_v59  ;;  %v992_v1 = vcombine.low %v108_v58, %v116_v59  ;;  %v744_v10 = vrot.slane %v729_v6, %v743_v7  ;;  %v759_v22 = vsub.s32 6, %v1182_v4 }
   0xe   :  { %373 = vmatpush1.bf16.msra.mxu0 %v966_v28  ;;  %416 = vmatpush1.bf16.msra.mxu1 %v968_v29  ;;  %v748_v12 = vrot.slane %v729_v6, %v747_v8  ;;  %v755_v23 = vsub.s32 5, %v1182_v4  ;;  %v763_v28 = vsub.s32 7, %v1182_v4  ;;  %v752_v35 = vrot.slane %v729_v6, %v751_v17 }
   0xf   :  { %374 = vmatprep.subr.bf16.mxu0 %v983_v30  ;;  %417 = vmatprep.subr.bf16.mxu1 %v985_v31 }
  0x10   :  { %404 = vmatprep.mubr.bf16.mxu0 %v1036_v3  ;;  %447 = vmatprep.mubr.bf16.mxu1 %v1036_v3  ;;  %v764_v40 = vrot.slane %v729_v6, %v763_v28 }
  0x12   :  { %375 = vmatpush1.bf16.msra.mxu0 %v982_v36  ;;  %418 = vmatpush1.bf16.msra.mxu1 %v984_v37  ;;  %v760_v37 = vrot.slane %v729_v6, %v759_v22 }
  0x13   :  { %458 = vmatprep.subr.bf16.mxu0 %v971_v38  ;;  %501 = vmatprep.subr.bf16.mxu1 %v973_v39  ;;  %v756_v38 = vrot.slane %v729_v6, %v755_v23 }
  0x15   :  { %996 = vmatmul.mubr.msk.bf16.vlgmr.msra.gmra.mrb[4].mxu0 %vm282_vm0, %v1104_v25  ;;  %997 = vmatmul.mubr.msk.bf16.vlgmr.msra.gmra.mrb[4].mxu1 %vm282_vm0, %v1104_v25 }
  0x16   :  { %459 = vmatpush1.bf16.msra.mxu0 %v970_v44  ;;  %502 = vmatpush1.bf16.msra.mxu1 %v972_v45 }
  0x17   :  { %460 = vmatprep.subr.bf16.mxu0 %v987_v46  ;;  %503 = vmatprep.subr.bf16.mxu1 %v989_v47 }
  0x18   :  { %490 = vmatprep.mubr.bf16.mxu0 %v1036_v3  ;;  %533 = vmatprep.mubr.bf16.mxu1 %v1036_v3 }
  0x1a   :  { %461 = vmatpush1.bf16.msra.mxu0 %v986_v52  ;;  %504 = vmatpush1.bf16.msra.mxu1 %v988_v53 }
  0x1b   :  { %544 = vmatprep.subr.bf16.mxu0 %v975_v54  ;;  %587 = vmatprep.subr.bf16.mxu1 %v977_v55 }
  0x1d   :  { %998 = vmatmul.mubr.msk.bf16.vlgmr.msra.gmra.mrb[8].mxu0 %vm282_vm0, %v1104_v25  ;;  %999 = vmatmul.mubr.msk.bf16.vlgmr.msra.gmra.mrb[8].mxu1 %vm282_vm0, %v1104_v25 }
  0x1e   :  { %545 = vmatpush1.bf16.msra.mxu0 %v974_v60  ;;  %588 = vmatpush1.bf16.msra.mxu1 %v976_v61  ;;  %v768_v60 = vrot.slane %v730_v49, %v735_v5 }
  0x1f   :  { %546 = vmatprep.subr.bf16.mxu0 %v991_v62  ;;  %589 = vmatprep.subr.bf16.mxu1 %v993_v63  ;;  %v776_v62 = vrot.slane %v730_v49, %v743_v7 }
  0x20   :  { %576 = vmatprep.mubr.bf16.mxu0 %v1036_v3  ;;  %619 = vmatprep.mubr.bf16.mxu1 %v1036_v3  ;;  %v739_v3 = vsub.s32 1, %v1182_v4 }
  0x22   :  { %547 = vmatpush1.bf16.msra.mxu0 %v990_v0  ;;  %590 = vmatpush1.bf16.msra.mxu1 %v992_v1  ;;  %v740_v11 = vrot.slane %v729_v6, %v739_v3  ;;  %v772_v63 = vrot.slane %v730_v49, %v739_v3  ;;  %v780_v1 = vrot.slane %v730_v49, %v747_v8 }
  0x25   :  { %1000 = vmatmul.mubr.msk.bf16.vlgmr.msra.gmra.mrb[12].mxu0 %vm282_vm0, %v1104_v25  ;;  %1001 = vmatmul.mubr.msk.bf16.vlgmr.msra.gmra.mrb[12].mxu1 %vm282_vm0, %v1104_v25 }
  0xe0   :  { %v320_v13 = vpop.f32.mrb[0].mxu0  ;;  %v363_v15 = vpop.f32.mrb[0].mxu1 }
  0xe1   :  { %v813_v14 = vadd.f32 %v736_v9, %v320_v13  ;;  %v322_v16 = vpop.f32.mrb[1].mxu0  ;;  %v815_v18 = vadd.f32 %v744_v10, %v363_v15  ;;  %v365_v20 = vpop.f32.mrb[1].mxu1 }
  0xe2   :  { %v814_v19 = vadd.f32 %v740_v11, %v322_v16  ;;  %v324_v21 = vpop.f32.mrb[2].mxu0  ;;  %v816_v24 = vadd.f32 %v748_v12, %v365_v20  ;;  %v367_v26 = vpop.f32.mrb[2].mxu1 }
  0xe3   :  { %v829_v25 = vadd.f32 %v736_v9, %v324_v21  ;;  %v326_v27 = vpop.f32.mrb[3].mxu0  ;;  %v831_v30 = vadd.f32 %v744_v10, %v367_v26  ;;  %v369_v32 = vpop.f32.mrb[3].mxu1  ;;  %v792_v26 = vrot.slane %v730_v49, %v759_v22 }
  0xe4   :  { %v1018_v29 = vpack.c.bf16 %v814_v19, %v813_v14  ;;  %v830_v31 = vadd.f32 %v740_v11, %v326_v27  ;;  %v1019_v33 = vpack.c.bf16 %v816_v24, %v815_v18  ;;  %v832_v34 = vadd.f32 %v748_v12, %v369_v32 }
  0xe5   :  { %v784_v24 = vrot.slane %v730_v49, %v751_v17  ;;  %v788_v27 = vrot.slane %v730_v49, %v755_v23 }
  0xe6   :  { %941 = vst [vmem:[%s1269_s3] sm:$0xff] %v1018_v29  ;;  %v1026_v36 = vpack.c.bf16 %v830_v31, %v829_v25  ;;  %942 = vst [vmem:[%s1269_s3 + $0x8] sm:$0xff] %v1019_v33  ;;  %v1027_v39 = vpack.c.bf16 %v832_v34, %v831_v30  ;;  %v796_v30 = vrot.slane %v730_v49, %v763_v28 }
  0xe8   :  { %949 = vst [vmem:[%s1269_s3 + $0x40] sm:$0xff] %v1026_v36  ;;  %v406_v41 = vpop.f32.mrb[4].mxu0  ;;  %950 = vst [vmem:[%s1269_s3 + $0x48] sm:$0xff] %v1027_v39  ;;  %v449_v43 = vpop.f32.mrb[4].mxu1 }
  0xe9   :  { %v817_v42 = vadd.f32 %v752_v35, %v406_v41  ;;  %v408_v44 = vpop.f32.mrb[5].mxu0  ;;  %v819_v45 = vadd.f32 %v760_v37, %v449_v43  ;;  %v451_v47 = vpop.f32.mrb[5].mxu1 }
  0xea   :  { %v818_v46 = vadd.f32 %v756_v38, %v408_v44  ;;  %v410_v48 = vpop.f32.mrb[6].mxu0  ;;  %v820_v50 = vadd.f32 %v764_v40, %v451_v47  ;;  %v453_v52 = vpop.f32.mrb[6].mxu1 }
  0xeb   :  { %v833_v51 = vadd.f32 %v752_v35, %v410_v48  ;;  %v412_v53 = vpop.f32.mrb[7].mxu0  ;;  %v835_v55 = vadd.f32 %v760_v37, %v453_v52  ;;  %v455_v57 = vpop.f32.mrb[7].mxu1 }
  0xec   :  { %v1020_v54 = vpack.c.bf16 %v818_v46, %v817_v42  ;;  %v834_v56 = vadd.f32 %v756_v38, %v412_v53  ;;  %v1021_v58 = vpack.c.bf16 %v820_v50, %v819_v45  ;;  %v836_v59 = vadd.f32 %v764_v40, %v455_v57 }
  0xee   :  { %943 = vst [vmem:[%s1269_s3 + $0x10] sm:$0xff] %v1020_v54  ;;  %v1028_v61 = vpack.c.bf16 %v834_v56, %v833_v51  ;;  %944 = vst [vmem:[%s1269_s3 + $0x18] sm:$0xff] %v1021_v58  ;;  %v1029_v0 = vpack.c.bf16 %v836_v59, %v835_v55 }
  0xf0   :  { %951 = vst [vmem:[%s1269_s3 + $0x50] sm:$0xff] %v1028_v61  ;;  %v492_v2 = vpop.f32.mrb[8].mxu0  ;;  %952 = vst [vmem:[%s1269_s3 + $0x58] sm:$0xff] %v1029_v0  ;;  %v535_v6 = vpop.f32.mrb[8].mxu1 }
  0xf1   :  { %v821_v5 = vadd.f32 %v768_v60, %v492_v2  ;;  %v494_v7 = vpop.f32.mrb[9].mxu0  ;;  %v823_v3 = vadd.f32 %v776_v62, %v535_v6  ;;  %v537_v10 = vpop.f32.mrb[9].mxu1 }
  0xf2   :  { %v822_v9 = vadd.f32 %v772_v63, %v494_v7  ;;  %v496_v11 = vpop.f32.mrb[10].mxu0  ;;  %v824_v12 = vadd.f32 %v780_v1, %v537_v10  ;;  %v539_v14 = vpop.f32.mrb[10].mxu1 }
  0xf3   :  { %v837_v13 = vadd.f32 %v768_v60, %v496_v11  ;;  %v498_v8 = vpop.f32.mrb[11].mxu0  ;;  %v839_v16 = vadd.f32 %v776_v62, %v539_v14  ;;  %v541_v19 = vpop.f32.mrb[11].mxu1 }
  0xf4   :  { %v1022_v15 = vpack.c.bf16 %v822_v9, %v821_v5  ;;  %v838_v18 = vadd.f32 %v772_v63, %v498_v8  ;;  %v1023_v20 = vpack.c.bf16 %v824_v12, %v823_v3  ;;  %v840_v21 = vadd.f32 %v780_v1, %v541_v19 }
  0xf6   :  { %945 = vst [vmem:[%s1269_s3 + $0x20] sm:$0xff] %v1022_v15  ;;  %v1030_v25 = vpack.c.bf16 %v838_v18, %v837_v13  ;;  %946 = vst [vmem:[%s1269_s3 + $0x28] sm:$0xff] %v1023_v20  ;;  %v1031_v29 = vpack.c.bf16 %v840_v21, %v839_v16 }
  0xf8   :  { %953 = vst [vmem:[%s1269_s3 + $0x60] sm:$0xff] %v1030_v25  ;;  %v578_v17 = vpop.f32.mrb[12].mxu0  ;;  %954 = vst [vmem:[%s1269_s3 + $0x68] sm:$0xff] %v1031_v29  ;;  %v621_v31 = vpop.f32.mrb[12].mxu1 }
  0xf9   :  { %v825_v22 = vadd.f32 %v784_v24, %v578_v17  ;;  %v580_v23 = vpop.f32.mrb[13].mxu0  ;;  %v827_v32 = vadd.f32 %v792_v26, %v621_v31  ;;  %v623_v34 = vpop.f32.mrb[13].mxu1 }
  0xfa   :  { %v826_v33 = vadd.f32 %v788_v27, %v580_v23  ;;  %v582_v35 = vpop.f32.mrb[14].mxu0  ;;  %v828_v36 = vadd.f32 %v796_v30, %v623_v34  ;;  %v625_v4 = vpop.f32.mrb[14].mxu1 }
  0xfb   :  { %v841_v37 = vadd.f32 %v784_v24, %v582_v35  ;;  %v584_v28 = vpop.f32.mrb[15].mxu0  ;;  %v843_v39 = vadd.f32 %v792_v26, %v625_v4  ;;  %v627_v41 = vpop.f32.mrb[15].mxu1 }
  0xfc   :  { %v1024_v38 = vpack.c.bf16 %v826_v33, %v825_v22  ;;  %v842_v40 = vadd.f32 %v788_v27, %v584_v28  ;;  %v1025_v42 = vpack.c.bf16 %v828_v36, %v827_v32  ;;  %v844_v43 = vadd.f32 %v796_v30, %v627_v41 }
  0xfe   :  { %947 = vst [vmem:[%s1269_s3 + $0x30] sm:$0xff] %v1024_v38  ;;  %v1032_v44 = vpack.c.bf16 %v842_v40, %v841_v37  ;;  %948 = vst [vmem:[%s1269_s3 + $0x38] sm:$0xff] %v1025_v42  ;;  %v1033_v45 = vpack.c.bf16 %v844_v43, %v843_v39 }
 0x100   :  { %955 = vst [vmem:[%s1269_s3 + $0x70] sm:$0xff] %v1032_v44  ;;  %956 = vst [vmem:[%s1269_s3 + $0x78] sm:$0xff] %v1033_v45 }

// kernel: pose_attn_forward.19
= control target key start
LH: loop header
LB: loop body
LE: loop exit
PB: predicated region body
PF: predicated region fallthrough
CT: control target
= control target key end

     0   :  { %s1940_s18 = smov 0   ;;  %s2229_s0 = inlined_call_operand.vmem [shape: bf16[2,2,64,32], index: 0, kind: input, shape index: {}]   ;;  %s2230_s1 = inlined_call_operand.vmem [shape: bf16[2,2,64,32], index: 1, kind: input, shape index: {}]   ;;  %s2231_s2 = inlined_call_operand.vmem [shape: bf16[2,64,32], index: 2, kind: input, shape index: {}]   ;;  %s2232_s3 = inlined_call_operand.vmem [shape: bf16[2,32,32], index: 3, kind: input, shape index: {}]   ;;  %s2233_s4 = inlined_call_operand.vmem [shape: bf16[2,32,32], index: 4, kind: input, shape index: {}]   ;;  %s2234_s5 = inlined_call_operand.vmem [shape: bf16[2,64,32], index: 5, kind: output, shape index: {}]  }
   0x1 LB: > { %s1496_s19 = sadd.s32 4294967295, %s1908_s18   ;;  %p1500_p0 = scmp.ge.s32.totalorder %s1908_s18, 1  ;;  %s1908_s18 = sphi %s1940_s18, %s15_s18  }
   0x2   : > { %p207_p1 = scmp.lt.s32.totalorder %s1908_s18, 3 }
   0x4   : > { %p208_p2 = pnand %p1500_p0, %p207_p1 }
   0x5   : > { %p245_p3 = scmp.lt.s32.totalorder (!%p208_p2), %s1496_s19, 1  ;;  %vm282_vm0 = vcmask (!%p208_p2), 261120   ;;  %v1822_v12 = vld [vmem:[%s2232_s3] sm:$0xff] (!%p208_p2)   ;;  %v1823_v13 = vld [vmem:[%s2232_s3 + $0x8] sm:$0xff] (!%p208_p2)   ;;  %vm541_vm1 = vcmask (!%p208_p2), 523264   ;;  %vm1408_vm2 = vcmask (!%p208_p2), 257024  }
   0x6   : > { %211 = sbr.rel (%p208_p2) target bundleno = 1825 (0x721), region = 40  ;;  %1686 = vmatprep.subr.bf16.mxu0 (!%p208_p2), %v1822_v12 }
   0x7   : > { %1687 = vmatpush3.bf16.msra.mxu0 (!%p208_p2), %v1822_v12 }
   0x8   : > { %1688 = vmatprep.subr.bf16.mxu0 (!%p208_p2), %v1823_v13 }
   0xb   : > { %1689 = vmatpush3.bf16.msra.mxu0 (!%p208_p2), %v1823_v13 }
   0xd   : > { %s2236_s19 = smov (!%p245_p3, %s1496_s19), 1 }
   0xe   : > { %s1599_s20 = sshll.u32 %s2236_s19, 6  ;;  %s1601_s6 = sshll.u32 %s2236_s19, 5 }
   0xf   : > { %s1954_s23 = scalar_lea.vmem %s2230_s1, %s1599_s20  ;;  %s1961_s26 = scalar_lea.vmem %s2229_s0, %s1599_s20 }
  0x10   : > { %v1814_v0 = vld [vmem:[%s1954_s23] sm:$0xff]   ;;  %v1815_v1 = vld [vmem:[%s1954_s23 + $0x8] sm:$0xff]   ;;  %v1816_v5 = vld [vmem:[%s1954_s23 + $0x10] sm:$0xff]   ;;  %s259_s9 = scalar_lea.vmem %s2231_s2, %s1601_s6 }
  0x11   : > { %1798 = vmatprep.subr.msk.bf16.mxu1 %vm282_vm0, %v1814_v0  ;;  %v465_v2 = vsel %vm282_vm0, %v1814_v0, 0  ;;  %v1818_v3 = vld [vmem:[%s1961_s26] sm:$0xff]   ;;  %v468_v4 = vsel %vm282_vm0, %v1815_v1, 0  ;;  %v471_v6 = vsel %vm282_vm0, %v1816_v5, 0  ;;  %v1817_v7 = vld [vmem:[%s1954_s23 + $0x18] sm:$0xff]   ;;  %v1819_v9 = vld [vmem:[%s1961_s26 + $0x8] sm:$0xff]  }
  0x12   : > { %1699 = vmatpush3.bf16.xpose.msra.mxu1 %v465_v2  ;;  %1706 = vmatprep.mubr.msk.bf16.mxu1 %vm282_vm0, %v1818_v3  ;;  %v474_v8 = vsel %vm282_vm0, %v1817_v7, 0  ;;  %v1820_v10 = vld [vmem:[%s1961_s26 + $0x10] sm:$0xff]   ;;  %v1821_v11 = vld [vmem:[%s1961_s26 + $0x18] sm:$0xff]   ;;  %v1612_v14 = vld [vmem:[%s259_s9] sm:$0xff]  }
  0x13   : > { %1799 = vmatprep.subr.msk.bf16.mxu1 %vm282_vm0, %v1815_v1  ;;  %v1627_v15 = vld [vmem:[%s259_s9 + $0x8] sm:$0xff]   ;;  %v1628_v16 = vld [vmem:[%s259_s9 + $0x10] sm:$0xff]   ;;  %v1613_v17 = vunpack.c.l.bf16 %v1612_v14  ;;  %v1614_v18 = vunpack.c.h.bf16 %v1612_v14  ;;  %v1629_v21 = vld [vmem:[%s259_s9 + $0x18] sm:$0xff]  }
  0x14   : > { %v1617_v19 = vunpack.c.l.bf16 %v1627_v15  ;;  %v1618_v20 = vunpack.c.h.bf16 %v1627_v15  ;;  %v1621_v22 = vunpack.c.l.bf16 %v1628_v16  ;;  %v1622_v23 = vunpack.c.h.bf16 %v1628_v16 }
  0x15   : > { %v1625_v24 = vunpack.c.l.bf16 %v1629_v21  ;;  %v1626_v25 = vunpack.c.h.bf16 %v1629_v21  ;;  %283 = vst.msk [vmem:[#allocation2] sm:$0xff] %vm282_vm0, %v1613_v17  ;;  %284 = vst.msk [vmem:[#allocation2 + $0x8] sm:$0xff] %vm282_vm0, %v1614_v18 }
  0x16   : > { %285 = vst.msk [vmem:[#allocation2 + $0x10] sm:$0xff] %vm282_vm0, %v1617_v19  ;;  %286 = vst.msk [vmem:[#allocation2 + $0x18] sm:$0xff] %vm282_vm0, %v1618_v20 }
  0x17   : > { %287 = vst.msk [vmem:[#allocation2 + $0x20] sm:$0xff] %vm282_vm0, %v1621_v22  ;;  %288 = vst.msk [vmem:[#allocation2 + $0x28] sm:$0xff] %vm282_vm0, %v1622_v23 }
  0x18   : > { %289 = vst.msk [vmem:[#allocation2 + $0x30] sm:$0xff] %vm282_vm0, %v1625_v24  ;;  %290 = vst.msk [vmem:[#allocation2 + $0x38] sm:$0xff] %vm282_vm0, %v1626_v25 }
  0x1a   : > { %1701 = vmatpush3.bf16.xpose.msra.mxu1 %v468_v4 }
  0x1b   : > { %1800 = vmatprep.subr.msk.bf16.mxu1 %vm282_vm0, %v1816_v5 }
  0x1c   : > { %v2001_v26 = vld [vmem:[#allocation2] sm:$0xff]  ;;  %v2003_v27 = vld [vmem:[#allocation2 + $0x8] sm:$0xff] }
  0x1d   : > { %v2005_v28 = vld [vmem:[#allocation2 + $0x10] sm:$0xff]  ;;  %v315_v29 = vpack.c.bf16 %v2003_v27, %v2001_v26  ;;  %v2009_v30 = vld [vmem:[#allocation2 + $0x18] sm:$0xff] }
  0x1e   : > { %v2011_v31 = vld [vmem:[#allocation2 + $0x20] sm:$0xff]  ;;  %v2013_v32 = vld [vmem:[#allocation2 + $0x28] sm:$0xff]  ;;  %v316_v33 = vpack.c.bf16 %v2009_v30, %v2005_v28 }
  0x1f   : > { %v317_v34 = vpack.c.bf16 %v2013_v32, %v2011_v31  ;;  %1690 = vmatprep.mubr.msk.bf16.mxu0 %vm282_vm0, %v315_v29  ;;  %v2022_v35 = vld [vmem:[#allocation2 + $0x30] sm:$0xff]  ;;  %v2024_v36 = vld [vmem:[#allocation2 + $0x38] sm:$0xff] }
  0x20   : > { %1691 = vmatmul.mubr.msk.bf16.vlgmr.msra.gmra.mrb[0].mxu0 %vm282_vm0, %v316_v33  ;;  %v318_v37 = vpack.c.bf16 %v2024_v36, %v2022_v35 }
  0x21   : > { %1694 = vmatprep.mubr.msk.bf16.mxu0 %vm282_vm0, %v317_v34 }
  0x22   : > { %1703 = vmatpush3.bf16.xpose.msra.mxu1 %v471_v6 }
  0x23   : > { %1801 = vmatprep.subr.msk.bf16.mxu1 %vm282_vm0, %v1817_v7 }
  0x28   : > { %1695 = vmatmul.mubr.msk.bf16.gmra.mrb[4].mxu0 %vm282_vm0, %v318_v37 }
  0x2a   : > { %1705 = vmatpush3.bf16.xpose.msra.mxu1 %v474_v8 }
  0x31   : > { %1707 = vmatmul.mubr.msk.bf16.vlgmr.msra.gmra.mrb[0].mxu1 %vm282_vm0, %v1819_v9 }
  0x32   : > { %1710 = vmatprep.mubr.msk.bf16.mxu1 %vm282_vm0, %v1820_v10 }
  0x39   : > { %1711 = vmatmul.mubr.msk.bf16.gmra.mrb[4].mxu1 %vm282_vm0, %v1821_v11 }
  0xf3   : > { %v1692_v54 = vpop.f32.mrb[0].mxu0 }
  0xf4   : > { %v381_v55 = vpop.f32.mrb[1].mxu0 }
  0xf5   : > { %v1693_v56 = vpop.f32.mrb[2].mxu0 }
  0xf6   : > { %v635_v57 = vpack.c.bf16 %v1693_v56, %v1692_v54  ;;  %v384_v58 = vpop.f32.mrb[3].mxu0 }
  0xf7   : > { %v634_v59 = vpack.c.bf16 %v384_v58, %v381_v55 }
  0xf9   : > { %1714 = vmatprep.subr.bf16.mxu0 %v634_v59 }
  0xfa   : > { %1715 = vmatpush3.bf16.msra.mxu0 %v634_v59 }
  0xfb   : > { %1716 = vmatprep.subr.bf16.mxu0 %v635_v57 }
  0xfe   : > { %1717 = vmatpush3.bf16.msra.mxu0 %v635_v57 }
 0x104   : > { %v1708_v38 = vpop.f32.mrb[0].mxu1 }
 0x105   : > { %v510_v39 = vpop.f32.mrb[1].mxu1  ;;  %v548_v40 = vsel %vm541_vm1, %v1708_v38, -inf }
 0x106   : > { %549 = vmax.xlane.f32.xlu1 %v548_v40  ;;  %v1709_v41 = vpop.f32.mrb[2].mxu1  ;;  %v542_v42 = vsel %vm541_vm1, %v510_v39, -inf }
 0x107   : > { %543 = vmax.xlane.f32.xlu0 %v542_v42  ;;  %v513_v43 = vpop.f32.mrb[3].mxu1  ;;  %v551_v44 = vsel %vm541_vm1, %v1709_v41, -inf }
 0x108   : > { %v545_v45 = vsel %vm541_vm1, %v513_v43, -inf }
 0x10a   : > { %552 = vmax.xlane.f32.xlu1 %v551_v44 }
 0x10b   : > { %546 = vmax.xlane.f32.xlu0 %v545_v45 }
 0x10c   : > { %v1712_v46 = vpop.f32.mrb[4].mxu1 }
 0x10d   : > { %v526_v47 = vpop.f32.mrb[5].mxu1  ;;  %v560_v52 = vsel %vm541_vm1, %v1712_v46, -inf }
 0x10e   : > { %v1713_v48 = vpop.f32.mrb[6].mxu1  ;;  %v554_v49 = vsel %vm541_vm1, %v526_v47, -inf }
 0x10f   : > { %555 = vmax.xlane.f32.xlu0 %v554_v49  ;;  %v529_v50 = vpop.f32.mrb[7].mxu1  ;;  %v563_v53 = vsel %vm541_vm1, %v1713_v48, -inf }
 0x110   : > { %v557_v51 = vsel %vm541_vm1, %v529_v50, -inf }
 0x111   : > { %558 = vmax.xlane.f32.xlu1 %v557_v51 }
 0x113   : > { %561 = vmax.xlane.f32.xlu0 %v560_v52 }
 0x115   : > { %564 = vmax.xlane.f32.xlu1 %v563_v53 }
 0x193   : > { %v550_v60 = vpop.xlane.xlu1 %549 }
 0x194   : > { %v568_v61 = vsub.f32 %v1708_v38, %v550_v60  ;;  %v544_v62 = vpop.xlane.xlu0 %543 }
 0x195   : > { %v566_v63 = vsub.f32 %v510_v39, %v544_v62 }
 0x196   : > { %v578_v0 = vmul.f32 1.442695, %v568_v61 }
 0x197   : > { %v574_v1 = vmul.f32 1.442695, %v566_v63  ;;  %v553_v2 = vpop.xlane.xlu1 %552 }
 0x198   : > { %v569_v3 = vsub.f32 %v1709_v41, %v553_v2  ;;  %v547_v4 = vpop.xlane.xlu0 %546 }
 0x199   : > { %1838 = vpow2.f32 %v574_v1  ;;  %v567_v5 = vsub.f32 %v513_v43, %v547_v4  ;;  %v1696_v43 = vpop.f32.mrb[4].mxu0 }
 0x19a   : > { %1840 = vpow2.f32 %v578_v0  ;;  %v580_v6 = vmul.f32 1.442695, %v569_v3  ;;  %v397_v45 = vpop.f32.mrb[5].mxu0 }
 0x19b   : > { %v576_v7 = vmul.f32 1.442695, %v567_v5 }
 0x19c   : > { %v556_v8 = vpop.xlane.xlu0 %555 }
 0x19d   : > { %1842 = vpow2.f32 %v576_v7  ;;  %v570_v9 = vsub.f32 %v526_v47, %v556_v8 }
 0x19e   : > { %v559_v10 = vpop.xlane.xlu1 %558  ;;  %1844 = vpow2.f32 %v580_v6  ;;  %v1825_v6 = vld [vmem:[%s2233_s4 + $0x8] sm:$0xff]  }
 0x19f   : > { %v582_v11 = vmul.f32 1.442695, %v570_v9  ;;  %v571_v12 = vsub.f32 %v529_v50, %v559_v10  ;;  %v1824_v50 = vld [vmem:[%s2233_s4] sm:$0xff]  }
 0x1a0   : > { %v562_v13 = vpop.xlane.xlu0 %561 }
 0x1a1   : > { %1846 = vpow2.f32 %v582_v11  ;;  %v584_v14 = vmul.f32 1.442695, %v571_v12  ;;  %v572_v15 = vsub.f32 %v1712_v46, %v562_v13  ;;  %v1697_v46 = vpop.f32.mrb[6].mxu0 }
 0x1a2   : > { %v565_v16 = vpop.xlane.xlu1 %564  ;;  %v637_v47 = vpack.c.bf16 %v1697_v46, %v1696_v43  ;;  %v1829_v43 = vld [vmem:[%s1954_s23 + $0x38] sm:$0xff]   ;;  %v1832_v46 = vld [vmem:[%s1961_s26 + $0x30] sm:$0xff]  }
 0x1a3   : > { %v1839_v17 = vpop.eup %1838  ;;  %1848 = vpow2.f32 %v584_v14  ;;  %v586_v18 = vmul.f32 1.442695, %v572_v15  ;;  %v573_v19 = vsub.f32 %v1713_v48, %v565_v16  ;;  %v400_v48 = vpop.f32.mrb[7].mxu0  ;;  %v1826_v16 = vld [vmem:[%s1954_s23 + $0x20] sm:$0xff]  }
 0x1a4   : > { %v590_v20 = vsel %vm541_vm1, %v1839_v17, 0.0  ;;  %v1841_v21 = vpop.eup %1840  ;;  %v636_v49 = vpack.c.bf16 %v400_v48, %v397_v45  ;;  %v1831_v45 = vld [vmem:[%s1961_s26 + $0x28] sm:$0xff]   ;;  %v1834_v48 = vld [vmem:[%s2232_s3 + $0x10] sm:$0xff]  }
 0x1a5   : > { %1850 = vpow2.f32 %v586_v18  ;;  %v588_v22 = vmul.f32 1.442695, %v573_v19  ;;  %591 = vadd.xlane.f32.xlu0 %v590_v20  ;;  %v596_v24 = vsel %vm541_vm1, %v1841_v21, 0.0  ;;  %1742 = vmatprep.subr.bf16.mxu1 %v1834_v48 }
 0x1a6   : > { %1718 = vmatprep.subr.bf16.mxu0 %v636_v49  ;;  %1743 = vmatpush3.bf16.msra.mxu1 %v1834_v48 }
 0x1a7   : > { %v1843_v23 = vpop.eup %1842  ;;  %1852 = vpow2.f32 %v588_v22  ;;  %1719 = vmatpush3.bf16.msra.mxu0 %v636_v49  ;;  %v1835_v49 = vld [vmem:[%s2232_s3 + $0x18] sm:$0xff]  }
 0x1a8   : > { %v593_v25 = vsel %vm541_vm1, %v1843_v23, 0.0  ;;  %v1845_v29 = vpop.eup %1844  ;;  %1720 = vmatprep.subr.bf16.mxu0 %v637_v47  ;;  %1744 = vmatprep.subr.bf16.mxu1 %v1835_v49 }
 0x1a9   : > { %597 = vadd.xlane.f32.xlu0 %v596_v24  ;;  %594 = vadd.xlane.f32.xlu1 %v593_v25  ;;  %v599_v37 = vsel %vm541_vm1, %v1845_v29, 0.0  ;;  %v1827_v24 = vld [vmem:[%s1954_s23 + $0x28] sm:$0xff]  }
 0x1aa   : > { %1745 = vmatpush3.bf16.msra.mxu1 %v1835_v49 }
 0x1ab   : > { %v1847_v33 = vpop.eup %1846  ;;  %1721 = vmatpush3.bf16.msra.mxu0 %v637_v47  ;;  %v1833_v47 = vld [vmem:[%s1961_s26 + $0x38] sm:$0xff]  }
 0x1ac   : > { %v602_v34 = vsel %vm541_vm1, %v1847_v33, 0.0  ;;  %1730 = vmatprep.subr.bf16.mxu0 %v1824_v50 }
 0x1ad   : > { %v1849_v38 = vpop.eup %1848  ;;  %603 = vadd.xlane.f32.xlu0 %v602_v34  ;;  %600 = vadd.xlane.f32.xlu1 %v599_v37 }
 0x1ae   : > { %v605_v41 = vsel %vm541_vm1, %v1849_v38, 0.0 }
 0x1af   : > { %v1851_v39 = vpop.eup %1850 }
 0x1b0   : > { %v608_v40 = vsel %vm541_vm1, %v1851_v39, 0.0 }
 0x1b1   : > { %v1853_v42 = vpop.eup %1852  ;;  %609 = vadd.xlane.f32.xlu0 %v608_v40  ;;  %606 = vadd.xlane.f32.xlu1 %v605_v41  ;;  %v1008_v40 = vsel %vm282_vm0, %v1827_v24, 0  ;;  %v1828_v41 = vld [vmem:[%s1954_s23 + $0x30] sm:$0xff]  }
 0x1b2   : > { %v611_v44 = vsel %vm541_vm1, %v1853_v42, 0.0 }
 0x1b5   : > { %612 = vadd.xlane.f32.xlu1 %v611_v44  ;;  %v1014_v44 = vsel %vm282_vm0, %v1829_v43, 0 }
 0x232   : > { %v592_v51 = vpop.xlane.xlu0 %591 }
 0x233   : > { %1854 = vrcp.f32 %v592_v51 }
 0x236   : > { %v598_v52 = vpop.xlane.xlu0 %597  ;;  %v595_v53 = vpop.xlane.xlu1 %594 }
 0x237   : > { %1856 = vrcp.f32 %v595_v53 }
 0x238   : > { %1858 = vrcp.f32 %v598_v52 }
 0x23a   : > { %v604_v54 = vpop.xlane.xlu0 %603  ;;  %v601_v55 = vpop.xlane.xlu1 %600 }
 0x23b   : > { %1860 = vrcp.f32 %v601_v55 }
 0x23c   : > { %1862 = vrcp.f32 %v604_v54 }
 0x23d   : > { %v1855_v58 = vpop.eup %1854 }
 0x23e   : > { %v610_v56 = vpop.xlane.xlu0 %609  ;;  %v607_v57 = vpop.xlane.xlu1 %606  ;;  %v622_v61 = vmul.f32 %v1855_v58, %v1839_v17 }
 0x23f   : > { %1864 = vrcp.f32 %v607_v57 }
 0x240   : > { %1866 = vrcp.f32 %v610_v56 }
 0x241   : > { %v1857_v59 = vpop.eup %1856 }
 0x242   : > { %v613_v60 = vpop.xlane.xlu1 %612  ;;  %v623_v62 = vmul.f32 %v1857_v59, %v1843_v23  ;;  %v1859_v63 = vpop.eup %1858  ;;  %v1005_v23 = vsel %vm282_vm0, %v1826_v16, 0 }
 0x243   : > { %1868 = vrcp.f32 %v613_v60  ;;  %v624_v2 = vmul.f32 %v1859_v63, %v1841_v21 }
 0x244   : > { %v630_v0 = vpack.c.bf16 %v623_v62, %v622_v61 }
 0x245   : > { %v1861_v1 = vpop.eup %1860 }
 0x246   : > { %v625_v3 = vmul.f32 %v1861_v1, %v1845_v29  ;;  %1722 = vmatprep.mubr.msk.bf16.mxu0 %vm541_vm1, %v630_v0  ;;  %v1863_v4 = vpop.eup %1862 }
 0x247   : > { %v626_v9 = vmul.f32 %v1863_v4, %v1847_v33 }
 0x248   : > { %v631_v5 = vpack.c.bf16 %v625_v3, %v624_v2 }
 0x249   : > { %v1865_v7 = vpop.eup %1864 }
 0x24a   : > { %v1867_v8 = vpop.eup %1866  ;;  %1723 = vmatmul.mubr.msk.bf16.vlgmr.msra.gmra.mrb[8].mxu0 %vm541_vm1, %v631_v5  ;;  %v627_v10 = vmul.f32 %v1865_v7, %v1849_v38 }
 0x24b   : > { %1731 = vmatpush3.bf16.msra.mxu0 %v1824_v50  ;;  %v628_v13 = vmul.f32 %v1867_v8, %v1851_v39  ;;  %v1830_v39 = vld [vmem:[%s1961_s26 + $0x20] sm:$0xff]   ;;  %s2201_s26 = scalar_lea.vmem %s2234_s5, %s1601_s6 }
 0x24c   : > { %v632_v12 = vpack.c.bf16 %v627_v10, %v626_v9  ;;  %1732 = vmatprep.subr.bf16.mxu0 %v1825_v6 }
 0x24d   : > { %v1869_v11 = vpop.eup %1868 }
 0x24e   : > { %v629_v14 = vmul.f32 %v1869_v11, %v1853_v42  ;;  %1726 = vmatprep.mubr.msk.bf16.mxu0 %vm541_vm1, %v632_v12  ;;  %v1011_v42 = vsel %vm282_vm0, %v1828_v41, 0 }
 0x24f   : > { %1733 = vmatpush3.bf16.msra.mxu0 %v1825_v6 }
 0x250   : > { %v633_v15 = vpack.c.bf16 %v629_v14, %v628_v13  ;;  %1802 = vmatprep.subr.msk.bf16.mxu0 %vm282_vm0, %v1826_v16 }
 0x252   : > { %1727 = vmatmul.mubr.msk.bf16.gmra.mrb[12].mxu0 %vm541_vm1, %v633_v15 }
 0x31d   : > { %v1724_v17 = vpop.f32.mrb[8].mxu0 }
 0x31e   : > { %v684_v18 = vpop.f32.mrb[9].mxu0 }
 0x31f   : > { %v1725_v19 = vpop.f32.mrb[10].mxu0 }
 0x320   : > { %v716_v20 = vpack.c.bf16 %v1725_v19, %v1724_v17  ;;  %v687_v21 = vpop.f32.mrb[11].mxu0 }
 0x321   : > { %v715_v22 = vpack.c.bf16 %v687_v21, %v684_v18 }
 0x323   : > { %1734 = vmatprep.mubr.msk.bf16.mxu0 %vm282_vm0, %v715_v22 }
 0x324   : > { %1735 = vmatmul.mubr.msk.bf16.vlgmr.msra.gmra.mrb[16].mxu0 %vm282_vm0, %v716_v20 }
 0x325   : > { %1755 = vmatpush3.bf16.xpose.msra.mxu0 %v1005_v23  ;;  %v1728_v25 = vpop.f32.mrb[12].mxu0 }
 0x326   : > { %v700_v29 = vpop.f32.mrb[13].mxu0  ;;  %1803 = vmatprep.subr.msk.bf16.mxu0 %vm282_vm0, %v1827_v24 }
 0x327   : > { %v1729_v33 = vpop.f32.mrb[14].mxu0 }
 0x328   : > { %v718_v34 = vpack.c.bf16 %v1729_v33, %v1728_v25  ;;  %v703_v37 = vpop.f32.mrb[15].mxu0 }
 0x329   : > { %v717_v38 = vpack.c.bf16 %v703_v37, %v700_v29 }
 0x32b   : > { %1738 = vmatprep.mubr.msk.bf16.mxu0 %vm282_vm0, %v717_v38 }
 0x32c   : > { %1739 = vmatmul.mubr.msk.bf16.gmra.mrb[20].mxu0 %vm282_vm0, %v718_v34 }
 0x32d   : > { %1757 = vmatpush3.bf16.xpose.msra.mxu0 %v1008_v40  ;;  %1762 = vmatprep.mubr.msk.bf16.mxu0 %vm282_vm0, %v1830_v39 }
 0x32e   : > { %1804 = vmatprep.subr.msk.bf16.mxu0 %vm282_vm0, %v1828_v41 }
 0x335   : > { %1759 = vmatpush3.bf16.xpose.msra.mxu0 %v1011_v42 }
 0x336   : > { %1805 = vmatprep.subr.msk.bf16.mxu0 %vm282_vm0, %v1829_v43 }
 0x33d   : > { %1761 = vmatpush3.bf16.xpose.msra.mxu0 %v1014_v44 }
 0x344   : > { %1763 = vmatmul.mubr.msk.bf16.vlgmr.msra.gmra.mrb[24].mxu0 %vm282_vm0, %v1831_v45 }
 0x345   : > { %1766 = vmatprep.mubr.msk.bf16.mxu0 %vm282_vm0, %v1832_v46 }
 0x34c   : > { %1767 = vmatmul.mubr.msk.bf16.gmra.mrb[28].mxu0 %vm282_vm0, %v1833_v47 }
 0x3f7   : > { %v1736_v50 = vpop.f32.mrb[16].mxu0 }
 0x3f8   : > { %v814_v51 = vadd.f32 %v1736_v50, %v2005_v28  ;;  %v781_v52 = vpop.f32.mrb[17].mxu0 }
 0x3f9   : > { %v812_v53 = vadd.f32 %v781_v52, %v2001_v26  ;;  %v1737_v54 = vpop.f32.mrb[18].mxu0 }
 0x3fa   : > { %822 = vst.msk [vmem:[#allocation2 + $0x10] sm:$0xff] %vm282_vm0, %v814_v51  ;;  %v815_v55 = vadd.f32 %v1737_v54, %v2009_v30  ;;  %v784_v56 = vpop.f32.mrb[19].mxu0 }
 0x3fb   : > { %820 = vst.msk [vmem:[#allocation2] sm:$0xff] %vm282_vm0, %v812_v53  ;;  %v813_v57 = vadd.f32 %v784_v56, %v2003_v27 }
 0x3fc   : > { %823 = vst.msk [vmem:[#allocation2 + $0x18] sm:$0xff] %vm282_vm0, %v815_v55 }
 0x3fd   : > { %821 = vst.msk [vmem:[#allocation2 + $0x8] sm:$0xff] %vm282_vm0, %v813_v57 }
 0x3ff   : > { %v1740_v58 = vpop.f32.mrb[20].mxu0 }
 0x400   : > { %v818_v28 = vadd.f32 %v1740_v58, %v2022_v35  ;;  %v797_v59 = vpop.f32.mrb[21].mxu0 }
 0x401   : > { %v816_v26 = vadd.f32 %v797_v59, %v2011_v31  ;;  %v1741_v60 = vpop.f32.mrb[22].mxu0  ;;  %v2109_v0 = vld [vmem:[#allocation2 + $0x10] sm:$0xff] }
 0x402   : > { %826 = vst.msk [vmem:[#allocation2 + $0x30] sm:$0xff] %vm282_vm0, %v818_v28  ;;  %v819_v30 = vadd.f32 %v1741_v60, %v2024_v36  ;;  %v800_v61 = vpop.f32.mrb[23].mxu0  ;;  %v2102_v63 = vld [vmem:[#allocation2] sm:$0xff] }
 0x403   : > { %824 = vst.msk [vmem:[#allocation2 + $0x20] sm:$0xff] %vm282_vm0, %v816_v26  ;;  %v817_v27 = vadd.f32 %v800_v61, %v2013_v32  ;;  %v2099_v62 = vld [vmem:[#allocation2 + $0x18] sm:$0xff] }
 0x404   : > { %827 = vst.msk [vmem:[#allocation2 + $0x38] sm:$0xff] %vm282_vm0, %v819_v30  ;;  %v2104_v35 = vld [vmem:[#allocation2 + $0x8] sm:$0xff]  ;;  %v855_v36 = vpack.c.bf16 %v2099_v62, %v2109_v0 }
 0x405   : > { %825 = vst.msk [vmem:[#allocation2 + $0x28] sm:$0xff] %vm282_vm0, %v817_v27  ;;  %v854_v31 = vpack.c.bf16 %v2104_v35, %v2102_v63 }
 0x407   : > { %1746 = vmatprep.mubr.msk.bf16.mxu1 %vm282_vm0, %v854_v31 }
 0x408   : > { %1747 = vmatmul.mubr.msk.bf16.vlgmr.msra.gmra.mrb[8].mxu1 %vm282_vm0, %v855_v36 }
 0x409   : > { %v2123_v4 = vld [vmem:[#allocation2 + $0x30] sm:$0xff] }
 0x40a   : > { %v2117_v1 = vld [vmem:[#allocation2 + $0x20] sm:$0xff] }
 0x40b   : > { %v2115_v32 = vld [vmem:[#allocation2 + $0x38] sm:$0xff] }
 0x40c   : > { %v2119_v2 = vld [vmem:[#allocation2 + $0x28] sm:$0xff]  ;;  %v857_v5 = vpack.c.bf16 %v2115_v32, %v2123_v4 }
 0x40d   : > { %v856_v3 = vpack.c.bf16 %v2119_v2, %v2117_v1 }
 0x40f   : > { %1750 = vmatprep.mubr.msk.bf16.mxu1 %vm282_vm0, %v856_v3 }
 0x410   : > { %1751 = vmatmul.mubr.msk.bf16.gmra.mrb[12].mxu1 %vm282_vm0, %v857_v5 }
 0x417   : > { %v1764_v6 = vpop.f32.mrb[24].mxu0 }
 0x418   : > { %v1050_v7 = vpop.f32.mrb[25].mxu0  ;;  %v1087_v12 = vsel %vm541_vm1, %v1764_v6, -inf }
 0x419   : > { %v1765_v8 = vpop.f32.mrb[26].mxu0  ;;  %v1081_v9 = vsel %vm541_vm1, %v1050_v7, -inf }
 0x41a   : > { %1082 = vmax.xlane.f32.xlu0 %v1081_v9  ;;  %v1053_v10 = vpop.f32.mrb[27].mxu0  ;;  %v1090_v14 = vsel %vm541_vm1, %v1765_v8, -inf }
 0x41b   : > { %v1084_v11 = vsel %vm541_vm1, %v1053_v10, -inf }
 0x41c   : > { %1085 = vmax.xlane.f32.xlu1 %v1084_v11 }
 0x41e   : > { %1088 = vmax.xlane.f32.xlu0 %v1087_v12 }
 0x41f   : > { %v1768_v13 = vpop.f32.mrb[28].mxu0 }
 0x420   : > { %1091 = vmax.xlane.f32.xlu1 %v1090_v14  ;;  %v1066_v15 = vpop.f32.mrb[29].mxu0  ;;  %v1099_v20 = vsel %vm541_vm1, %v1768_v13, -inf }
 0x421   : > { %v1769_v16 = vpop.f32.mrb[30].mxu0  ;;  %v1093_v17 = vsel %vm541_vm1, %v1066_v15, -inf }
 0x422   : > { %1094 = vmax.xlane.f32.xlu0 %v1093_v17  ;;  %v1069_v18 = vpop.f32.mrb[31].mxu0  ;;  %v1102_v21 = vsel %vm541_vm1, %v1769_v16, -inf }
 0x423   : > { %v1096_v19 = vsel %vm541_vm1, %v1069_v18, -inf }
 0x424   : > { %1097 = vmax.xlane.f32.xlu1 %v1096_v19 }
 0x426   : > { %1100 = vmax.xlane.f32.xlu0 %v1099_v20 }
 0x428   : > { %1103 = vmax.xlane.f32.xlu1 %v1102_v21 }
 0x4a7   : > { %v1083_v22 = vpop.xlane.xlu0 %1082 }
 0x4a8   : > { %v1105_v23 = vsub.f32 %v1050_v7, %v1083_v22 }
 0x4a9   : > { %v1086_v24 = vpop.xlane.xlu1 %1085 }
 0x4aa   : > { %v1113_v25 = vmul.f32 1.442695, %v1105_v23  ;;  %v1106_v29 = vsub.f32 %v1053_v10, %v1086_v24 }
 0x4ab   : > { %v1089_v33 = vpop.xlane.xlu0 %1088 }
 0x4ac   : > { %1870 = vpow2.f32 %v1113_v25  ;;  %v1115_v34 = vmul.f32 1.442695, %v1106_v29  ;;  %v1107_v37 = vsub.f32 %v1764_v6, %v1089_v33 }
 0x4ad   : > { %v1092_v38 = vpop.xlane.xlu1 %1091 }
 0x4ae   : > { %1872 = vpow2.f32 %v1115_v34  ;;  %v1117_v39 = vmul.f32 1.442695, %v1107_v37  ;;  %v1108_v40 = vsub.f32 %v1765_v8, %v1092_v38 }
 0x4af   : > { %v1095_v41 = vpop.xlane.xlu0 %1094 }
 0x4b0   : > { %1874 = vpow2.f32 %v1117_v39  ;;  %v1119_v42 = vmul.f32 1.442695, %v1108_v40  ;;  %v1109_v43 = vsub.f32 %v1066_v15, %v1095_v41 }
 0x4b1   : > { %v1098_v44 = vpop.xlane.xlu1 %1097 }
 0x4b2   : > { %1876 = vpow2.f32 %v1119_v42  ;;  %v1121_v45 = vmul.f32 1.442695, %v1109_v43  ;;  %v1110_v46 = vsub.f32 %v1069_v18, %v1098_v44  ;;  %v1836_v18 = vld [vmem:[%s2233_s4 + $0x10] sm:$0xff]  }
 0x4b3   : > { %v1101_v47 = vpop.xlane.xlu0 %1100 }
 0x4b4   : > { %1878 = vpow2.f32 %v1121_v45  ;;  %v1123_v48 = vmul.f32 1.442695, %v1110_v46  ;;  %v1111_v49 = vsub.f32 %v1768_v13, %v1101_v47  ;;  %v1837_v46 = vld [vmem:[%s2233_s4 + $0x18] sm:$0xff]  }
 0x4b5   : > { %v1104_v50 = vpop.xlane.xlu1 %1103 }
 0x4b6   : > { %v2137_v51 = vpop.eup %1870  ;;  %1880 = vpow2.f32 %v1123_v48  ;;  %v1125_v52 = vmul.f32 1.442695, %v1111_v49  ;;  %v1112_v53 = vsub.f32 %v1769_v16, %v1104_v50 }
 0x4b7   : > { %v1129_v54 = vsel %vm541_vm1, %v2137_v51, 0.0 }
 0x4b8   : > { %v2141_v55 = vpop.eup %1872  ;;  %1882 = vpow2.f32 %v1125_v52  ;;  %v1127_v56 = vmul.f32 1.442695, %v1112_v53  ;;  %1130 = vadd.xlane.f32.xlu0 %v1129_v54 }
 0x4b9   : > { %v1132_v57 = vsel %vm541_vm1, %v2141_v55, 0.0 }
 0x4ba   : > { %v2145_v58 = vpop.eup %1874  ;;  %1884 = vpow2.f32 %v1127_v56  ;;  %1133 = vadd.xlane.f32.xlu1 %v1132_v57 }
 0x4bb   : > { %v1135_v28 = vsel %vm541_vm1, %v2145_v58, 0.0 }
 0x4bc   : > { %v1877_v59 = vpop.eup %1876  ;;  %1136 = vadd.xlane.f32.xlu0 %v1135_v28 }
 0x4bd   : > { %v1138_v26 = vsel %vm541_vm1, %v1877_v59, 0.0 }
 0x4be   : > { %v2150_v60 = vpop.eup %1878  ;;  %1139 = vadd.xlane.f32.xlu1 %v1138_v26 }
 0x4bf   : > { %v1141_v30 = vsel %vm541_vm1, %v2150_v60, 0.0 }
 0x4c0   : > { %v2154_v61 = vpop.eup %1880  ;;  %1142 = vadd.xlane.f32.xlu0 %v1141_v30 }
 0x4c1   : > { %v1144_v27 = vsel %vm541_vm1, %v2154_v61, 0.0 }
 0x4c2   : > { %v2158_v31 = vpop.eup %1882  ;;  %1145 = vadd.xlane.f32.xlu1 %v1144_v27 }
 0x4c3   : > { %v1147_v36 = vsel %vm541_vm1, %v2158_v31, 0.0 }
 0x4c4   : > { %v2162_v3 = vpop.eup %1884  ;;  %1148 = vadd.xlane.f32.xlu0 %v1147_v36 }
 0x4c5   : > { %v1150_v5 = vsel %vm541_vm1, %v2162_v3, 0.0 }
 0x4c6   : > { %1151 = vadd.xlane.f32.xlu1 %v1150_v5 }
 0x4db   : > { %v1748_v6 = vpop.f32.mrb[8].mxu1 }
 0x4dc   : > { %v921_v7 = vpop.f32.mrb[9].mxu1 }
 0x4dd   : > { %v1749_v8 = vpop.f32.mrb[10].mxu1 }
 0x4de   : > { %v1174_v9 = vpack.c.bf16 %v1749_v8, %v1748_v6  ;;  %v924_v10 = vpop.f32.mrb[11].mxu1 }
 0x4df   : > { %v1173_v11 = vpack.c.bf16 %v924_v10, %v921_v7 }
 0x4e1   : > { %1770 = vmatprep.subr.bf16.mxu1 %v1173_v11 }
 0x4e2   : > { %1771 = vmatpush3.bf16.msra.mxu1 %v1173_v11 }
 0x4e3   : > { %v1752_v12 = vpop.f32.mrb[12].mxu1  ;;  %1772 = vmatprep.subr.bf16.mxu1 %v1174_v9 }
 0x4e4   : > { %v937_v13 = vpop.f32.mrb[13].mxu1 }
 0x4e5   : > { %v1753_v14 = vpop.f32.mrb[14].mxu1 }
 0x4e6   : > { %v1176_v15 = vpack.c.bf16 %v1753_v14, %v1752_v12  ;;  %v940_v16 = vpop.f32.mrb[15].mxu1  ;;  %1773 = vmatpush3.bf16.msra.mxu1 %v1174_v9 }
 0x4e7   : > { %v1175_v17 = vpack.c.bf16 %v940_v16, %v937_v13 }
 0x4e9   : > { %1774 = vmatprep.subr.bf16.mxu1 %v1175_v17 }
 0x4ea   : > { %1775 = vmatpush3.bf16.msra.mxu1 %v1175_v17 }
 0x4eb   : > { %1776 = vmatprep.subr.bf16.mxu1 %v1176_v15 }
 0x4ee   : > { %1777 = vmatpush3.bf16.msra.mxu1 %v1176_v15 }
 0x4ef   : > { %1786 = vmatprep.subr.bf16.mxu1 %v1836_v18 }
 0x545   : > { %v1131_v19 = vpop.xlane.xlu0 %1130 }
 0x546   : > { %1886 = vrcp.f32 %v1131_v19 }
 0x547   : > { %v1134_v20 = vpop.xlane.xlu1 %1133 }
 0x548   : > { %1888 = vrcp.f32 %v1134_v20 }
 0x549   : > { %v1137_v21 = vpop.xlane.xlu0 %1136 }
 0x54a   : > { %1890 = vrcp.f32 %v1137_v21 }
 0x54b   : > { %v1140_v22 = vpop.xlane.xlu1 %1139 }
 0x54c   : > { %1892 = vrcp.f32 %v1140_v22 }
 0x54d   : > { %v1143_v23 = vpop.xlane.xlu0 %1142 }
 0x54e   : > { %1894 = vrcp.f32 %v1143_v23 }
 0x54f   : > { %v1146_v24 = vpop.xlane.xlu1 %1145 }
 0x550   : > { %v1887_v25 = vpop.eup %1886  ;;  %1896 = vrcp.f32 %v1146_v24 }
 0x551   : > { %v1149_v29 = vpop.xlane.xlu0 %1148  ;;  %v1161_v37 = vmul.f32 %v1887_v25, %v2137_v51 }
 0x552   : > { %v1889_v33 = vpop.eup %1888  ;;  %1898 = vrcp.f32 %v1149_v29 }
 0x553   : > { %v1152_v34 = vpop.xlane.xlu1 %1151  ;;  %v1162_v38 = vmul.f32 %v1889_v33, %v2141_v55 }
 0x554   : > { %v1891_v39 = vpop.eup %1890  ;;  %1900 = vrcp.f32 %v1152_v34 }
 0x555   : > { %v1169_v40 = vpack.c.bf16 %v1162_v38, %v1161_v37  ;;  %v1163_v42 = vmul.f32 %v1891_v39, %v2145_v58 }
 0x556   : > { %v1893_v41 = vpop.eup %1892 }
 0x557   : > { %v1164_v43 = vmul.f32 %v1893_v41, %v1877_v59  ;;  %1778 = vmatprep.mubr.msk.bf16.mxu1 %vm541_vm1, %v1169_v40 }
 0x558   : > { %v1895_v44 = vpop.eup %1894 }
 0x559   : > { %v1170_v45 = vpack.c.bf16 %v1164_v43, %v1163_v42  ;;  %v1165_v48 = vmul.f32 %v1895_v44, %v2150_v60 }
 0x55a   : > { %v1897_v47 = vpop.eup %1896 }
 0x55b   : > { %1779 = vmatmul.mubr.msk.bf16.vlgmr.msra.gmra.mrb[16].mxu1 %vm541_vm1, %v1170_v45  ;;  %v1166_v49 = vmul.f32 %v1897_v47, %v2154_v61 }
 0x55c   : > { %v1899_v50 = vpop.eup %1898  ;;  %1787 = vmatpush3.bf16.msra.mxu1 %v1836_v18 }
 0x55d   : > { %v1171_v51 = vpack.c.bf16 %v1166_v49, %v1165_v48  ;;  %1788 = vmatprep.subr.bf16.mxu1 %v1837_v46  ;;  %v1167_v53 = vmul.f32 %v1899_v50, %v2158_v31 }
 0x55e   : > { %v1901_v52 = vpop.eup %1900 }
 0x55f   : > { %1782 = vmatprep.mubr.msk.bf16.mxu1 %vm541_vm1, %v1171_v51  ;;  %v1168_v54 = vmul.f32 %v1901_v52, %v2162_v3 }
 0x560   : > { %1789 = vmatpush3.bf16.msra.mxu1 %v1837_v46 }
 0x561   : > { %v1172_v55 = vpack.c.bf16 %v1168_v54, %v1167_v53 }
 0x563   : > { %1783 = vmatmul.mubr.msk.bf16.gmra.mrb[20].mxu1 %vm541_vm1, %v1172_v55 }
 0x62e   : > { %v1780_v56 = vpop.f32.mrb[16].mxu1 }
 0x62f   : > { %v1223_v57 = vpop.f32.mrb[17].mxu1 }
 0x630   : > { %v1781_v58 = vpop.f32.mrb[18].mxu1 }
 0x631   : > { %v1255_v28 = vpack.c.bf16 %v1781_v58, %v1780_v56  ;;  %v1226_v59 = vpop.f32.mrb[19].mxu1 }
 0x632   : > { %v1254_v26 = vpack.c.bf16 %v1226_v59, %v1223_v57 }
 0x634   : > { %1790 = vmatprep.mubr.msk.bf16.mxu1 %vm282_vm0, %v1254_v26 }
 0x635   : > { %1791 = vmatmul.mubr.msk.bf16.vlgmr.msra.gmra.mrb[24].mxu1 %vm282_vm0, %v1255_v28 }
 0x636   : > { %v1784_v60 = vpop.f32.mrb[20].mxu1 }
 0x637   : > { %v1239_v30 = vpop.f32.mrb[21].mxu1 }
 0x638   : > { %v1785_v61 = vpop.f32.mrb[22].mxu1 }
 0x639   : > { %v1257_v27 = vpack.c.bf16 %v1785_v61, %v1784_v60  ;;  %v1242_v31 = vpop.f32.mrb[23].mxu1 }
 0x63a   : > { %v1256_v36 = vpack.c.bf16 %v1242_v31, %v1239_v30 }
 0x63c   : > { %1794 = vmatprep.mubr.msk.bf16.mxu1 %vm282_vm0, %v1256_v36 }
 0x63d   : > { %1795 = vmatmul.mubr.msk.bf16.gmra.mrb[28].mxu1 %vm282_vm0, %v1257_v27 }
 0x708   : > { %v1792_v3 = vpop.f32.mrb[24].mxu1 }
 0x709   : > { %v1354_v5 = vadd.f32 %v1792_v3, %v2109_v0  ;;  %v1321_v6 = vpop.f32.mrb[25].mxu1 }
 0x70a   : > { %v1352_v7 = vadd.f32 %v1321_v6, %v2102_v63  ;;  %v1793_v8 = vpop.f32.mrb[26].mxu1 }
 0x70b   : > { %1362 = vst.msk [vmem:[#allocation2 + $0x10] sm:$0xff] %vm282_vm0, %v1354_v5  ;;  %v1355_v9 = vadd.f32 %v1793_v8, %v2099_v62  ;;  %v1324_v10 = vpop.f32.mrb[27].mxu1 }
 0x70c   : > { %1360 = vst.msk [vmem:[#allocation2] sm:$0xff] %vm282_vm0, %v1352_v7  ;;  %v1353_v11 = vadd.f32 %v1324_v10, %v2104_v35 }
 0x70d   : > { %1363 = vst.msk [vmem:[#allocation2 + $0x18] sm:$0xff] %vm282_vm0, %v1355_v9 }
 0x70e   : > { %1361 = vst.msk [vmem:[#allocation2 + $0x8] sm:$0xff] %vm282_vm0, %v1353_v11 }
 0x710   : > { %v1796_v12 = vpop.f32.mrb[28].mxu1 }
 0x711   : > { %v1358_v0 = vadd.f32 %v1796_v12, %v2123_v4  ;;  %v1337_v13 = vpop.f32.mrb[29].mxu1 }
 0x712   : > { %v1370_v62 = vld [vmem:[#allocation2 + $0x10] sm:$0xff]  ;;  %v1356_v63 = vadd.f32 %v1337_v13, %v2117_v1  ;;  %v1797_v35 = vpop.f32.mrb[30].mxu1 }
 0x713   : > { %v1605_v14 = vpack.c.bf16 %v1370_v62, %v1370_v62  ;;  %v1368_v15 = vld [vmem:[#allocation2] sm:$0xff]  ;;  %1366 = vst.msk [vmem:[#allocation2 + $0x30] sm:$0xff] %vm282_vm0, %v1358_v0  ;;  %v1359_v4 = vadd.f32 %v1797_v35, %v2115_v32  ;;  %v1340_v16 = vpop.f32.mrb[31].mxu1 }
 0x714   : > { %v1603_v17 = vpack.c.bf16 %v1368_v15, %v1368_v15  ;;  %v1371_v18 = vld [vmem:[#allocation2 + $0x18] sm:$0xff]  ;;  %1364 = vst.msk [vmem:[#allocation2 + $0x20] sm:$0xff] %vm282_vm0, %v1356_v63  ;;  %v1357_v19 = vadd.f32 %v1340_v16, %v2119_v2 }
 0x715   : > { %1411 = vst.msk [vmem:[%s2201_s26 + $0x8] sm:$0xf] %vm1408_vm2, %v1605_v14  ;;  %v1606_v1 = vpack.c.bf16 %v1371_v18, %v1371_v18  ;;  %v1369_v20 = vld [vmem:[#allocation2 + $0x8] sm:$0xff] }
 0x716   : > { %1367 = vst.msk [vmem:[#allocation2 + $0x38] sm:$0xff] %vm282_vm0, %v1359_v4  ;;  %v1604_v32 = vpack.c.bf16 %v1369_v20, %v1369_v20  ;;  %1365 = vst.msk [vmem:[#allocation2 + $0x28] sm:$0xff] %vm282_vm0, %v1357_v19 }
 0x717   : > { %1409 = vst.msk [vmem:[%s2201_s26] sm:$0xf] %vm1408_vm2, %v1603_v17  ;;  %1412 = vst.msk [vmem:[%s2201_s26 + $0xc] sm:$0xf] %vm1408_vm2, %v1606_v1 }
 0x718   : > { %1410 = vst.msk [vmem:[%s2201_s26 + $0x4] sm:$0xf] %vm1408_vm2, %v1604_v32 }
 0x71a   : > { %v1374_v21 = vld [vmem:[#allocation2 + $0x30] sm:$0xff] }
 0x71b   : > { %v1609_v2 = vpack.c.bf16 %v1374_v21, %v1374_v21  ;;  %v1372_v22 = vld [vmem:[#allocation2 + $0x20] sm:$0xff] }
 0x71c   : > { %v1607_v23 = vpack.c.bf16 %v1372_v22, %v1372_v22 }
 0x71d   : > { %v1375_v24 = vld [vmem:[#allocation2 + $0x38] sm:$0xff]  ;;  %1415 = vst.msk [vmem:[%s2201_s26 + $0x18] sm:$0xf] %vm1408_vm2, %v1609_v2  ;;  %v1373_v29 = vld [vmem:[#allocation2 + $0x28] sm:$0xff] }
 0x71e   : > { %v1610_v25 = vpack.c.bf16 %v1375_v24, %v1375_v24  ;;  %1413 = vst.msk [vmem:[%s2201_s26 + $0x10] sm:$0xf] %vm1408_vm2, %v1607_v23  ;;  %v1608_v33 = vpack.c.bf16 %v1373_v29, %v1373_v29 }
 0x720   : > { %1416 = vst.msk [vmem:[%s2201_s26 + $0x1c] sm:$0xf] %vm1408_vm2, %v1610_v25  ;;  %1414 = vst.msk [vmem:[%s2201_s26 + $0x14] sm:$0xf] %vm1408_vm2, %v1608_v33 }
 0x721 PF: > { %s15_s18 = sadd.s32 1, %s1908_s18  }
 0x722   : > { %p12_p4 = scmp.ge.s32.totalorder %s15_s18, 4  }
 0x724   :  { %14 = sbr.rel (!%p12_p4) target bundleno = 1 (0x1), region = 80 }

</bundles_post_ra>
